<compile_context>
chip_gen: v6e
topology: v6e:2x2x1
jax: 0.10.0
libtpu: 0.0.40
codegen_flags: <defaults>
</compile_context>

<pallas_src>
import jax
import jax.numpy as jnp
from jax.experimental import pallas as pl
from jax.experimental.pallas import tpu as pltpu

K_PAD = 896  # 784 rounded up to a multiple of 128 (lane-aligned contraction)


def _round_up(n, m):
    return ((n + m - 1) // m) * m


def _disc_kernel(x_ref, w1_ref, b1_ref, w2_ref, b2_ref,
                 w3_ref, b3_ref, w4_ref, b4_ref, o_ref):
    # Layer 1: Linear(896(=784 zero-padded) -> 1024) + ReLU  (Dropout = identity)
    h = jnp.dot(x_ref[...], w1_ref[...], preferred_element_type=jnp.float32)
    h = jnp.maximum(h + b1_ref[...], 0.0)
    # Layer 2: Linear(1024 -> 512) + ReLU
    h = jnp.dot(h.astype(jnp.bfloat16), w2_ref[...],
                preferred_element_type=jnp.float32)
    h = jnp.maximum(h + b2_ref[...], 0.0)
    # Layer 3: Linear(512 -> 256) + ReLU
    h = jnp.dot(h.astype(jnp.bfloat16), w3_ref[...],
                preferred_element_type=jnp.float32)
    h = jnp.maximum(h + b3_ref[...], 0.0)
    # Layer 4: Linear(256 -> 1) + Sigmoid.  N=1 wastes the MXU: use a VPU
    # broadcast-multiply + cross-lane reduce instead (f32 throughout).
    logit = jnp.sum(h * w4_ref[...], axis=-1, keepdims=True) + b4_ref[...]
    o_ref[...] = jax.nn.sigmoid(logit)


def discriminator_forward(x, params, *, max_tile_b=256):
    """x: (B, 1, 28, 28) or (B, 784) float32. Returns (B, 1) float32."""
    B = x.shape[0]
    x2d = x.reshape(B, 784).astype(jnp.float32)

    # Batch tiling: tile_b = 256 saturates the v6e/v7x MXU row dim; small
    # batches just round up to the sublane multiple of 8.
    tile_b = min(max_tile_b, _round_up(B, 8))
    Bp = _round_up(B, tile_b)
    grid = (Bp // tile_b,)

    # Pad batch rows (sliced off at the end) and the K dim 784 -> 896; feed the
    # MXU in bf16.
    xp = jnp.pad(x2d, ((0, Bp - B), (0, K_PAD - 784))).astype(jnp.bfloat16)

    (w1, b1), (w2, b2), (w3, b3), (w4, b4) = params
    w1b = jnp.pad(w1, ((0, K_PAD - 784), (0, 0))).astype(jnp.bfloat16)
    w2b = w2.astype(jnp.bfloat16)
    w3b = w3.astype(jnp.bfloat16)
    w4r = w4.reshape(256, 1).T.astype(jnp.float32)          # (1, 256), stays f32
    b1r = b1.reshape(1, -1).astype(jnp.float32)
    b2r = b2.reshape(1, -1).astype(jnp.float32)
    b3r = b3.reshape(1, -1).astype(jnp.float32)
    b4r = b4.reshape(1, 1).astype(jnp.float32)

    const = lambda shape: pl.BlockSpec(shape, lambda i: (0, 0))  # VMEM-resident

    flops = 2 * B * (K_PAD * 1024 + 1024 * 512 + 512 * 256 + 256)
    bytes_accessed = int(xp.nbytes + w1b.nbytes + w2b.nbytes + w3b.nbytes
                         + w4r.nbytes + b1r.nbytes + b2r.nbytes + b3r.nbytes
                         + b4r.nbytes + Bp * 4)

    out = pl.pallas_call(
        _disc_kernel,
        out_shape=jax.ShapeDtypeStruct((Bp, 1), jnp.float32),
        grid=grid,
        in_specs=[
            pl.BlockSpec((tile_b, K_PAD), lambda i: (i, 0)),  # x tile
            const((K_PAD, 1024)), const((1, 1024)),           # w1, b1
            const((1024, 512)), const((1, 512)),              # w2, b2
            const((512, 256)), const((1, 256)),               # w3, b3
            const((1, 256)), const((1, 1)),                   # w4 row, b4
        ],
        out_specs=pl.BlockSpec((tile_b, 1), lambda i: (i, 0)),
        compiler_params=pltpu.CompilerParams(
            dimension_semantics=("parallel",),
            vmem_limit_bytes=32 << 20,
        ),
        cost_estimate=pl.CostEstimate(
            flops=flops, transcendentals=B, bytes_accessed=bytes_accessed),
    )(xp, w1b, b1r, w2b, b2r, w3b, b3r, w4r, b4r)

    return out[:B]


def init_params(key):
    """Deterministic init mimicking torch.nn.Linear default U(-1/sqrt(in), 1/sqrt(in))."""
    dims = [(784, 1024), (1024, 512), (512, 256), (256, 1)]
    params = []
    for (fan_in, fan_out) in dims:
        key, kw, kb = jax.random.split(key, 3)
        bound = 1.0 / jnp.sqrt(float(fan_in))
        w = jax.random.uniform(kw, (fan_in, fan_out), jnp.float32, -bound, bound)
        b = jax.random.uniform(kb, (fan_out,), jnp.float32, -bound, bound)
        params.append((w, b))
    return params


if __name__ == "__main__":
    key = jax.random.PRNGKey(0)
    key, kx = jax.random.split(key)

    B = 8
    x = jax.random.normal(kx, (B, 1, 28, 28), dtype=jnp.float32)  # NCHW
    params = init_params(key)

    out = discriminator_forward(x, params)
    out = jax.block_until_ready(out)

    # sanity: shape (B, 1), values in (0, 1) from sigmoid
    assert out.shape == (B, 1)
    assert bool(jnp.all((out > 0.0) & (out < 1.0)))

    # cross-check against plain-JAX f32 reference (kernel runs bf16 matmuls
    # with f32 accumulation, so allow bf16-level tolerance)
    def ref(x, params):
        h = x.reshape(x.shape[0], 784)
        for i, (w, b) in enumerate(params):
            h = h @ w + b
            if i < 3:
                h = jnp.maximum(h, 0.0)
        return jax.nn.sigmoid(h)

    ref_out = ref(x, params)
    assert bool(jnp.allclose(out, ref_out, atol=3e-2, rtol=3e-2))

    print("KERNEL_OK")
</pallas_src>

<mosaic_0001>
module attributes {stable_mosaic.version = 11 : i64} {
  func.func @_disc_kernel(%arg0: i32, %arg1: memref<8x896xbf16, #tpu.memory_space<vmem>>, %arg2: memref<896x1024xbf16, #tpu.memory_space<vmem>>, %arg3: memref<1x1024xf32, #tpu.memory_space<vmem>>, %arg4: memref<1024x512xbf16, #tpu.memory_space<vmem>>, %arg5: memref<1x512xf32, #tpu.memory_space<vmem>>, %arg6: memref<512x256xbf16, #tpu.memory_space<vmem>>, %arg7: memref<1x256xf32, #tpu.memory_space<vmem>>, %arg8: memref<1x256xf32, #tpu.memory_space<vmem>>, %arg9: memref<1x1xf32, #tpu.memory_space<vmem>>, %arg10: memref<8x1xf32, #tpu.memory_space<vmem>>) attributes {dimension_semantics = [#tpu.dimension_semantics<parallel>], iteration_bounds = array<i64: 1>, scalar_prefetch = 0 : i64, scratch_operands = 0 : i64, tpu.core_type = #tpu.core_type<tc>, window_params = [{transform_indices = @transform_0, window_bounds = array<i64: 8, 896>}, {pipeline_mode = #tpu.pipeline_mode<synchronous>, transform_indices = @transform_1, window_bounds = array<i64: 896, 1024>}, {pipeline_mode = #tpu.pipeline_mode<synchronous>, transform_indices = @transform_2, window_bounds = array<i64: 1, 1024>}, {pipeline_mode = #tpu.pipeline_mode<synchronous>, transform_indices = @transform_3, window_bounds = array<i64: 1024, 512>}, {pipeline_mode = #tpu.pipeline_mode<synchronous>, transform_indices = @transform_4, window_bounds = array<i64: 1, 512>}, {pipeline_mode = #tpu.pipeline_mode<synchronous>, transform_indices = @transform_5, window_bounds = array<i64: 512, 256>}, {pipeline_mode = #tpu.pipeline_mode<synchronous>, transform_indices = @transform_6, window_bounds = array<i64: 1, 256>}, {pipeline_mode = #tpu.pipeline_mode<synchronous>, transform_indices = @transform_7, window_bounds = array<i64: 1, 256>}, {pipeline_mode = #tpu.pipeline_mode<synchronous>, transform_indices = @transform_8, window_bounds = array<i64: 1, 1>}, {transform_indices = @transform_9, window_bounds = array<i64: 8, 1>}]} {
    %c0 = arith.constant 0 : index
    %c0_0 = arith.constant 0 : index
    %0 = vector.load %arg1[%c0, %c0_0] : memref<8x896xbf16, #tpu.memory_space<vmem>>, vector<8x896xbf16>
    %c0_1 = arith.constant 0 : index
    %c0_2 = arith.constant 0 : index
    %1 = vector.load %arg2[%c0_1, %c0_2] : memref<896x1024xbf16, #tpu.memory_space<vmem>>, vector<896x1024xbf16>
    %cst = arith.constant dense<0.000000e+00> : vector<8x1024xf32>
    %2 = tpu.matmul %0, %1, %cst {dimension_numbers = #tpu.dot_dimension_numbers<[1], [0], [0], [1], [0, 0, 1, 1], [], []>} : vector<8x896xbf16>, vector<896x1024xbf16>, vector<8x1024xf32> -> vector<8x1024xf32>
    %c0_3 = arith.constant 0 : index
    %c0_4 = arith.constant 0 : index
    %3 = vector.load %arg3[%c0_3, %c0_4] : memref<1x1024xf32, #tpu.memory_space<vmem>>, vector<1x1024xf32>
    %4 = vector.broadcast %3 : vector<1x1024xf32> to vector<8x1024xf32>
    %5 = arith.addf %2, %4 : vector<8x1024xf32>
    %cst_5 = arith.constant 0.000000e+00 : f32
    %6 = vector.broadcast %cst_5 : f32 to vector<8x1024xf32>
    %7 = arith.maximumf %5, %6 : vector<8x1024xf32>
    %8 = arith.truncf %7 : vector<8x1024xf32> to vector<8x1024xbf16>
    %c0_6 = arith.constant 0 : index
    %c0_7 = arith.constant 0 : index
    %9 = vector.load %arg4[%c0_6, %c0_7] : memref<1024x512xbf16, #tpu.memory_space<vmem>>, vector<1024x512xbf16>
    %cst_8 = arith.constant dense<0.000000e+00> : vector<8x512xf32>
    %10 = tpu.matmul %8, %9, %cst_8 {dimension_numbers = #tpu.dot_dimension_numbers<[1], [0], [0], [1], [0, 0, 1, 1], [], []>} : vector<8x1024xbf16>, vector<1024x512xbf16>, vector<8x512xf32> -> vector<8x512xf32>
    %c0_9 = arith.constant 0 : index
    %c0_10 = arith.constant 0 : index
    %11 = vector.load %arg5[%c0_9, %c0_10] : memref<1x512xf32, #tpu.memory_space<vmem>>, vector<1x512xf32>
    %12 = vector.broadcast %11 : vector<1x512xf32> to vector<8x512xf32>
    %13 = arith.addf %10, %12 : vector<8x512xf32>
    %cst_11 = arith.constant 0.000000e+00 : f32
    %14 = vector.broadcast %cst_11 : f32 to vector<8x512xf32>
    %15 = arith.maximumf %13, %14 : vector<8x512xf32>
    %16 = arith.truncf %15 : vector<8x512xf32> to vector<8x512xbf16>
    %c0_12 = arith.constant 0 : index
    %c0_13 = arith.constant 0 : index
    %17 = vector.load %arg6[%c0_12, %c0_13] : memref<512x256xbf16, #tpu.memory_space<vmem>>, vector<512x256xbf16>
    %cst_14 = arith.constant dense<0.000000e+00> : vector<8x256xf32>
    %18 = tpu.matmul %16, %17, %cst_14 {dimension_numbers = #tpu.dot_dimension_numbers<[1], [0], [0], [1], [0, 0, 1, 1], [], []>} : vector<8x512xbf16>, vector<512x256xbf16>, vector<8x256xf32> -> vector<8x256xf32>
    %c0_15 = arith.constant 0 : index
    %c0_16 = arith.constant 0 : index
    %19 = vector.load %arg7[%c0_15, %c0_16] : memref<1x256xf32, #tpu.memory_space<vmem>>, vector<1x256xf32>
    %20 = vector.broadcast %19 : vector<1x256xf32> to vector<8x256xf32>
    %21 = arith.addf %18, %20 : vector<8x256xf32>
    %cst_17 = arith.constant 0.000000e+00 : f32
    %22 = vector.broadcast %cst_17 : f32 to vector<8x256xf32>
    %23 = arith.maximumf %21, %22 : vector<8x256xf32>
    %c0_18 = arith.constant 0 : index
    %c0_19 = arith.constant 0 : index
    %24 = vector.load %arg8[%c0_18, %c0_19] : memref<1x256xf32, #tpu.memory_space<vmem>>, vector<1x256xf32>
    %25 = vector.broadcast %24 : vector<1x256xf32> to vector<8x256xf32>
    %26 = arith.mulf %23, %25 : vector<8x256xf32>
    %cst_20 = arith.constant dense<0.000000e+00> : vector<8xf32>
    %27 = vector.multi_reduction <add>, %26, %cst_20 [1] : vector<8x256xf32> to vector<8xf32>
    %28 = vector.shape_cast %27 : vector<8xf32> to vector<8x1xf32>
    %c0_21 = arith.constant 0 : index
    %c0_22 = arith.constant 0 : index
    %29 = vector.load %arg9[%c0_21, %c0_22] : memref<1x1xf32, #tpu.memory_space<vmem>>, vector<1x1xf32>
    %30 = vector.broadcast %29 : vector<1x1xf32> to vector<8x1xf32>
    %31 = arith.addf %28, %30 : vector<8x1xf32>
    %32 = arith.negf %31 : vector<8x1xf32>
    %33 = math.exp %32 : vector<8x1xf32>
    %cst_23 = arith.constant 1.000000e+00 : f32
    %34 = vector.broadcast %cst_23 : f32 to vector<8x1xf32>
    %35 = arith.addf %34, %33 : vector<8x1xf32>
    %36 = arith.divf %34, %35 : vector<8x1xf32>
    %c0_24 = arith.constant 0 : index
    %c0_25 = arith.constant 0 : index
    %37 = vector.load %arg10[%c0_24, %c0_25] : memref<8x1xf32, #tpu.memory_space<vmem>>, vector<8x1xf32>
    tpu.vector_store %arg10[%c0_24, %c0_25], %36 {strides = array<i32>} : memref<8x1xf32, #tpu.memory_space<vmem>>, vector<8x1xf32>,
    return
  }
  func.func @transform_0(%arg0: i32) -> (i32, i32) {
    %c0_i32 = arith.constant 0 : i32
    %c0_i32_0 = arith.constant 0 : i32
    return %arg0, %c0_i32 : i32, i32
  }
  func.func @transform_1(%arg0: i32) -> (i32, i32) {
    %c0_i32 = arith.constant 0 : i32
    %c0_i32_0 = arith.constant 0 : i32
    %c0_i32_1 = arith.constant 0 : i32
    return %c0_i32, %c0_i32_0 : i32, i32
  }
  func.func @transform_2(%arg0: i32) -> (i32, i32) {
    %c0_i32 = arith.constant 0 : i32
    %c0_i32_0 = arith.constant 0 : i32
    %c0_i32_1 = arith.constant 0 : i32
    return %c0_i32, %c0_i32_0 : i32, i32
  }
  func.func @transform_3(%arg0: i32) -> (i32, i32) {
    %c0_i32 = arith.constant 0 : i32
    %c0_i32_0 = arith.constant 0 : i32
    %c0_i32_1 = arith.constant 0 : i32
    return %c0_i32, %c0_i32_0 : i32, i32
  }
  func.func @transform_4(%arg0: i32) -> (i32, i32) {
    %c0_i32 = arith.constant 0 : i32
    %c0_i32_0 = arith.constant 0 : i32
    %c0_i32_1 = arith.constant 0 : i32
    return %c0_i32, %c0_i32_0 : i32, i32
  }
  func.func @transform_5(%arg0: i32) -> (i32, i32) {
    %c0_i32 = arith.constant 0 : i32
    %c0_i32_0 = arith.constant 0 : i32
    %c0_i32_1 = arith.constant 0 : i32
    return %c0_i32, %c0_i32_0 : i32, i32
  }
  func.func @transform_6(%arg0: i32) -> (i32, i32) {
    %c0_i32 = arith.constant 0 : i32
    %c0_i32_0 = arith.constant 0 : i32
    %c0_i32_1 = arith.constant 0 : i32
    return %c0_i32, %c0_i32_0 : i32, i32
  }
  func.func @transform_7(%arg0: i32) -> (i32, i32) {
    %c0_i32 = arith.constant 0 : i32
    %c0_i32_0 = arith.constant 0 : i32
    %c0_i32_1 = arith.constant 0 : i32
    return %c0_i32, %c0_i32_0 : i32, i32
  }
  func.func @transform_8(%arg0: i32) -> (i32, i32) {
    %c0_i32 = arith.constant 0 : i32
    %c0_i32_0 = arith.constant 0 : i32
    %c0_i32_1 = arith.constant 0 : i32
    return %c0_i32, %c0_i32_0 : i32, i32
  }
  func.func @transform_9(%arg0: i32) -> (i32, i32) {
    %c0_i32 = arith.constant 0 : i32
    %c0_i32_0 = arith.constant 0 : i32
    return %arg0, %c0_i32 : i32, i32
  }
}

</mosaic_0001>

<bundles_post_ra>
// kernel: tpu_custom_call.1
= control target key start
LH: loop header
LB: loop body
LE: loop exit
PB: predicated region body
PF: predicated region fallthrough
CT: control target
= control target key end

     0   :  { %s7746_s0 = inlined_call_operand.hbm [shape: bf16[8,896], index: 0, kind: input, shape index: {}]   ;;  %s7747_s1 = inlined_call_operand.hbm [shape: bf16[896,1024], index: 1, kind: input, shape index: {}]   ;;  %s7748_s2 = inlined_call_operand.hbm [shape: f32[1,1024], index: 2, kind: input, shape index: {}]   ;;  %s7749_s3 = inlined_call_operand.hbm [shape: bf16[1024,512], index: 3, kind: input, shape index: {}]   ;;  %s7750_s4 = inlined_call_operand.hbm [shape: f32[1,512], index: 4, kind: input, shape index: {}]   ;;  %s7751_s5 = inlined_call_operand.hbm [shape: bf16[512,256], index: 5, kind: input, shape index: {}]   ;;  %s7752_s6 = inlined_call_operand.hbm [shape: f32[1,256], index: 6, kind: input, shape index: {}]   ;;  %s7753_s7 = inlined_call_operand.hbm [shape: f32[1,256], index: 7, kind: input, shape index: {}]   ;;  %s7754_s8 = inlined_call_operand.<no memory space> [shape: f32[1,1], index: 8, kind: input, shape index: {}]   ;;  %s7755_s9 = inlined_call_operand.vmem [shape: f32[8,1], index: 9, kind: output, shape index: {}]  }
   0x1   :  { %v14_v0 = vstv %s7754_s8 }
   0x2   :  { %15 = vst [vmem:[#allocation2] sm:$0x1] %v14_v0 }
   0x3   :  { %16 = vsyncpa [#allocation4], 0 }
   0x4   :  { %17 = vsyncpa [#allocation6], 0 }
   0x5   :  { %18 = vsyncpa [#allocation9], 0 }
   0x6   :  { %19 = vsyncpa [#allocation12], 0 }
   0x7   :  { %20 = vsyncpa [#allocation15], 0  ;;  %s7437_s11 = smov [#allocation5]  }
   0x8   :  { %s36_s12 = sshll.u32 %s7437_s11, 4  ;;  %s37_s12 = int_to_ptr.vmem [resolvable:$true] %s36_s12 }
   0x9   :  { %s7275_s13 = scalar_lea.vmem %s37_s12, 57344  ;;  %p7280_p1 = scmp.lt.s32.totalorder %s37_s12, %s37_s12 }
   0xa   :  { %p7276_p0 = scmp.ne.s32.totalorder %s37_s12, %s7275_s13  ;;  %p7281_p2 = scmp.lt.s32.totalorder %s7275_s13, %s7275_s13 }
   0xc   :  { %p7282_p3 = por %p7281_p2, %p7280_p1 }
   0xe   :  { %p7283_p4 = pnand %p7282_p3, %p7276_p0 }
  0x10   :  { %7286 = shalt.err (!%p7283_p4)
}
  0x11   :  { %s7438_s14 = smov 512   ;;  %s7439_s15 = smov 32  }
  0x12   :  { %42 = dma.hbm_to_vmem [thread:$0]  %s7747_s1, 57344, %s37_s12, [#allocation6], %s7438_s14, %s7438_s14, %s7439_s15  }
  0x13   :  { %s7440_s17 = smov [#allocation8]  }
  0x14   :  { %s58_s18 = sshll.u32 %s7440_s17, 4  ;;  %s59_s18 = int_to_ptr.vmem [resolvable:$true] %s58_s18 }
  0x15   :  { %s7295_s19 = scalar_lea.vmem %s59_s18, 32768  ;;  %p7300_p6 = scmp.lt.s32.totalorder %s59_s18, %s59_s18 }
  0x16   :  { %p7296_p5 = scmp.ne.s32.totalorder %s59_s18, %s7295_s19  ;;  %p7301_p7 = scmp.lt.s32.totalorder %s7295_s19, %s7295_s19 }
  0x18   :  { %p7302_p8 = por %p7301_p7, %p7300_p6 }
  0x1a   :  { %p7303_p9 = pnand %p7302_p8, %p7296_p5 }
  0x1c   :  { %7306 = shalt.err (!%p7303_p9)
}
  0x1d   :  { %s7441_s20 = smov 256   ;;  %s7442_s21 = smov 16  }
  0x1e   :  { %64 = dma.hbm_to_vmem [thread:$0]  %s7749_s3, 32768, %s59_s18, [#allocation9], %s7441_s20, %s7441_s20, %s7442_s21  }
  0x1f   :  { %s7443_s24 = smov [#allocation11]  }
  0x20   :  { %s80_s25 = sshll.u32 %s7443_s24, 4  ;;  %s81_s25 = int_to_ptr.vmem [resolvable:$true] %s80_s25 }
  0x21   :  { %s7315_s1 = scalar_lea.vmem %s81_s25, 8192  ;;  %p7320_p11 = scmp.lt.s32.totalorder %s81_s25, %s81_s25 }
  0x22   :  { %p7316_p10 = scmp.ne.s32.totalorder %s81_s25, %s7315_s1  ;;  %p7321_p12 = scmp.lt.s32.totalorder %s7315_s1, %s7315_s1 }
  0x24   :  { %p7322_p13 = por %p7321_p12, %p7320_p11 }
  0x26   :  { %p7323_p0 = pnand %p7322_p13, %p7316_p10 }
  0x28   :  { %7326 = shalt.err (!%p7323_p0)
}
  0x29   :  { %s7444_s26 = smov 128   ;;  %s7445_s27 = smov 8  }
  0x2a   :  { %86 = dma.hbm_to_vmem [thread:$0]  %s7751_s5, 8192, %s81_s25, [#allocation12], %s7444_s26, %s7444_s26, %s7445_s27  }
  0x2b   :  { %s7446_s30 = smov [#allocation3]   ;;  %s7447_s3 = smov [#allocation7]  }
  0x2c   :  { %s27_s10 = sshll.u32 %s7446_s30, 4  ;;  %s49_s11 = sshll.u32 %s7447_s3, 4  ;;  %s28_s10 = int_to_ptr.vmem [resolvable:$true] %s27_s10  ;;  %s50_s11 = int_to_ptr.vmem [resolvable:$true] %s49_s11 }
  0x2d   :  { %s7335_s12 = scalar_lea.vmem %s28_s10, 448  ;;  %p7340_p2 = scmp.lt.s32.totalorder %s28_s10, %s28_s10 }
  0x2e   :  { %p7336_p1 = scmp.ne.s32.totalorder %s28_s10, %s7335_s12  ;;  %p7341_p3 = scmp.lt.s32.totalorder %s7335_s12, %s7335_s12 }
  0x30   :  { %p7342_p4 = por %p7341_p3, %p7340_p2 }
  0x32   :  { %p7343_p5 = pnand %p7342_p4, %p7336_p1 }
  0x34   :  { %7346 = shalt.err (!%p7343_p5)
}
  0x35   :  { %30 = dma.hbm_to_vmem [thread:$0]  %s7746_s0, 448, %s28_s10, [#allocation4]  }
  0x36   :  { %s7355_s15 = scalar_lea.vmem %s50_s11, 128  ;;  %p7360_p7 = scmp.lt.s32.totalorder %s50_s11, %s50_s11 }
  0x37   :  { %p7356_p6 = scmp.ne.s32.totalorder %s50_s11, %s7355_s15  ;;  %p7361_p8 = scmp.lt.s32.totalorder %s7355_s15, %s7355_s15 }
  0x39   :  { %p7362_p9 = por %p7361_p8, %p7360_p7 }
  0x3b   :  { %p7363_p10 = pnand %p7362_p9, %p7356_p6 }
  0x3d   :  { %7366 = shalt.err (!%p7363_p10)
}
  0x3e   :  { %52 = dma.hbm_to_vmem [thread:$0]  %s7748_s2, 128, %s50_s11, [#allocation6]  }
  0x3f   :  { %s7448_s8 = smov [#allocation10]   ;;  %s7449_s18 = smov [#allocation13]  }
  0x40   :  { %s71_s17 = sshll.u32 %s7448_s8, 4  ;;  %s93_s19 = sshll.u32 %s7449_s18, 4  ;;  %s72_s17 = int_to_ptr.vmem [resolvable:$true] %s71_s17  ;;  %s94_s19 = int_to_ptr.vmem [resolvable:$true] %s93_s19 }
  0x41   :  { %s7375_s20 = scalar_lea.vmem %s72_s17, 64  ;;  %p7380_p12 = scmp.lt.s32.totalorder %s72_s17, %s72_s17 }
  0x42   :  { %p7376_p11 = scmp.ne.s32.totalorder %s72_s17, %s7375_s20  ;;  %p7381_p13 = scmp.lt.s32.totalorder %s7375_s20, %s7375_s20 }
  0x44   :  { %p7382_p0 = por %p7381_p13, %p7380_p12 }
  0x46   :  { %p7383_p1 = pnand %p7382_p0, %p7376_p11 }
  0x48   :  { %7386 = shalt.err (!%p7383_p1)
}
  0x49   :  { %74 = dma.hbm_to_vmem [thread:$0]  %s7750_s4, 64, %s72_s17, [#allocation9]  }
  0x4a   :  { %s7395_s22 = scalar_lea.vmem %s94_s19, 32  ;;  %p7400_p3 = scmp.lt.s32.totalorder %s94_s19, %s94_s19 }
  0x4b   :  { %p7396_p2 = scmp.ne.s32.totalorder %s94_s19, %s7395_s22  ;;  %p7401_p4 = scmp.lt.s32.totalorder %s7395_s22, %s7395_s22 }
  0x4d   :  { %p7402_p5 = por %p7401_p4, %p7400_p3 }
  0x4f   :  { %p7403_p6 = pnand %p7402_p5, %p7396_p2 }
  0x51   :  { %7406 = shalt.err (!%p7403_p6)
}
  0x52   :  { %96 = dma.hbm_to_vmem [thread:$0]  %s7752_s6, 32, %s94_s19, [#allocation12]  }
  0x53   :  { %s7450_s24 = smov [#allocation14]  }
  0x54   :  { %s103_s25 = sshll.u32 %s7450_s24, 4  ;;  %s104_s25 = int_to_ptr.vmem [resolvable:$true] %s103_s25 }
  0x55   :  { %s7415_s1 = scalar_lea.vmem %s104_s25, 32  ;;  %p7420_p8 = scmp.lt.s32.totalorder %s104_s25, %s104_s25 }
  0x56   :  { %p7416_p7 = scmp.ne.s32.totalorder %s104_s25, %s7415_s1  ;;  %p7421_p9 = scmp.lt.s32.totalorder %s7415_s1, %s7415_s1 }
  0x58   :  { %p7422_p10 = por %p7421_p9, %p7420_p8 }
  0x5a   :  { %p7423_p11 = pnand %p7422_p10, %p7416_p7 }
  0x5c   :  { %7426 = shalt.err (!%p7423_p11)
}
  0x5d   :  { %106 = dma.hbm_to_vmem [thread:$0]  %s7753_s7, 32, %s104_s25, [#allocation15]  }
  0x5e   :  { %7427 = dma.done.wait [#allocation4], 448  }
  0x5f   :  { %7428 = vsyncadd [#allocation4], 4294966848 }
  0x60   :  { %7429 = dma.done.wait [#allocation6], 57472  }
  0x61   :  { %7430 = vsyncadd [#allocation6], 4294909824 }
  0x62   :  { %7431 = dma.done.wait [#allocation9], 32832  }
  0x63   :  { %7432 = vsyncadd [#allocation9], 4294934464 }
  0x64   :  { %7433 = dma.done.wait [#allocation12], 8224  }
  0x65   :  { %7434 = vsyncadd [#allocation12], 4294959072 }
  0x66   :  { %7435 = dma.done.wait [#allocation15], 32  }
  0x67   :  { %7436 = vsyncadd [#allocation15], 4294967264  ;;  %v194_v1 = vld [vmem:[#allocation5 + $0x1c0] sm:$0xff]  ;;  %v7531_v55 = vld [vmem:[#allocation3 + $0x8] sm:$0xff]  ;;  %vm5970_vm0 = vcmask 7168  }
  0x68   :  { %v198_v2 = vld [vmem:[#allocation5 + $0x1e0] sm:$0xff]  ;;  %v7539_v60 = vcombine.high %v7531_v55, %v7531_v55 }
  0x69   :  { %v322_v3 = vld [vmem:[#allocation5 + $0x5c0] sm:$0xff]  ;;  %v6045_v4 = vcombine.high %v194_v1, %v198_v2  ;;  %v6044_v6 = vcombine.low %v194_v1, %v198_v2 }
  0x6a   :  { %v326_v5 = vld [vmem:[#allocation5 + $0x5e0] sm:$0xff]  ;;  %2966 = vmatprep.mubr.bf16.mxu1 %v7539_v60 }
  0x6b   :  { %v186_v7 = vld [vmem:[#allocation5 + $0x180] sm:$0xff]  ;;  %v6173_v9 = vcombine.high %v322_v3, %v326_v5  ;;  %v6172_v10 = vcombine.low %v322_v3, %v326_v5  ;;  %2893 = vmatprep.subr.bf16.mxu0 %v6045_v4 }
  0x6c   :  { %v190_v8 = vld [vmem:[#allocation5 + $0x1a0] sm:$0xff]  ;;  %2894 = vmatpush1.bf16.msra.mxu0 %v6044_v6 }
  0x6d   :  { %v6037_v11 = vcombine.high %v186_v7, %v190_v8  ;;  %v314_v12 = vld [vmem:[#allocation5 + $0x580] sm:$0xff]  ;;  %2934 = vmatprep.subr.bf16.mxu1 %v6173_v9  ;;  %v6036_v19 = vcombine.low %v186_v7, %v190_v8 }
  0x6e   :  { %v318_v13 = vld [vmem:[#allocation5 + $0x5a0] sm:$0xff]  ;;  %2935 = vmatpush1.bf16.msra.mxu1 %v6172_v10 }
  0x6f   :  { %v178_v14 = vld [vmem:[#allocation5 + $0x140] sm:$0xff]  ;;  %v6165_v15 = vcombine.high %v314_v12, %v318_v13  ;;  %2895 = vmatprep.subr.bf16.mxu0 %v6037_v11  ;;  %v6164_v20 = vcombine.low %v314_v12, %v318_v13 }
  0x70   :  { %v182_v16 = vld [vmem:[#allocation5 + $0x160] sm:$0xff]  ;;  %2896 = vmatpush1.bf16.msra.mxu0 %v6036_v19 }
  0x71   :  { %v306_v17 = vld [vmem:[#allocation5 + $0x540] sm:$0xff]  ;;  %v6029_v21 = vcombine.high %v178_v14, %v182_v16  ;;  %2936 = vmatprep.subr.bf16.mxu1 %v6165_v15  ;;  %v6028_v27 = vcombine.low %v178_v14, %v182_v16 }
  0x72   :  { %v310_v18 = vld [vmem:[#allocation5 + $0x560] sm:$0xff]  ;;  %2937 = vmatpush1.bf16.msra.mxu1 %v6164_v20 }
  0x73   :  { %v6157_v22 = vcombine.high %v306_v17, %v310_v18  ;;  %v170_v23 = vld [vmem:[#allocation5 + $0x100] sm:$0xff]  ;;  %2897 = vmatprep.subr.bf16.mxu0 %v6029_v21  ;;  %v6156_v28 = vcombine.low %v306_v17, %v310_v18 }
  0x74   :  { %v174_v24 = vld [vmem:[#allocation5 + $0x120] sm:$0xff]  ;;  %2898 = vmatpush1.bf16.msra.mxu0 %v6028_v27 }
  0x75   :  { %v298_v25 = vld [vmem:[#allocation5 + $0x500] sm:$0xff]  ;;  %v6021_v29 = vcombine.high %v170_v23, %v174_v24  ;;  %2938 = vmatprep.subr.bf16.mxu1 %v6157_v22  ;;  %v6020_v35 = vcombine.low %v170_v23, %v174_v24 }
  0x76   :  { %v302_v26 = vld [vmem:[#allocation5 + $0x520] sm:$0xff]  ;;  %2939 = vmatpush1.bf16.msra.mxu1 %v6156_v28 }
  0x77   :  { %v6149_v30 = vcombine.high %v298_v25, %v302_v26  ;;  %v162_v31 = vld [vmem:[#allocation5 + $0xc0] sm:$0xff]  ;;  %2899 = vmatprep.subr.bf16.mxu0 %v6021_v29  ;;  %v6148_v36 = vcombine.low %v298_v25, %v302_v26 }
  0x78   :  { %v166_v32 = vld [vmem:[#allocation5 + $0xe0] sm:$0xff]  ;;  %2900 = vmatpush1.bf16.msra.mxu0 %v6020_v35 }
  0x79   :  { %v290_v33 = vld [vmem:[#allocation5 + $0x4c0] sm:$0xff]  ;;  %v6013_v37 = vcombine.high %v162_v31, %v166_v32  ;;  %2940 = vmatprep.subr.bf16.mxu1 %v6149_v30  ;;  %v6012_v43 = vcombine.low %v162_v31, %v166_v32 }
  0x7a   :  { %v294_v34 = vld [vmem:[#allocation5 + $0x4e0] sm:$0xff]  ;;  %2941 = vmatpush1.bf16.msra.mxu1 %v6148_v36 }
  0x7b   :  { %v6141_v38 = vcombine.high %v290_v33, %v294_v34  ;;  %v154_v39 = vld [vmem:[#allocation5 + $0x80] sm:$0xff]  ;;  %2901 = vmatprep.subr.bf16.mxu0 %v6013_v37  ;;  %v6140_v44 = vcombine.low %v290_v33, %v294_v34 }
  0x7c   :  { %v158_v40 = vld [vmem:[#allocation5 + $0xa0] sm:$0xff]  ;;  %2902 = vmatpush1.bf16.msra.mxu0 %v6012_v43 }
  0x7d   :  { %v282_v41 = vld [vmem:[#allocation5 + $0x480] sm:$0xff]  ;;  %v6005_v45 = vcombine.high %v154_v39, %v158_v40  ;;  %2942 = vmatprep.subr.bf16.mxu1 %v6141_v38  ;;  %v6004_v51 = vcombine.low %v154_v39, %v158_v40 }
  0x7e   :  { %v286_v42 = vld [vmem:[#allocation5 + $0x4a0] sm:$0xff]  ;;  %2943 = vmatpush1.bf16.msra.mxu1 %v6140_v44 }
  0x7f   :  { %v6133_v46 = vcombine.high %v282_v41, %v286_v42  ;;  %v146_v47 = vld [vmem:[#allocation5 + $0x40] sm:$0xff]  ;;  %2903 = vmatprep.subr.bf16.mxu0 %v6005_v45  ;;  %v6132_v52 = vcombine.low %v282_v41, %v286_v42 }
  0x80   :  { %v150_v48 = vld [vmem:[#allocation5 + $0x60] sm:$0xff]  ;;  %2904 = vmatpush1.bf16.msra.mxu0 %v6004_v51 }
  0x81   :  { %v274_v49 = vld [vmem:[#allocation5 + $0x440] sm:$0xff]  ;;  %v5997_v53 = vcombine.high %v146_v47, %v150_v48  ;;  %2944 = vmatprep.subr.bf16.mxu1 %v6133_v46  ;;  %v5996_v63 = vcombine.low %v146_v47, %v150_v48 }
  0x82   :  { %v278_v50 = vld [vmem:[#allocation5 + $0x460] sm:$0xff]  ;;  %2945 = vmatpush1.bf16.msra.mxu1 %v6132_v52 }
  0x83   :  { %v7529_v54 = vld [vmem:[#allocation3] sm:$0xff]  ;;  %v6125_v56 = vcombine.high %v274_v49, %v278_v50  ;;  %2905 = vmatprep.subr.bf16.mxu0 %v5997_v53  ;;  %v6124_v0 = vcombine.low %v274_v49, %v278_v50 }
  0x84   :  { %v138_v57 = vld [vmem:[#allocation5] sm:$0xff]  ;;  %v7535_v59 = vcombine.high %v7529_v54, %v7529_v54  ;;  %2906 = vmatpush1.bf16.msra.mxu0 %v5996_v63 }
  0x85   :  { %v142_v58 = vld [vmem:[#allocation5 + $0x20] sm:$0xff]  ;;  %2946 = vmatprep.subr.bf16.mxu1 %v6125_v56 }
  0x86   :  { %v266_v61 = vld [vmem:[#allocation5 + $0x400] sm:$0xff]  ;;  %2925 = vmatprep.mubr.bf16.mxu0 %v7535_v59  ;;  %v5989_v1 = vcombine.high %v138_v57, %v142_v58  ;;  %v5988_v7 = vcombine.low %v138_v57, %v142_v58  ;;  %2947 = vmatpush1.bf16.msra.mxu1 %v6124_v0 }
  0x87   :  { %v270_v62 = vld [vmem:[#allocation5 + $0x420] sm:$0xff] }
  0x88   :  { %v6117_v2 = vcombine.high %v266_v61, %v270_v62  ;;  %v258_v3 = vld [vmem:[#allocation5 + $0x3c0] sm:$0xff]  ;;  %2907 = vmatprep.subr.bf16.mxu0 %v5989_v1  ;;  %v6116_v8 = vcombine.low %v266_v61, %v270_v62 }
  0x89   :  { %v262_v4 = vld [vmem:[#allocation5 + $0x3e0] sm:$0xff]  ;;  %2908 = vmatpush1.bf16.msra.mxu0 %v5988_v7 }
  0x8a   :  { %v386_v5 = vld [vmem:[#allocation5 + $0x7c0] sm:$0xff]  ;;  %v6109_v9 = vcombine.high %v258_v3, %v262_v4  ;;  %2948 = vmatprep.subr.bf16.mxu1 %v6117_v2  ;;  %v6108_v15 = vcombine.low %v258_v3, %v262_v4 }
  0x8b   :  { %v390_v6 = vld [vmem:[#allocation5 + $0x7e0] sm:$0xff]  ;;  %2949 = vmatpush1.bf16.msra.mxu1 %v6116_v8 }
  0x8c   :  { %v6237_v10 = vcombine.high %v386_v5, %v390_v6  ;;  %v250_v11 = vld [vmem:[#allocation5 + $0x380] sm:$0xff]  ;;  %2909 = vmatprep.subr.bf16.mxu0 %v6109_v9  ;;  %v6236_v16 = vcombine.low %v386_v5, %v390_v6 }
  0x8d   :  { %v254_v12 = vld [vmem:[#allocation5 + $0x3a0] sm:$0xff]  ;;  %2910 = vmatpush2.bf16.msra.mxu0 %v6108_v15 }
  0x8e   :  { %v378_v13 = vld [vmem:[#allocation5 + $0x780] sm:$0xff]  ;;  %v6101_v17 = vcombine.high %v250_v11, %v254_v12  ;;  %2950 = vmatprep.subr.bf16.mxu1 %v6237_v10  ;;  %v6100_v23 = vcombine.low %v250_v11, %v254_v12 }
  0x8f   :  { %v382_v14 = vld [vmem:[#allocation5 + $0x7a0] sm:$0xff]  ;;  %2951 = vmatpush2.bf16.msra.mxu1 %v6236_v16 }
  0x90   :  { %v6229_v18 = vcombine.high %v378_v13, %v382_v14  ;;  %v242_v19 = vld [vmem:[#allocation5 + $0x340] sm:$0xff]  ;;  %2911 = vmatprep.subr.bf16.mxu0 %v6101_v17  ;;  %v6228_v24 = vcombine.low %v378_v13, %v382_v14  ;;  %v7545_v17 = vcombine.low %v7529_v54, %v7529_v54 }
  0x91   :  { %v246_v20 = vld [vmem:[#allocation5 + $0x360] sm:$0xff]  ;;  %2912 = vmatpush2.bf16.msra.mxu0 %v6100_v23 }
  0x92   :  { %v370_v21 = vld [vmem:[#allocation5 + $0x740] sm:$0xff]  ;;  %v6093_v25 = vcombine.high %v242_v19, %v246_v20  ;;  %2952 = vmatprep.subr.bf16.mxu1 %v6229_v18  ;;  %v6092_v31 = vcombine.low %v242_v19, %v246_v20  ;;  %v7549_v20 = vcombine.low %v7531_v55, %v7531_v55 }
  0x93   :  { %v374_v22 = vld [vmem:[#allocation5 + $0x760] sm:$0xff]  ;;  %2953 = vmatpush2.bf16.msra.mxu1 %v6228_v24 }
  0x94   :  { %v6221_v26 = vcombine.high %v370_v21, %v374_v22  ;;  %v234_v27 = vld [vmem:[#allocation5 + $0x300] sm:$0xff]  ;;  %2913 = vmatprep.subr.bf16.mxu0 %v6093_v25  ;;  %v6220_v32 = vcombine.low %v370_v21, %v374_v22  ;;  %v7551_v22 = vld [vmem:[#allocation3 + $0x10] sm:$0xff] }
  0x95   :  { %v238_v28 = vld [vmem:[#allocation5 + $0x320] sm:$0xff]  ;;  %2914 = vmatpush2.bf16.msra.mxu0 %v6092_v31 }
  0x96   :  { %v362_v29 = vld [vmem:[#allocation5 + $0x700] sm:$0xff]  ;;  %v6085_v33 = vcombine.high %v234_v27, %v238_v28  ;;  %2954 = vmatprep.subr.bf16.mxu1 %v6221_v26  ;;  %v6084_v39 = vcombine.low %v234_v27, %v238_v28 }
  0x97   :  { %v366_v30 = vld [vmem:[#allocation5 + $0x720] sm:$0xff]  ;;  %2955 = vmatpush2.bf16.msra.mxu1 %v6220_v32 }
  0x98   :  { %v6213_v34 = vcombine.high %v362_v29, %v366_v30  ;;  %v226_v35 = vld [vmem:[#allocation5 + $0x2c0] sm:$0xff]  ;;  %2915 = vmatprep.subr.bf16.mxu0 %v6085_v33  ;;  %v6212_v40 = vcombine.low %v362_v29, %v366_v30  ;;  %v7556_v29 = vcombine.high %v7551_v22, %v7551_v22 }
  0x99   :  { %v230_v36 = vld [vmem:[#allocation5 + $0x2e0] sm:$0xff]  ;;  %2916 = vmatpush2.bf16.msra.mxu0 %v6084_v39 }
  0x9a   :  { %v354_v37 = vld [vmem:[#allocation5 + $0x6c0] sm:$0xff]  ;;  %v6077_v41 = vcombine.high %v226_v35, %v230_v36  ;;  %2956 = vmatprep.subr.bf16.mxu1 %v6213_v34  ;;  %v6076_v47 = vcombine.low %v226_v35, %v230_v36 }
  0x9b   :  { %v358_v38 = vld [vmem:[#allocation5 + $0x6e0] sm:$0xff]  ;;  %2957 = vmatpush2.bf16.msra.mxu1 %v6212_v40 }
  0x9c   :  { %v6205_v42 = vcombine.high %v354_v37, %v358_v38  ;;  %v218_v43 = vld [vmem:[#allocation5 + $0x280] sm:$0xff]  ;;  %2917 = vmatprep.subr.bf16.mxu0 %v6077_v41  ;;  %v6204_v48 = vcombine.low %v354_v37, %v358_v38  ;;  %v7451_v37 = vmov 0  }
  0x9d   :  { %v222_v44 = vld [vmem:[#allocation5 + $0x2a0] sm:$0xff]  ;;  %2918 = vmatpush2.bf16.msra.mxu0 %v6076_v47 }
  0x9e   :  { %v346_v45 = vld [vmem:[#allocation5 + $0x680] sm:$0xff]  ;;  %v6069_v49 = vcombine.high %v218_v43, %v222_v44  ;;  %2958 = vmatprep.subr.bf16.mxu1 %v6205_v42  ;;  %v6068_v57 = vcombine.low %v218_v43, %v222_v44 }
  0x9f   :  { %v350_v46 = vld [vmem:[#allocation5 + $0x6a0] sm:$0xff]  ;;  %2959 = vmatpush2.bf16.msra.mxu1 %v6204_v48 }
  0xa0   :  { %v6197_v50 = vcombine.high %v346_v45, %v350_v46  ;;  %v210_v51 = vld [vmem:[#allocation5 + $0x240] sm:$0xff]  ;;  %2919 = vmatprep.subr.bf16.mxu0 %v6069_v49  ;;  %v6196_v58 = vcombine.low %v346_v45, %v350_v46 }
  0xa1   :  { %v214_v52 = vld [vmem:[#allocation5 + $0x260] sm:$0xff]  ;;  %2920 = vmatpush2.bf16.msra.mxu0 %v6068_v57 }
  0xa2   :  { %v338_v53 = vld [vmem:[#allocation5 + $0x640] sm:$0xff]  ;;  %v6061_v61 = vcombine.high %v210_v51, %v214_v52  ;;  %2960 = vmatprep.subr.bf16.mxu1 %v6197_v50  ;;  %v6060_v3 = vcombine.low %v210_v51, %v214_v52 }
  0xa3   :  { %v342_v56 = vld [vmem:[#allocation5 + $0x660] sm:$0xff]  ;;  %2961 = vmatpush2.bf16.msra.mxu1 %v6196_v58 }
  0xa4   :  { %v6189_v62 = vcombine.high %v338_v53, %v342_v56  ;;  %v202_v63 = vld [vmem:[#allocation5 + $0x200] sm:$0xff]  ;;  %2921 = vmatprep.subr.bf16.mxu0 %v6061_v61  ;;  %v6188_v4 = vcombine.low %v338_v53, %v342_v56 }
  0xa5   :  { %v206_v0 = vld [vmem:[#allocation5 + $0x220] sm:$0xff]  ;;  %2922 = vmatpush2.bf16.msra.mxu0 %v6060_v3 }
  0xa6   :  { %v330_v1 = vld [vmem:[#allocation5 + $0x600] sm:$0xff]  ;;  %v6053_v5 = vcombine.high %v202_v63, %v206_v0  ;;  %2962 = vmatprep.subr.bf16.mxu1 %v6189_v62  ;;  %v6052_v11 = vcombine.low %v202_v63, %v206_v0 }
  0xa7   :  { %v334_v2 = vld [vmem:[#allocation5 + $0x620] sm:$0xff]  ;;  %2963 = vmatpush2.bf16.msra.mxu1 %v6188_v4 }
  0xa8   :  { %v6181_v6 = vcombine.high %v330_v1, %v334_v2  ;;  %v450_v7 = vld [vmem:[#allocation5 + $0x9c0] sm:$0xff]  ;;  %2923 = vmatprep.subr.bf16.mxu0 %v6053_v5  ;;  %v6180_v12 = vcombine.low %v330_v1, %v334_v2 }
  0xa9   :  { %v454_v8 = vld [vmem:[#allocation5 + $0x9e0] sm:$0xff]  ;;  %2924 = vmatpush2.bf16.msra.mxu0 %v6052_v11 }
  0xaa   :  { %v578_v9 = vld [vmem:[#allocation5 + $0xdc0] sm:$0xff]  ;;  %v6301_v13 = vcombine.high %v450_v7, %v454_v8  ;;  %2964 = vmatprep.subr.bf16.mxu1 %v6181_v6  ;;  %v6300_v21 = vcombine.low %v450_v7, %v454_v8 }
  0xab   :  { %v582_v10 = vld [vmem:[#allocation5 + $0xde0] sm:$0xff]  ;;  %2965 = vmatpush2.bf16.msra.mxu1 %v6180_v12 }
  0xac   :  { %v6429_v14 = vcombine.high %v578_v9, %v582_v10  ;;  %v442_v15 = vld [vmem:[#allocation5 + $0x980] sm:$0xff]  ;;  %2975 = vmatprep.subr.bf16.mxu0 %v6301_v13  ;;  %v6428_v23 = vcombine.low %v578_v9, %v582_v10  ;;  %2926 = vmatmul.mubr.bf16.vlgmr.msra.gmra.mxu0 %v7545_v17 }
  0xad   :  { %v446_v16 = vld [vmem:[#allocation5 + $0x9a0] sm:$0xff]  ;;  %2976 = vmatpush1.bf16.msra.mxu0 %v6300_v21  ;;  %3007 = vmatprep.mubr.bf16.mxu0 %v7556_v29 }
  0xae   :  { %v570_v18 = vld [vmem:[#allocation5 + $0xd80] sm:$0xff]  ;;  %v6293_v24 = vcombine.high %v442_v15, %v446_v16  ;;  %3016 = vmatprep.subr.bf16.mxu1 %v6429_v14  ;;  %2967 = vmatmul.mubr.bf16.vlgmr.msra.gmra.mxu1 %v7549_v20  ;;  %v6292_v55 = vcombine.low %v442_v15, %v446_v16  ;;  %v195_v15 = vld [vmem:[#allocation5 + $0x1c8] sm:$0xff] }
  0xaf   :  { %v574_v19 = vld [vmem:[#allocation5 + $0xda0] sm:$0xff]  ;;  %3017 = vmatpush1.bf16.msra.mxu1 %v6428_v23  ;;  %3048 = vmatprep.mubr.bf16.mxu1 %v7451_v37 }
  0xb0   :  { %v434_v25 = vld [vmem:[#allocation5 + $0x940] sm:$0xff]  ;;  %v6421_v26 = vcombine.high %v570_v18, %v574_v19  ;;  %2977 = vmatprep.subr.bf16.mxu0 %v6293_v24  ;;  %v6420_v30 = vcombine.low %v570_v18, %v574_v19  ;;  %v199_v18 = vld [vmem:[#allocation5 + $0x1e8] sm:$0xff] }
  0xb1   :  { %v438_v27 = vld [vmem:[#allocation5 + $0x960] sm:$0xff]  ;;  %2978 = vmatpush1.bf16.msra.mxu0 %v6292_v55 }
  0xb2   :  { %v562_v54 = vld [vmem:[#allocation5 + $0xd40] sm:$0xff]  ;;  %v6285_v31 = vcombine.high %v434_v25, %v438_v27  ;;  %3018 = vmatprep.subr.bf16.mxu1 %v6421_v26  ;;  %v6284_v38 = vcombine.low %v434_v25, %v438_v27  ;;  %v187_v26 = vld [vmem:[#allocation5 + $0x188] sm:$0xff]  ;;  %v6777_v27 = vld [vmem:[#allocation3 + $0x18] ss:$0 sps:$4 sm:$0xff]  }
  0xb3   :  { %v566_v28 = vld [vmem:[#allocation5 + $0xd60] sm:$0xff]  ;;  %3019 = vmatpush1.bf16.msra.mxu1 %v6420_v30  ;;  %v6046_v30 = vcombine.low %v195_v15, %v199_v18 }
  0xb4   :  { %v426_v32 = vld [vmem:[#allocation5 + $0x900] sm:$0xff]  ;;  %v6413_v35 = vcombine.high %v562_v54, %v566_v28  ;;  %2979 = vmatprep.subr.bf16.mxu0 %v6285_v31  ;;  %v6412_v39 = vcombine.low %v562_v54, %v566_v28  ;;  %v6047_v54 = vcombine.high %v195_v15, %v199_v18  ;;  %v191_v28 = vld [vmem:[#allocation5 + $0x1a8] sm:$0xff] }
  0xb5   :  { %v430_v33 = vld [vmem:[#allocation5 + $0x920] sm:$0xff]  ;;  %2980 = vmatpush1.bf16.msra.mxu0 %v6284_v38  ;;  %v139_v15 = vld [vmem:[#allocation5 + $0x8] sm:$0xff] }
  0xb6   :  { %v554_v34 = vld [vmem:[#allocation5 + $0xd00] sm:$0xff]  ;;  %v6277_v40 = vcombine.high %v426_v32, %v430_v33  ;;  %3020 = vmatprep.subr.bf16.mxu1 %v6413_v35  ;;  %v6276_v46 = vcombine.low %v426_v32, %v430_v33  ;;  %v6039_v35 = vcombine.high %v187_v26, %v191_v28  ;;  %v143_v18 = vld [vmem:[#allocation5 + $0x28] sm:$0xff] }
  0xb7   :  { %v558_v36 = vld [vmem:[#allocation5 + $0xd20] sm:$0xff]  ;;  %3021 = vmatpush1.bf16.msra.mxu1 %v6412_v39  ;;  %v6038_v39 = vcombine.low %v187_v26, %v191_v28  ;;  %v323_v26 = vld [vmem:[#allocation5 + $0x5c8] sm:$0xff] }
  0xb8   :  { %v418_v41 = vld [vmem:[#allocation5 + $0x8c0] sm:$0xff]  ;;  %v6405_v44 = vcombine.high %v554_v34, %v558_v36  ;;  %2981 = vmatprep.subr.bf16.mxu0 %v6277_v40  ;;  %v6404_v47 = vcombine.low %v554_v34, %v558_v36  ;;  %v179_v34 = vld [vmem:[#allocation5 + $0x148] sm:$0xff] }
  0xb9   :  { %v422_v42 = vld [vmem:[#allocation5 + $0x8e0] sm:$0xff]  ;;  %2982 = vmatpush1.bf16.msra.mxu0 %v6276_v46  ;;  %v183_v36 = vld [vmem:[#allocation5 + $0x168] sm:$0xff] }
  0xba   :  { %v546_v43 = vld [vmem:[#allocation5 + $0xcc0] sm:$0xff]  ;;  %v6269_v48 = vcombine.high %v418_v41, %v422_v42  ;;  %3022 = vmatprep.subr.bf16.mxu1 %v6405_v44  ;;  %v6268_v56 = vcombine.low %v418_v41, %v422_v42  ;;  %v6031_v44 = vcombine.high %v179_v34, %v183_v36 }
  0xbb   :  { %v550_v45 = vld [vmem:[#allocation5 + $0xce0] sm:$0xff]  ;;  %3023 = vmatpush1.bf16.msra.mxu1 %v6404_v47  ;;  %v6030_v47 = vcombine.low %v179_v34, %v183_v36  ;;  %v7564_v36 = vcombine.low %v7551_v22, %v7551_v22 }
  0xbc   :  { %v410_v49 = vld [vmem:[#allocation5 + $0x880] sm:$0xff]  ;;  %v6397_v52 = vcombine.high %v546_v43, %v550_v45  ;;  %2983 = vmatprep.subr.bf16.mxu0 %v6269_v48  ;;  %v6396_v57 = vcombine.low %v546_v43, %v550_v45  ;;  %v171_v43 = vld [vmem:[#allocation5 + $0x108] sm:$0xff] }
  0xbd   :  { %v414_v50 = vld [vmem:[#allocation5 + $0x8a0] sm:$0xff]  ;;  %2984 = vmatpush1.bf16.msra.mxu0 %v6268_v56  ;;  %v175_v45 = vld [vmem:[#allocation5 + $0x128] sm:$0xff] }
  0xbe   :  { %v538_v51 = vld [vmem:[#allocation5 + $0xc80] sm:$0xff]  ;;  %v6261_v58 = vcombine.high %v410_v49, %v414_v50  ;;  %3024 = vmatprep.subr.bf16.mxu1 %v6397_v52  ;;  %v6260_v2 = vcombine.low %v410_v49, %v414_v50  ;;  %v6023_v52 = vcombine.high %v171_v43, %v175_v45 }
  0xbf   :  { %v542_v53 = vld [vmem:[#allocation5 + $0xca0] sm:$0xff]  ;;  %3025 = vmatpush1.bf16.msra.mxu1 %v6396_v57  ;;  %v6022_v57 = vcombine.low %v171_v43, %v175_v45  ;;  %v311_v45 = vld [vmem:[#allocation5 + $0x568] sm:$0xff] }
  0xc0   :  { %v402_v61 = vld [vmem:[#allocation5 + $0x840] sm:$0xff]  ;;  %v6389_v0 = vcombine.high %v538_v51, %v542_v53  ;;  %2985 = vmatprep.subr.bf16.mxu0 %v6261_v58  ;;  %v6388_v3 = vcombine.low %v538_v51, %v542_v53  ;;  %v163_v51 = vld [vmem:[#allocation5 + $0xc8] sm:$0xff] }
  0xc1   :  { %v406_v62 = vld [vmem:[#allocation5 + $0x860] sm:$0xff]  ;;  %2986 = vmatpush1.bf16.msra.mxu0 %v6260_v2  ;;  %v167_v53 = vld [vmem:[#allocation5 + $0xe8] sm:$0xff] }
  0xc2   :  { %v530_v63 = vld [vmem:[#allocation5 + $0xc40] sm:$0xff]  ;;  %v6253_v4 = vcombine.high %v402_v61, %v406_v62  ;;  %3026 = vmatprep.subr.bf16.mxu1 %v6389_v0  ;;  %v6252_v10 = vcombine.low %v402_v61, %v406_v62  ;;  %v6015_v0 = vcombine.high %v163_v51, %v167_v53 }
  0xc3   :  { %v534_v1 = vld [vmem:[#allocation5 + $0xc60] sm:$0xff]  ;;  %3027 = vmatpush1.bf16.msra.mxu1 %v6388_v3  ;;  %v6014_v3 = vcombine.low %v163_v51, %v167_v53 }
  0xc4   :  { %v394_v5 = vld [vmem:[#allocation5 + $0x800] sm:$0xff]  ;;  %v6381_v8 = vcombine.high %v530_v63, %v534_v1  ;;  %2987 = vmatprep.subr.bf16.mxu0 %v6253_v4  ;;  %v6380_v11 = vcombine.low %v530_v63, %v534_v1  ;;  %v155_v63 = vld [vmem:[#allocation5 + $0x88] sm:$0xff] }
  0xc5   :  { %v398_v6 = vld [vmem:[#allocation5 + $0x820] sm:$0xff]  ;;  %2988 = vmatpush1.bf16.msra.mxu0 %v6252_v10  ;;  %v159_v1 = vld [vmem:[#allocation5 + $0xa8] sm:$0xff] }
  0xc6   :  { %v522_v7 = vld [vmem:[#allocation5 + $0xc00] sm:$0xff]  ;;  %v6245_v12 = vcombine.high %v394_v5, %v398_v6  ;;  %3028 = vmatprep.subr.bf16.mxu1 %v6381_v8  ;;  %v6244_v19 = vcombine.low %v394_v5, %v398_v6  ;;  %v6007_v8 = vcombine.high %v155_v63, %v159_v1 }
  0xc7   :  { %v526_v9 = vld [vmem:[#allocation5 + $0xc20] sm:$0xff]  ;;  %3029 = vmatpush1.bf16.msra.mxu1 %v6380_v11  ;;  %v6006_v11 = vcombine.low %v155_v63, %v159_v1 }
  0xc8   :  { %v514_v13 = vld [vmem:[#allocation5 + $0xbc0] sm:$0xff]  ;;  %v6373_v16 = vcombine.high %v522_v7, %v526_v9  ;;  %2989 = vmatprep.subr.bf16.mxu0 %v6245_v12  ;;  %v6372_v21 = vcombine.low %v522_v7, %v526_v9  ;;  %v147_v7 = vld [vmem:[#allocation5 + $0x48] sm:$0xff] }
  0xc9   :  { %v518_v14 = vld [vmem:[#allocation5 + $0xbe0] sm:$0xff]  ;;  %2990 = vmatpush1.bf16.msra.mxu0 %v6244_v19  ;;  %v151_v9 = vld [vmem:[#allocation5 + $0x68] sm:$0xff] }
  0xca   :  { %v6365_v23 = vcombine.high %v514_v13, %v518_v14  ;;  %v506_v24 = vld [vmem:[#allocation5 + $0xb80] sm:$0xff]  ;;  %3030 = vmatprep.subr.bf16.mxu1 %v6373_v16  ;;  %v6364_v55 = vcombine.low %v514_v13, %v518_v14  ;;  %v5999_v16 = vcombine.high %v147_v7, %v151_v9 }
  0xcb   :  { %v510_v25 = vld [vmem:[#allocation5 + $0xba0] sm:$0xff]  ;;  %3031 = vmatpush1.bf16.msra.mxu1 %v6372_v21  ;;  %v5998_v21 = vcombine.low %v147_v7, %v151_v9 }
  0xcc   :  { %2991 = vmatprep.subr.bf16.mxu0 %v6365_v23  ;;  %v6357_v31 = vcombine.high %v506_v24, %v510_v25  ;;  %v498_v32 = vld [vmem:[#allocation5 + $0xb40] sm:$0xff]  ;;  %3057 = vmatprep.subr.bf16.mxu1 %v6047_v54  ;;  %v6356_v38 = vcombine.low %v506_v24, %v510_v25  ;;  %v259_v24 = vld [vmem:[#allocation5 + $0x3c8] sm:$0xff] }
  0xcd   :  { %v502_v33 = vld [vmem:[#allocation5 + $0xb60] sm:$0xff]  ;;  %2992 = vmatpush2.bf16.msra.mxu0 %v6364_v55  ;;  %v263_v25 = vld [vmem:[#allocation5 + $0x3e8] sm:$0xff]  ;;  %v5990_v55 = vcombine.low %v139_v15, %v143_v18 }
  0xce   :  { %3049 = vmatmul.mubr.bf16.vlgmr.msra.gmra.mxu1 %v6777_v27  ;;  %2993 = vmatprep.subr.bf16.mxu0 %v6357_v31  ;;  %v6349_v40 = vcombine.high %v498_v32, %v502_v33  ;;  %v490_v41 = vld [vmem:[#allocation5 + $0xb00] sm:$0xff]  ;;  %v6348_v46 = vcombine.low %v498_v32, %v502_v33  ;;  %v5991_v27 = vcombine.high %v139_v15, %v143_v18  ;;  %v327_v54 = vld [vmem:[#allocation5 + $0x5e8] sm:$0xff] }
  0xcf   :  { %3058 = vmatpush1.bf16.msra.mxu1 %v6046_v30  ;;  %v494_v42 = vld [vmem:[#allocation5 + $0xb20] sm:$0xff]  ;;  %3089 = vmatprep.mubr.bf16.mxu1 %v7535_v59  ;;  %v6175_v30 = vcombine.high %v323_v26, %v327_v54  ;;  %v251_v31 = vld [vmem:[#allocation5 + $0x388] sm:$0xff]  ;;  %v6111_v34 = vcombine.high %v259_v24, %v263_v25 }
  0xd0   :  { %3059 = vmatprep.subr.bf16.mxu1 %v6039_v35  ;;  %v6341_v48 = vcombine.high %v490_v41, %v494_v42  ;;  %v482_v49 = vld [vmem:[#allocation5 + $0xac0] sm:$0xff]  ;;  %v6340_v56 = vcombine.low %v490_v41, %v494_v42  ;;  %v255_v32 = vld [vmem:[#allocation5 + $0x3a8] sm:$0xff] }
  0xd1   :  { %2994 = vmatpush2.bf16.msra.mxu0 %v6356_v38  ;;  %v486_v50 = vld [vmem:[#allocation5 + $0xae0] sm:$0xff]  ;;  %v315_v33 = vld [vmem:[#allocation5 + $0x588] sm:$0xff]  ;;  %v6174_v38 = vcombine.low %v323_v26, %v327_v54  ;;  %v6103_v43 = vcombine.high %v251_v31, %v255_v32  ;;  %v6102_v22 = vcombine.low %v251_v31, %v255_v32 }
  0xd2   :  { %2995 = vmatprep.subr.bf16.mxu0 %v6349_v40  ;;  %v6333_v58 = vcombine.high %v482_v49, %v486_v50  ;;  %v474_v61 = vld [vmem:[#allocation5 + $0xa80] sm:$0xff]  ;;  %v6332_v2 = vcombine.low %v482_v49, %v486_v50  ;;  %v319_v35 = vld [vmem:[#allocation5 + $0x5a8] sm:$0xff] }
  0xd3   :  { %3060 = vmatpush1.bf16.msra.mxu1 %v6038_v39  ;;  %v478_v62 = vld [vmem:[#allocation5 + $0xaa0] sm:$0xff]  ;;  %v6110_v39 = vcombine.low %v259_v24, %v263_v25  ;;  %v6167_v40 = vcombine.high %v315_v33, %v319_v35  ;;  %v243_v41 = vld [vmem:[#allocation5 + $0x348] sm:$0xff] }
  0xd4   :  { %3061 = vmatprep.subr.bf16.mxu1 %v6031_v44  ;;  %v6325_v4 = vcombine.high %v474_v61, %v478_v62  ;;  %v466_v5 = vld [vmem:[#allocation5 + $0xa40] sm:$0xff]  ;;  %v6324_v10 = vcombine.low %v474_v61, %v478_v62  ;;  %v247_v42 = vld [vmem:[#allocation5 + $0x368] sm:$0xff] }
  0xd5   :  { %2996 = vmatpush2.bf16.msra.mxu0 %v6348_v46  ;;  %v470_v6 = vld [vmem:[#allocation5 + $0xa60] sm:$0xff]  ;;  %v307_v44 = vld [vmem:[#allocation5 + $0x548] sm:$0xff]  ;;  %v6166_v46 = vcombine.low %v315_v33, %v319_v35  ;;  %v6095_v51 = vcombine.high %v243_v41, %v247_v42 }
  0xd6   :  { %2997 = vmatprep.subr.bf16.mxu0 %v6341_v48  ;;  %v6317_v12 = vcombine.high %v466_v5, %v470_v6  ;;  %v458_v13 = vld [vmem:[#allocation5 + $0xa00] sm:$0xff]  ;;  %v6316_v19 = vcombine.low %v466_v5, %v470_v6  ;;  %v235_v48 = vld [vmem:[#allocation5 + $0x308] sm:$0xff]  ;;  %v6158_v53 = vcombine.low %v307_v44, %v311_v45 }
  0xd7   :  { %3062 = vmatpush1.bf16.msra.mxu1 %v6030_v47  ;;  %v462_v14 = vld [vmem:[#allocation5 + $0xa20] sm:$0xff]  ;;  %v6159_v47 = vcombine.high %v307_v44, %v311_v45  ;;  %v239_v49 = vld [vmem:[#allocation5 + $0x328] sm:$0xff] }
  0xd8   :  { %3063 = vmatprep.subr.bf16.mxu1 %v6023_v52  ;;  %v6309_v23 = vcombine.high %v458_v13, %v462_v14  ;;  %v6308_v28 = vcombine.low %v458_v13, %v462_v14  ;;  %v299_v50 = vld [vmem:[#allocation5 + $0x508] sm:$0xff]  ;;  %v6087_v63 = vcombine.high %v235_v48, %v239_v49 }
  0xd9   :  { %2998 = vmatpush2.bf16.msra.mxu0 %v6340_v56  ;;  %v303_v52 = vld [vmem:[#allocation5 + $0x528] sm:$0xff]  ;;  %v6094_v56 = vcombine.low %v243_v41, %v247_v42 }
  0xda   :  { %2999 = vmatprep.subr.bf16.mxu0 %v6333_v58  ;;  %v227_v58 = vld [vmem:[#allocation5 + $0x2c8] sm:$0xff]  ;;  %v6150_v1 = vcombine.low %v299_v50, %v303_v52 }
  0xdb   :  { %3064 = vmatpush1.bf16.msra.mxu1 %v6022_v57  ;;  %v6151_v57 = vcombine.high %v299_v50, %v303_v52  ;;  %v231_v61 = vld [vmem:[#allocation5 + $0x2e8] sm:$0xff] }
  0xdc   :  { %3065 = vmatprep.subr.bf16.mxu1 %v6015_v0  ;;  %v291_v62 = vld [vmem:[#allocation5 + $0x4c8] sm:$0xff]  ;;  %v6079_v7 = vcombine.high %v227_v58, %v231_v61 }
  0xdd   :  { %3000 = vmatpush2.bf16.msra.mxu0 %v6332_v2  ;;  %v295_v0 = vld [vmem:[#allocation5 + $0x4e8] sm:$0xff]  ;;  %v6086_v2 = vcombine.low %v235_v48, %v239_v49 }
  0xde   :  { %3001 = vmatprep.subr.bf16.mxu0 %v6325_v4  ;;  %v219_v4 = vld [vmem:[#allocation5 + $0x288] sm:$0xff]  ;;  %v6142_v9 = vcombine.low %v291_v62, %v295_v0 }
  0xdf   :  { %3066 = vmatpush1.bf16.msra.mxu1 %v6014_v3  ;;  %v6143_v3 = vcombine.high %v291_v62, %v295_v0  ;;  %v223_v5 = vld [vmem:[#allocation5 + $0x2a8] sm:$0xff] }
  0xe0   :  { %3067 = vmatprep.subr.bf16.mxu1 %v6007_v8  ;;  %v283_v6 = vld [vmem:[#allocation5 + $0x488] sm:$0xff]  ;;  %v6071_v15 = vcombine.high %v219_v4, %v223_v5 }
  0xe1   :  { %3002 = vmatpush2.bf16.msra.mxu0 %v6324_v10  ;;  %v287_v8 = vld [vmem:[#allocation5 + $0x4a8] sm:$0xff]  ;;  %v6078_v10 = vcombine.low %v227_v58, %v231_v61 }
  0xe2   :  { %3003 = vmatprep.subr.bf16.mxu0 %v6317_v12  ;;  %v211_v12 = vld [vmem:[#allocation5 + $0x248] sm:$0xff]  ;;  %v6134_v18 = vcombine.low %v283_v6, %v287_v8 }
  0xe3   :  { %3068 = vmatpush1.bf16.msra.mxu1 %v6006_v11  ;;  %v6135_v11 = vcombine.high %v283_v6, %v287_v8  ;;  %v215_v13 = vld [vmem:[#allocation5 + $0x268] sm:$0xff] }
  0xe4   :  { %3069 = vmatprep.subr.bf16.mxu1 %v5999_v16  ;;  %v275_v14 = vld [vmem:[#allocation5 + $0x448] sm:$0xff]  ;;  %v6063_v26 = vcombine.high %v211_v12, %v215_v13 }
  0xe5   :  { %3004 = vmatpush2.bf16.msra.mxu0 %v6316_v19  ;;  %v279_v16 = vld [vmem:[#allocation5 + $0x468] sm:$0xff]  ;;  %v6070_v19 = vcombine.low %v219_v4, %v223_v5 }
  0xe6   :  { %3005 = vmatprep.subr.bf16.mxu0 %v6309_v23  ;;  %v203_v23 = vld [vmem:[#allocation5 + $0x208] sm:$0xff]  ;;  %v6126_v54 = vcombine.low %v275_v14, %v279_v16 }
  0xe7   :  { %3070 = vmatpush1.bf16.msra.mxu1 %v5998_v21  ;;  %v6127_v21 = vcombine.high %v275_v14, %v279_v16  ;;  %v207_v24 = vld [vmem:[#allocation5 + $0x228] sm:$0xff] }
  0xe8   :  { %3071 = vmatprep.subr.bf16.mxu1 %v5991_v27  ;;  %v267_v25 = vld [vmem:[#allocation5 + $0x408] sm:$0xff]  ;;  %v6055_v33 = vcombine.high %v203_v23, %v207_v24 }
  0xe9   :  { %3006 = vmatpush2.bf16.msra.mxu0 %v6308_v28  ;;  %v271_v27 = vld [vmem:[#allocation5 + $0x428] sm:$0xff]  ;;  %v6062_v28 = vcombine.low %v211_v12, %v215_v13 }
  0xea   :  { %3098 = vmatprep.subr.bf16.mxu0 %v6175_v30  ;;  %v387_v30 = vld [vmem:[#allocation5 + $0x7c8] sm:$0xff]  ;;  %v6118_v35 = vcombine.low %v267_v25, %v271_v27 }
  0xeb   :  { %3072 = vmatpush1.bf16.msra.mxu1 %v5990_v55  ;;  %v6119_v55 = vcombine.high %v267_v25, %v271_v27  ;;  %v391_v31 = vld [vmem:[#allocation5 + $0x7e8] sm:$0xff] }
  0xec   :  { %3073 = vmatprep.subr.bf16.mxu1 %v6111_v34  ;;  %3008 = vmatmul.mubr.bf16.vlgmr.msra.gmra.mxu0 %v7564_v36  ;;  %v451_v32 = vld [vmem:[#allocation5 + $0x9c8] sm:$0xff]  ;;  %v6238_v45 = vcombine.low %v387_v30, %v391_v31 }
  0xed   :  { %3099 = vmatpush1.bf16.msra.mxu0 %v6174_v38  ;;  %3130 = vmatprep.mubr.bf16.mxu0 %v7539_v60  ;;  %v455_v34 = vld [vmem:[#allocation5 + $0x9e8] sm:$0xff]  ;;  %v6054_v38 = vcombine.low %v203_v23, %v207_v24 }
  0xee   :  { %3100 = vmatprep.subr.bf16.mxu0 %v6167_v40  ;;  %v379_v40 = vld [vmem:[#allocation5 + $0x788] sm:$0xff] }
  0xef   :  { %3074 = vmatpush2.bf16.msra.mxu1 %v6110_v39  ;;  %v6239_v39 = vcombine.high %v387_v30, %v391_v31  ;;  %v383_v41 = vld [vmem:[#allocation5 + $0x7a8] sm:$0xff] }
  0xf0   :  { %3075 = vmatprep.subr.bf16.mxu1 %v6103_v43  ;;  %v443_v42 = vld [vmem:[#allocation5 + $0x988] sm:$0xff]  ;;  %v6303_v43 = vcombine.high %v451_v32, %v455_v34  ;;  %v6230_v52 = vcombine.low %v379_v40, %v383_v41 }
  0xf1   :  { %3101 = vmatpush1.bf16.msra.mxu0 %v6166_v46  ;;  %v447_v44 = vld [vmem:[#allocation5 + $0x9a8] sm:$0xff]  ;;  %v6302_v46 = vcombine.low %v451_v32, %v455_v34 }
  0xf2   :  { %3102 = vmatprep.subr.bf16.mxu0 %v6159_v47  ;;  %v371_v47 = vld [vmem:[#allocation5 + $0x748] sm:$0xff]  ;;  %v6295_v50 = vcombine.high %v443_v42, %v447_v44 }
  0xf3   :  { %3076 = vmatpush2.bf16.msra.mxu1 %v6102_v22  ;;  %v6231_v22 = vcombine.high %v379_v40, %v383_v41  ;;  %v375_v48 = vld [vmem:[#allocation5 + $0x768] sm:$0xff] }
  0xf4   :  { %3077 = vmatprep.subr.bf16.mxu1 %v6095_v51  ;;  %v435_v49 = vld [vmem:[#allocation5 + $0x948] sm:$0xff]  ;;  %v6222_v0 = vcombine.low %v371_v47, %v375_v48 }
  0xf5   :  { %3103 = vmatpush1.bf16.msra.mxu0 %v6158_v53  ;;  %v439_v51 = vld [vmem:[#allocation5 + $0x968] sm:$0xff]  ;;  %v6294_v53 = vcombine.low %v443_v42, %v447_v44 }
  0xf6   :  { %3104 = vmatprep.subr.bf16.mxu0 %v6151_v57  ;;  %v363_v57 = vld [vmem:[#allocation5 + $0x708] sm:$0xff]  ;;  %v6287_v62 = vcombine.high %v435_v49, %v439_v51 }
  0xf7   :  { %3078 = vmatpush2.bf16.msra.mxu1 %v6094_v56  ;;  %v6223_v56 = vcombine.high %v371_v47, %v375_v48  ;;  %v367_v58 = vld [vmem:[#allocation5 + $0x728] sm:$0xff] }
  0xf8   :  { %3079 = vmatprep.subr.bf16.mxu1 %v6087_v63  ;;  %v427_v61 = vld [vmem:[#allocation5 + $0x908] sm:$0xff]  ;;  %v6214_v8 = vcombine.low %v363_v57, %v367_v58 }
  0xf9   :  { %3105 = vmatpush1.bf16.msra.mxu0 %v6150_v1  ;;  %v431_v63 = vld [vmem:[#allocation5 + $0x928] sm:$0xff]  ;;  %v6286_v1 = vcombine.low %v435_v49, %v439_v51 }
  0xfa   :  { %3106 = vmatprep.subr.bf16.mxu0 %v6143_v3  ;;  %v355_v3 = vld [vmem:[#allocation5 + $0x6c8] sm:$0xff]  ;;  %v6279_v6 = vcombine.high %v427_v61, %v431_v63 }
  0xfb   :  { %3080 = vmatpush2.bf16.msra.mxu1 %v6086_v2  ;;  %v6215_v2 = vcombine.high %v363_v57, %v367_v58  ;;  %v359_v4 = vld [vmem:[#allocation5 + $0x6e8] sm:$0xff] }
  0xfc   :  { %3081 = vmatprep.subr.bf16.mxu1 %v6079_v7  ;;  %v419_v5 = vld [vmem:[#allocation5 + $0x8c8] sm:$0xff]  ;;  %v6206_v16 = vcombine.low %v355_v3, %v359_v4 }
  0xfd   :  { %3107 = vmatpush1.bf16.msra.mxu0 %v6142_v9  ;;  %v423_v7 = vld [vmem:[#allocation5 + $0x8e8] sm:$0xff]  ;;  %v6278_v9 = vcombine.low %v427_v61, %v431_v63 }
  0xfe   :  { %3108 = vmatprep.subr.bf16.mxu0 %v6135_v11  ;;  %v347_v11 = vld [vmem:[#allocation5 + $0x688] sm:$0xff]  ;;  %v6271_v14 = vcombine.high %v419_v5, %v423_v7 }
  0xff   :  { %3082 = vmatpush2.bf16.msra.mxu1 %v6078_v10  ;;  %v6207_v10 = vcombine.high %v355_v3, %v359_v4  ;;  %v351_v12 = vld [vmem:[#allocation5 + $0x6a8] sm:$0xff] }
 0x100   :  { %3083 = vmatprep.subr.bf16.mxu1 %v6071_v15  ;;  %v411_v13 = vld [vmem:[#allocation5 + $0x888] sm:$0xff]  ;;  %v6198_v27 = vcombine.low %v347_v11, %v351_v12 }
 0x101   :  { %3109 = vmatpush1.bf16.msra.mxu0 %v6134_v18  ;;  %v415_v15 = vld [vmem:[#allocation5 + $0x8a8] sm:$0xff]  ;;  %v6270_v18 = vcombine.low %v419_v5, %v423_v7 }
 0x102   :  { %3110 = vmatprep.subr.bf16.mxu0 %v6127_v21  ;;  %v339_v21 = vld [vmem:[#allocation5 + $0x648] sm:$0xff]  ;;  %v6263_v25 = vcombine.high %v411_v13, %v415_v15 }
 0x103   :  { %3084 = vmatpush2.bf16.msra.mxu1 %v6070_v19  ;;  %v6199_v19 = vcombine.high %v347_v11, %v351_v12  ;;  %v343_v23 = vld [vmem:[#allocation5 + $0x668] sm:$0xff] }
 0x104   :  { %3085 = vmatprep.subr.bf16.mxu1 %v6063_v26  ;;  %v403_v24 = vld [vmem:[#allocation5 + $0x848] sm:$0xff]  ;;  %v6190_v34 = vcombine.low %v339_v21, %v343_v23 }
 0x105   :  { %3111 = vmatpush1.bf16.msra.mxu0 %v6126_v54  ;;  %v407_v26 = vld [vmem:[#allocation5 + $0x868] sm:$0xff]  ;;  %v6262_v54 = vcombine.low %v411_v13, %v415_v15 }
 0x106   :  { %3112 = vmatprep.subr.bf16.mxu0 %v6119_v55  ;;  %v331_v55 = vld [vmem:[#allocation5 + $0x608] sm:$0xff]  ;;  %v6255_v32 = vcombine.high %v403_v24, %v407_v26 }
 0x107   :  { %3086 = vmatpush2.bf16.msra.mxu1 %v6062_v28  ;;  %v6191_v28 = vcombine.high %v339_v21, %v343_v23  ;;  %v335_v30 = vld [vmem:[#allocation5 + $0x628] sm:$0xff] }
 0x108   :  { %3087 = vmatprep.subr.bf16.mxu1 %v6055_v33  ;;  %v395_v31 = vld [vmem:[#allocation5 + $0x808] sm:$0xff]  ;;  %v6182_v44 = vcombine.low %v331_v55, %v335_v30 }
 0x109   :  { %3113 = vmatpush1.bf16.msra.mxu0 %v6118_v35  ;;  %v399_v33 = vld [vmem:[#allocation5 + $0x828] sm:$0xff]  ;;  %v6254_v35 = vcombine.low %v403_v24, %v407_v26 }
 0x10a   :  { %3114 = vmatprep.subr.bf16.mxu0 %v6239_v39  ;;  %v515_v39 = vld [vmem:[#allocation5 + $0xbc8] sm:$0xff]  ;;  %v6247_v42 = vcombine.high %v395_v31, %v399_v33 }
 0x10b   :  { %3088 = vmatpush2.bf16.msra.mxu1 %v6054_v38  ;;  %v6183_v38 = vcombine.high %v331_v55, %v335_v30  ;;  %v519_v40 = vld [vmem:[#allocation5 + $0xbe8] sm:$0xff] }
 0x10c   :  { %3139 = vmatprep.subr.bf16.mxu1 %v6303_v43  ;;  %v579_v41 = vld [vmem:[#allocation5 + $0xdc8] sm:$0xff]  ;;  %v6367_v49 = vcombine.high %v515_v39, %v519_v40 }
 0x10d   :  { %3115 = vmatpush2.bf16.msra.mxu0 %v6238_v45  ;;  %v583_v43 = vld [vmem:[#allocation5 + $0xde8] sm:$0xff]  ;;  %v6246_v45 = vcombine.low %v395_v31, %v399_v33 }
 0x10e   :  { %3090 = vmatmul.mubr.bf16.vlgmr.msra.gmra.mxu1 %v7545_v17  ;;  %3116 = vmatprep.subr.bf16.mxu0 %v6231_v22  ;;  %v507_v22 = vld [vmem:[#allocation5 + $0xb88] sm:$0xff]  ;;  %v6430_v51 = vcombine.low %v579_v41, %v583_v43 }
 0x10f   :  { %3140 = vmatpush1.bf16.msra.mxu1 %v6302_v46  ;;  %3171 = vmatprep.mubr.bf16.mxu1 %v7556_v29  ;;  %v6431_v46 = vcombine.high %v579_v41, %v583_v43  ;;  %v511_v47 = vld [vmem:[#allocation5 + $0xba8] sm:$0xff] }
 0x110   :  { %3141 = vmatprep.subr.bf16.mxu1 %v6295_v50  ;;  %v571_v48 = vld [vmem:[#allocation5 + $0xd88] sm:$0xff]  ;;  %v6359_v61 = vcombine.high %v507_v22, %v511_v47 }
 0x111   :  { %3117 = vmatpush2.bf16.msra.mxu0 %v6230_v52  ;;  %v575_v50 = vld [vmem:[#allocation5 + $0xda8] sm:$0xff]  ;;  %v6366_v52 = vcombine.low %v515_v39, %v519_v40 }
 0x112   :  { %3118 = vmatprep.subr.bf16.mxu0 %v6223_v56  ;;  %v499_v56 = vld [vmem:[#allocation5 + $0xb48] sm:$0xff]  ;;  %v6422_v63 = vcombine.low %v571_v48, %v575_v50 }
 0x113   :  { %3142 = vmatpush1.bf16.msra.mxu1 %v6294_v53  ;;  %v6423_v53 = vcombine.high %v571_v48, %v575_v50  ;;  %v503_v57 = vld [vmem:[#allocation5 + $0xb68] sm:$0xff] }
 0x114   :  { %3143 = vmatprep.subr.bf16.mxu1 %v6287_v62  ;;  %v563_v58 = vld [vmem:[#allocation5 + $0xd48] sm:$0xff]  ;;  %v6351_v5 = vcombine.high %v499_v56, %v503_v57 }
 0x115   :  { %3119 = vmatpush2.bf16.msra.mxu0 %v6222_v0  ;;  %v567_v62 = vld [vmem:[#allocation5 + $0xd68] sm:$0xff]  ;;  %v6358_v0 = vcombine.low %v507_v22, %v511_v47  ;;  %v200_v22 = vld [vmem:[#allocation5 + $0x1f0] sm:$0xff] }
 0x116   :  { %3120 = vmatprep.subr.bf16.mxu0 %v6215_v2  ;;  %v491_v2 = vld [vmem:[#allocation5 + $0xb08] sm:$0xff]  ;;  %v6414_v7 = vcombine.low %v563_v58, %v567_v62  ;;  %v324_v47 = vld [vmem:[#allocation5 + $0x5d0] sm:$0xff] }
 0x117   :  { %3144 = vmatpush1.bf16.msra.mxu1 %v6286_v1  ;;  %v6415_v1 = vcombine.high %v563_v58, %v567_v62  ;;  %v495_v3 = vld [vmem:[#allocation5 + $0xb28] sm:$0xff] }
 0x118   :  { %3145 = vmatprep.subr.bf16.mxu1 %v6279_v6  ;;  %v555_v4 = vld [vmem:[#allocation5 + $0xd08] sm:$0xff]  ;;  %v6343_v13 = vcombine.high %v491_v2, %v495_v3 }
 0x119   :  { %3121 = vmatpush2.bf16.msra.mxu0 %v6214_v8  ;;  %v559_v6 = vld [vmem:[#allocation5 + $0xd28] sm:$0xff]  ;;  %v6350_v8 = vcombine.low %v499_v56, %v503_v57  ;;  %v192_v56 = vld [vmem:[#allocation5 + $0x1b0] sm:$0xff] }
 0x11a   :  { %3122 = vmatprep.subr.bf16.mxu0 %v6207_v10  ;;  %v483_v10 = vld [vmem:[#allocation5 + $0xac8] sm:$0xff]  ;;  %v6406_v15 = vcombine.low %v555_v4, %v559_v6  ;;  %v316_v57 = vld [vmem:[#allocation5 + $0x590] sm:$0xff] }
 0x11b   :  { %3146 = vmatpush1.bf16.msra.mxu1 %v6278_v9  ;;  %v6407_v9 = vcombine.high %v555_v4, %v559_v6  ;;  %v487_v11 = vld [vmem:[#allocation5 + $0xae8] sm:$0xff]  ;;  %v7572_v4 = vld [vmem:[#allocation3 + $0x18] ss:$0 sps:$4 sm:$0xff]   ;;  %v312_v6 = vld [vmem:[#allocation5 + $0x570] sm:$0xff] }
 0x11c   :  { %3147 = vmatprep.subr.bf16.mxu1 %v6271_v14  ;;  %v547_v12 = vld [vmem:[#allocation5 + $0xcc8] sm:$0xff]  ;;  %v6335_v24 = vcombine.high %v483_v10, %v487_v11 }
 0x11d   :  { %3123 = vmatpush2.bf16.msra.mxu0 %v6206_v16  ;;  %v551_v14 = vld [vmem:[#allocation5 + $0xce8] sm:$0xff]  ;;  %v6342_v16 = vcombine.low %v491_v2, %v495_v3  ;;  %v184_v3 = vld [vmem:[#allocation5 + $0x170] sm:$0xff] }
 0x11e   :  { %3124 = vmatprep.subr.bf16.mxu0 %v6199_v19  ;;  %v475_v19 = vld [vmem:[#allocation5 + $0xa88] sm:$0xff]  ;;  %v6398_v26 = vcombine.low %v547_v12, %v551_v14 }
 0x11f   :  { %3148 = vmatpush1.bf16.msra.mxu1 %v6270_v18  ;;  %v6399_v18 = vcombine.high %v547_v12, %v551_v14  ;;  %v479_v21 = vld [vmem:[#allocation5 + $0xaa8] sm:$0xff]  ;;  %v176_v12 = vld [vmem:[#allocation5 + $0x130] sm:$0xff] }
 0x120   :  { %3149 = vmatprep.subr.bf16.mxu1 %v6263_v25  ;;  %v539_v23 = vld [vmem:[#allocation5 + $0xc88] sm:$0xff]  ;;  %v6327_v31 = vcombine.high %v475_v19, %v479_v21  ;;  %v304_v14 = vld [vmem:[#allocation5 + $0x530] sm:$0xff] }
 0x121   :  { %3125 = vmatpush2.bf16.msra.mxu0 %v6198_v27  ;;  %v543_v25 = vld [vmem:[#allocation5 + $0xca8] sm:$0xff]  ;;  %v6334_v27 = vcombine.low %v483_v10, %v487_v11  ;;  %v172_v11 = vld [vmem:[#allocation5 + $0x110] sm:$0xff] }
 0x122   :  { %3126 = vmatprep.subr.bf16.mxu0 %v6191_v28  ;;  %v467_v28 = vld [vmem:[#allocation5 + $0xa48] sm:$0xff]  ;;  %v6390_v33 = vcombine.low %v539_v23, %v543_v25 }
 0x123   :  { %3150 = vmatpush1.bf16.msra.mxu1 %v6262_v54  ;;  %v6391_v54 = vcombine.high %v539_v23, %v543_v25  ;;  %v471_v55 = vld [vmem:[#allocation5 + $0xa68] sm:$0xff]  ;;  %v168_v23 = vld [vmem:[#allocation5 + $0xf0] sm:$0xff] }
 0x124   :  { %3151 = vmatprep.subr.bf16.mxu1 %v6255_v32  ;;  %v531_v30 = vld [vmem:[#allocation5 + $0xc48] sm:$0xff]  ;;  %v6319_v41 = vcombine.high %v467_v28, %v471_v55  ;;  %v296_v25 = vld [vmem:[#allocation5 + $0x4f0] sm:$0xff] }
 0x125   :  { %3127 = vmatpush2.bf16.msra.mxu0 %v6190_v34  ;;  %v535_v32 = vld [vmem:[#allocation5 + $0xc68] sm:$0xff]  ;;  %v6326_v34 = vcombine.low %v475_v19, %v479_v21  ;;  %v164_v21 = vld [vmem:[#allocation5 + $0xd0] sm:$0xff] }
 0x126   :  { %3128 = vmatprep.subr.bf16.mxu0 %v6183_v38  ;;  %v459_v38 = vld [vmem:[#allocation5 + $0xa08] sm:$0xff]  ;;  %v6382_v43 = vcombine.low %v531_v30, %v535_v32 }
 0x127   :  { %3152 = vmatpush1.bf16.msra.mxu1 %v6254_v35  ;;  %v6383_v35 = vcombine.high %v531_v30, %v535_v32  ;;  %v463_v39 = vld [vmem:[#allocation5 + $0xa28] sm:$0xff]  ;;  %v160_v30 = vld [vmem:[#allocation5 + $0xb0] sm:$0xff] }
 0x128   :  { %3153 = vmatprep.subr.bf16.mxu1 %v6247_v42  ;;  %v523_v40 = vld [vmem:[#allocation5 + $0xc08] sm:$0xff]  ;;  %v6311_v48 = vcombine.high %v459_v38, %v463_v39  ;;  %v288_v32 = vld [vmem:[#allocation5 + $0x4b0] sm:$0xff] }
 0x129   :  { %3129 = vmatpush2.bf16.msra.mxu0 %v6182_v44  ;;  %v527_v42 = vld [vmem:[#allocation5 + $0xc28] sm:$0xff]  ;;  %v6318_v44 = vcombine.low %v467_v28, %v471_v55  ;;  %v156_v55 = vld [vmem:[#allocation5 + $0x90] sm:$0xff] }
 0x12a   :  { %3180 = vmatprep.subr.bf16.mxu0 %v6431_v46  ;;  %v196_v46 = vld [vmem:[#allocation5 + $0x1d0] sm:$0xff]  ;;  %v6374_v50 = vcombine.low %v523_v40, %v527_v42 }
 0x12b   :  { %3154 = vmatpush1.bf16.msra.mxu1 %v6246_v45  ;;  %v6375_v45 = vcombine.high %v523_v40, %v527_v42  ;;  %v6048_v62 = vcombine.low %v196_v46, %v200_v22  ;;  %v152_v40 = vld [vmem:[#allocation5 + $0x70] sm:$0xff] }
 0x12c   :  { %3155 = vmatprep.subr.bf16.mxu1 %v6367_v49  ;;  %3131 = vmatmul.mubr.bf16.vlgmr.msra.gmra.mxu0 %v7549_v20  ;;  %v328_v49 = vld [vmem:[#allocation5 + $0x5f0] sm:$0xff] }
 0x12d   :  { %3181 = vmatpush1.bf16.msra.mxu0 %v6430_v51  ;;  %3212 = vmatprep.mubr.bf16.mxu0 %v7451_v37  ;;  %v6310_v51 = vcombine.low %v459_v38, %v463_v39  ;;  %v6177_v58 = vcombine.high %v324_v47, %v328_v49  ;;  %v148_v39 = vld [vmem:[#allocation5 + $0x50] sm:$0xff] }
 0x12e   :  { %3182 = vmatprep.subr.bf16.mxu0 %v6423_v53  ;;  %v188_v53 = vld [vmem:[#allocation5 + $0x190] sm:$0xff] }
 0x12f   :  { %3156 = vmatpush2.bf16.msra.mxu1 %v6366_v52  ;;  %v6049_v52 = vcombine.high %v196_v46, %v200_v22  ;;  %v280_v42 = vld [vmem:[#allocation5 + $0x470] sm:$0xff]  ;;  %v6001_v46 = vcombine.high %v148_v39, %v152_v40 }
 0x130   :  { %3157 = vmatprep.subr.bf16.mxu1 %v6359_v61  ;;  %v320_v61 = vld [vmem:[#allocation5 + $0x5b0] sm:$0xff] }
 0x131   :  { %3183 = vmatpush1.bf16.msra.mxu0 %v6422_v63  ;;  %v6176_v63 = vcombine.low %v324_v47, %v328_v49  ;;  %v6169_v2 = vcombine.high %v316_v57, %v320_v61  ;;  %v140_v47 = vld [vmem:[#allocation5 + $0x10] sm:$0xff] }
 0x132   :  { %3184 = vmatprep.subr.bf16.mxu0 %v6415_v1  ;;  %v180_v1 = vld [vmem:[#allocation5 + $0x150] sm:$0xff] }
 0x133   :  { %3158 = vmatpush2.bf16.msra.mxu1 %v6358_v0  ;;  %v6041_v0 = vcombine.high %v188_v53, %v192_v56  ;;  %v268_v49 = vld [vmem:[#allocation5 + $0x410] sm:$0xff] }
 0x134   :  { %3159 = vmatprep.subr.bf16.mxu1 %v6351_v5  ;;  %v308_v5 = vld [vmem:[#allocation5 + $0x550] sm:$0xff] }
 0x135   :  { %3185 = vmatpush1.bf16.msra.mxu0 %v6414_v7  ;;  %v6040_v7 = vcombine.low %v188_v53, %v192_v56  ;;  %v6161_v10 = vcombine.high %v308_v5, %v312_v6 }
 0x136   :  { %3186 = vmatprep.subr.bf16.mxu0 %v6407_v9  ;;  %v6033_v9 = vcombine.high %v180_v1, %v184_v3 }
 0x137   :  { %3160 = vmatpush2.bf16.msra.mxu1 %v6350_v8  ;;  %v6168_v8 = vcombine.low %v316_v57, %v320_v61  ;;  %v264_v61 = vld [vmem:[#allocation5 + $0x3f0] sm:$0xff] }
 0x138   :  { %3161 = vmatprep.subr.bf16.mxu1 %v6343_v13  ;;  %v300_v13 = vld [vmem:[#allocation5 + $0x510] sm:$0xff] }
 0x139   :  { %3187 = vmatpush1.bf16.msra.mxu0 %v6406_v15  ;;  %v6032_v15 = vcombine.low %v180_v1, %v184_v3  ;;  %v6153_v19 = vcombine.high %v300_v13, %v304_v14  ;;  %v7583_v3 = vld [vmem:[#allocation7] sm:$0xff] }
 0x13a   :  { %3188 = vmatprep.subr.bf16.mxu0 %v6399_v18  ;;  %v6025_v18 = vcombine.high %v172_v11, %v176_v12 }
 0x13b   :  { %3162 = vmatpush2.bf16.msra.mxu1 %v6342_v16  ;;  %v6160_v16 = vcombine.low %v308_v5, %v312_v6 }
 0x13c   :  { %3163 = vmatprep.subr.bf16.mxu1 %v6335_v24  ;;  %v292_v24 = vld [vmem:[#allocation5 + $0x4d0] sm:$0xff] }
 0x13d   :  { %3189 = vmatpush1.bf16.msra.mxu0 %v6398_v26  ;;  %v6024_v26 = vcombine.low %v172_v11, %v176_v12  ;;  %v6145_v28 = vcombine.high %v292_v24, %v296_v25  ;;  %v384_v11 = vld [vmem:[#allocation5 + $0x7b0] sm:$0xff] }
 0x13e   :  { %3190 = vmatprep.subr.bf16.mxu0 %v6391_v54  ;;  %v6017_v54 = vcombine.high %v164_v21, %v168_v23 }
 0x13f   :  { %3164 = vmatpush2.bf16.msra.mxu1 %v6334_v27  ;;  %v6152_v27 = vcombine.low %v300_v13, %v304_v14 }
 0x140   :  { %3165 = vmatprep.subr.bf16.mxu1 %v6327_v31  ;;  %v284_v31 = vld [vmem:[#allocation5 + $0x490] sm:$0xff] }
 0x141   :  { %3191 = vmatpush1.bf16.msra.mxu0 %v6390_v33  ;;  %v6016_v33 = vcombine.low %v164_v21, %v168_v23  ;;  %v6137_v38 = vcombine.high %v284_v31, %v288_v32  ;;  %v248_v21 = vld [vmem:[#allocation5 + $0x370] sm:$0xff] }
 0x142   :  { %3192 = vmatprep.subr.bf16.mxu0 %v6383_v35  ;;  %v6009_v35 = vcombine.high %v156_v55, %v160_v30 }
 0x143   :  { %3166 = vmatpush2.bf16.msra.mxu1 %v6326_v34  ;;  %v6144_v34 = vcombine.low %v292_v24, %v296_v25  ;;  %v372_v24 = vld [vmem:[#allocation5 + $0x750] sm:$0xff] }
 0x144   :  { %3167 = vmatprep.subr.bf16.mxu1 %v6319_v41  ;;  %v276_v41 = vld [vmem:[#allocation5 + $0x450] sm:$0xff] }
 0x145   :  { %3193 = vmatpush1.bf16.msra.mxu0 %v6382_v43  ;;  %v6008_v43 = vcombine.low %v156_v55, %v160_v30  ;;  %v6129_v22 = vcombine.high %v276_v41, %v280_v42  ;;  %v6128_v53 = vcombine.low %v276_v41, %v280_v42  ;;  %v376_v25 = vld [vmem:[#allocation5 + $0x770] sm:$0xff] }
 0x146   :  { %3194 = vmatprep.subr.bf16.mxu0 %v6375_v45  ;;  %v6136_v45 = vcombine.low %v284_v31, %v288_v32  ;;  %v368_v41 = vld [vmem:[#allocation5 + $0x730] sm:$0xff] }
 0x147   :  { %3168 = vmatpush2.bf16.msra.mxu1 %v6318_v44  ;;  %v588_v44 = vlaneseq }
 0x148   :  { %3169 = vmatprep.subr.bf16.mxu1 %v6311_v48  ;;  %v144_v48 = vld [vmem:[#allocation5 + $0x30] sm:$0xff] }
 0x149   :  { %3195 = vmatpush1.bf16.msra.mxu0 %v6374_v50  ;;  %v272_v50 = vld [vmem:[#allocation5 + $0x430] sm:$0xff]  ;;  %v5993_v56 = vcombine.high %v140_v47, %v144_v48 }
 0x14a   :  { %3221 = vmatprep.subr.bf16.mxu0 %v6049_v52  ;;  %v7578_v52 = vshrl.u32 %v588_v44, 7  ;;  %v6121_v57 = vcombine.high %v268_v49, %v272_v50 }
 0x14b   :  { %3170 = vmatpush2.bf16.msra.mxu1 %v6310_v51  ;;  %v6000_v51 = vcombine.low %v148_v39, %v152_v40  ;;  %v364_v40 = vld [vmem:[#allocation5 + $0x710] sm:$0xff] }
 0x14c   :  { %3262 = vmatprep.subr.bf16.mxu1 %v6177_v58  ;;  %3213 = vmatmul.mubr.bf16.vlgmr.msra.gmra.mxu0 %v7572_v4  ;;  %v260_v58 = vld [vmem:[#allocation5 + $0x3d0] sm:$0xff]  ;;  %v7581_v1 = vsub.s32 0, %v7578_v52 }
 0x14d   :  { %3222 = vmatpush1.bf16.msra.mxu0 %v6048_v62  ;;  %3253 = vmatprep.mubr.bf16.mxu0 %v7535_v59  ;;  %v388_v62 = vld [vmem:[#allocation5 + $0x7d0] sm:$0xff]  ;;  %v6113_v5 = vcombine.high %v260_v58, %v264_v61  ;;  %v6112_v13 = vcombine.low %v260_v58, %v264_v61 }
 0x14e   :  { %3172 = vmatmul.mubr.bf16.vlgmr.msra.gmra.mxu1 %v7564_v36  ;;  %3223 = vmatprep.subr.bf16.mxu0 %v6041_v0  ;;  %v5992_v0 = vcombine.low %v140_v47, %v144_v48  ;;  %v591_v12 = vrot.slane %v7583_v3, %v7581_v1  ;;  %v6217_v48 = vcombine.high %v364_v40, %v368_v41 }
 0x14f   :  { %3263 = vmatpush1.bf16.msra.mxu1 %v6176_v63  ;;  %3294 = vmatprep.mubr.bf16.mxu1 %v7539_v60  ;;  %v392_v63 = vld [vmem:[#allocation5 + $0x7f0] sm:$0xff] }
 0x150   :  { %3264 = vmatprep.subr.bf16.mxu1 %v6169_v2  ;;  %v6120_v2 = vcombine.low %v268_v49, %v272_v50  ;;  %v6241_v6 = vcombine.high %v388_v62, %v392_v63  ;;  %v6240_v14 = vcombine.low %v388_v62, %v392_v63  ;;  %v228_v49 = vld [vmem:[#allocation5 + $0x2d0] sm:$0xff] }
 0x151   :  { %3224 = vmatpush1.bf16.msra.mxu0 %v6040_v7  ;;  %v7586_v7 = vsub.s32 1, %v7578_v52  ;;  %v232_v50 = vld [vmem:[#allocation5 + $0x2f0] sm:$0xff] }
 0x152   :  { %3225 = vmatprep.subr.bf16.mxu0 %v6033_v9  ;;  %v256_v9 = vld [vmem:[#allocation5 + $0x3b0] sm:$0xff]  ;;  %v6081_v58 = vcombine.high %v228_v49, %v232_v50 }
 0x153   :  { %3265 = vmatpush1.bf16.msra.mxu1 %v6168_v8  ;;  %v252_v8 = vld [vmem:[#allocation5 + $0x390] sm:$0xff] }
 0x154   :  { %3266 = vmatprep.subr.bf16.mxu1 %v6161_v10  ;;  %v380_v10 = vld [vmem:[#allocation5 + $0x790] sm:$0xff] }
 0x155   :  { %3226 = vmatpush1.bf16.msra.mxu0 %v6032_v15  ;;  %v6105_v15 = vcombine.high %v252_v8, %v256_v9  ;;  %v6232_v55 = vcombine.low %v380_v10, %v384_v11  ;;  %v220_v62 = vld [vmem:[#allocation5 + $0x290] sm:$0xff] }
 0x156   :  { %3227 = vmatprep.subr.bf16.mxu0 %v6025_v18  ;;  %v6233_v18 = vcombine.high %v380_v10, %v384_v11  ;;  %v224_v63 = vld [vmem:[#allocation5 + $0x2b0] sm:$0xff] }
 0x157   :  { %3267 = vmatpush1.bf16.msra.mxu1 %v6160_v16  ;;  %v595_v16 = vrot.slane %v7583_v3, %v7586_v7  ;;  %v212_v10 = vld [vmem:[#allocation5 + $0x250] sm:$0xff] }
 0x158   :  { %3268 = vmatprep.subr.bf16.mxu1 %v6153_v19  ;;  %v244_v19 = vld [vmem:[#allocation5 + $0x350] sm:$0xff] }
 0x159   :  { %3228 = vmatpush1.bf16.msra.mxu0 %v6024_v26  ;;  %v6097_v30 = vcombine.high %v244_v19, %v248_v21  ;;  %v6096_v44 = vcombine.low %v244_v19, %v248_v21  ;;  %v216_v11 = vld [vmem:[#allocation5 + $0x270] sm:$0xff] }
 0x15a   :  { %3229 = vmatprep.subr.bf16.mxu0 %v6017_v54  ;;  %v6104_v54 = vcombine.low %v252_v8, %v256_v9  ;;  %v6073_v8 = vcombine.high %v220_v62, %v224_v63  ;;  %v204_v19 = vld [vmem:[#allocation5 + $0x210] sm:$0xff] }
 0x15b   :  { %3269 = vmatpush1.bf16.msra.mxu1 %v6152_v27  ;;  %v208_v21 = vld [vmem:[#allocation5 + $0x230] sm:$0xff] }
 0x15c   :  { %3270 = vmatprep.subr.bf16.mxu1 %v6145_v28 }
 0x15d   :  { %3230 = vmatpush1.bf16.msra.mxu0 %v6016_v33 }
 0x15e   :  { %3231 = vmatprep.subr.bf16.mxu0 %v6009_v35  ;;  %v236_v35 = vld [vmem:[#allocation5 + $0x310] sm:$0xff] }
 0x15f   :  { %3271 = vmatpush1.bf16.msra.mxu1 %v6144_v34  ;;  %v6225_v34 = vcombine.high %v372_v24, %v376_v25 }
 0x160   :  { %3272 = vmatprep.subr.bf16.mxu1 %v6137_v38  ;;  %v240_v38 = vld [vmem:[#allocation5 + $0x330] sm:$0xff] }
 0x161   :  { %3232 = vmatpush1.bf16.msra.mxu0 %v6008_v43 }
 0x162   :  { %3233 = vmatprep.subr.bf16.mxu0 %v6001_v46  ;;  %v6224_v46 = vcombine.low %v372_v24, %v376_v25  ;;  %v336_v24 = vld [vmem:[#allocation5 + $0x630] sm:$0xff]  ;;  %v6064_v25 = vcombine.low %v212_v10, %v216_v11 }
 0x163   :  { %3273 = vmatpush1.bf16.msra.mxu1 %v6136_v45 }
 0x164   :  { %3274 = vmatprep.subr.bf16.mxu1 %v6129_v22  ;;  %v6089_v22 = vcombine.high %v236_v35, %v240_v38 }
 0x165   :  { %3234 = vmatpush1.bf16.msra.mxu0 %v6000_v51  ;;  %v356_v51 = vld [vmem:[#allocation5 + $0x6d0] sm:$0xff] }
 0x166   :  { %3235 = vmatprep.subr.bf16.mxu0 %v5993_v56  ;;  %v6088_v56 = vcombine.low %v236_v35, %v240_v38 }
 0x167   :  { %3275 = vmatpush1.bf16.msra.mxu1 %v6128_v53  ;;  %v360_v53 = vld [vmem:[#allocation5 + $0x6f0] sm:$0xff] }
 0x168   :  { %3276 = vmatprep.subr.bf16.mxu1 %v6121_v57  ;;  %v6216_v57 = vcombine.low %v364_v40, %v368_v41  ;;  %v6209_v61 = vcombine.high %v356_v51, %v360_v53  ;;  %v448_v40 = vld [vmem:[#allocation5 + $0x9b0] sm:$0xff] }
 0x169   :  { %3236 = vmatpush1.bf16.msra.mxu0 %v5992_v0  ;;  %v348_v0 = vld [vmem:[#allocation5 + $0x690] sm:$0xff] }
 0x16a   :  { %3237 = vmatprep.subr.bf16.mxu0 %v6113_v5  ;;  %v6080_v5 = vcombine.low %v228_v49, %v232_v50  ;;  %v572_v41 = vld [vmem:[#allocation5 + $0xd90] sm:$0xff] }
 0x16b   :  { %3277 = vmatpush1.bf16.msra.mxu1 %v6120_v2  ;;  %v352_v2 = vld [vmem:[#allocation5 + $0x6b0] sm:$0xff] }
 0x16c   :  { %3278 = vmatprep.subr.bf16.mxu1 %v6241_v6  ;;  %v2927_v23 = vpop.f32.mrf.mxu0  ;;  %v6208_v6 = vcombine.low %v356_v51, %v360_v53  ;;  %v6201_v9 = vcombine.high %v348_v0, %v352_v2  ;;  %v564_v49 = vld [vmem:[#allocation5 + $0xd50] sm:$0xff] }
 0x16d   :  { %v2928_v26 = vadd.f32 %v2927_v23, %v591_v12  ;;  %3238 = vmatpush2.bf16.msra.mxu0 %v6112_v13  ;;  %v340_v12 = vld [vmem:[#allocation5 + $0x650] sm:$0xff] }
 0x16e   :  { %v2968_v27 = vpop.f32.mrf.mxu1  ;;  %v2929_v28 = vpop.f32.mrf.mxu0  ;;  %3239 = vmatprep.subr.bf16.mxu0 %v6105_v15  ;;  %v344_v13 = vld [vmem:[#allocation5 + $0x670] sm:$0xff]  ;;  %v6200_v15 = vcombine.low %v348_v0, %v352_v2 }
 0x16f   :  { %3279 = vmatpush2.bf16.msra.mxu1 %v6240_v14  ;;  %v7592_v31 = vadd.f32 %v2968_v27, %v2928_v26  ;;  %v2930_v32 = vadd.f32 %v2929_v28, %v595_v16  ;;  %v6072_v14 = vcombine.low %v220_v62, %v224_v63  ;;  %v6065_v16 = vcombine.high %v212_v10, %v216_v11  ;;  %v332_v23 = vld [vmem:[#allocation5 + $0x610] sm:$0xff] }
 0x170   :  { %v2970_v33 = vpop.f32.mrf.mxu1  ;;  %3280 = vmatprep.subr.bf16.mxu1 %v6233_v18  ;;  %v2931_v39 = vpop.f32.mrf.mxu0  ;;  %v6193_v18 = vcombine.high %v340_v12, %v344_v13  ;;  %v6192_v26 = vcombine.low %v340_v12, %v344_v13  ;;  %v6057_v27 = vcombine.high %v204_v19, %v208_v21  ;;  %v452_v28 = vld [vmem:[#allocation5 + $0x9d0] sm:$0xff] }
 0x171   :  { %v7594_v42 = vadd.f32 %v2970_v33, %v2930_v32  ;;  %3240 = vmatpush2.bf16.msra.mxu0 %v6104_v54  ;;  %v6185_v54 = vcombine.high %v332_v23, %v336_v24  ;;  %v584_v32 = vld [vmem:[#allocation5 + $0xdf0] sm:$0xff]  ;;  %v6056_v33 = vcombine.low %v204_v19, %v208_v21 }
 0x172   :  { %v2972_v43 = vpop.f32.mrf.mxu1  ;;  %v2932_v45 = vpop.f32.mrf.mxu0  ;;  %3241 = vmatprep.subr.bf16.mxu0 %v6097_v30  ;;  %v580_v30 = vld [vmem:[#allocation5 + $0xdd0] sm:$0xff] }
 0x173   :  { %3281 = vmatpush2.bf16.msra.mxu1 %v6232_v55  ;;  %v456_v55 = vld [vmem:[#allocation5 + $0x9f0] sm:$0xff]  ;;  %v6433_v38 = vcombine.high %v580_v30, %v584_v32  ;;  %v6432_v45 = vcombine.low %v580_v30, %v584_v32 }
 0x174   :  { %v2973_v47 = vpop.f32.mrf.mxu1  ;;  %3282 = vmatprep.subr.bf16.mxu1 %v6225_v34  ;;  %v6184_v34 = vcombine.low %v332_v23, %v336_v24  ;;  %v6305_v35 = vcombine.high %v452_v28, %v456_v55  ;;  %v444_v39 = vld [vmem:[#allocation5 + $0x990] sm:$0xff] }
 0x175   :  { %3242 = vmatpush2.bf16.msra.mxu0 %v6096_v44  ;;  %v576_v43 = vld [vmem:[#allocation5 + $0xdb0] sm:$0xff]  ;;  %v6304_v44 = vcombine.low %v452_v28, %v456_v55  ;;  %v6296_v53 = vcombine.low %v444_v39, %v448_v40 }
 0x176   :  { %3243 = vmatprep.subr.bf16.mxu0 %v6089_v22  ;;  %v6425_v22 = vcombine.high %v572_v41, %v576_v43  ;;  %v436_v47 = vld [vmem:[#allocation5 + $0x950] sm:$0xff] }
 0x177   :  { %3283 = vmatpush2.bf16.msra.mxu1 %v6224_v46  ;;  %v6297_v46 = vcombine.high %v444_v39, %v448_v40  ;;  %v568_v50 = vld [vmem:[#allocation5 + $0xd70] sm:$0xff] }
 0x178   :  { %3284 = vmatprep.subr.bf16.mxu1 %v6217_v48  ;;  %v440_v48 = vld [vmem:[#allocation5 + $0x970] sm:$0xff] }
 0x179   :  { %3244 = vmatpush2.bf16.msra.mxu0 %v6088_v56  ;;  %v6424_v56 = vcombine.low %v572_v41, %v576_v43  ;;  %v428_v62 = vld [vmem:[#allocation5 + $0x910] sm:$0xff] }
 0x17a   :  { %3245 = vmatprep.subr.bf16.mxu0 %v6081_v58  ;;  %v432_v63 = vld [vmem:[#allocation5 + $0x930] sm:$0xff] }
 0x17b   :  { %3285 = vmatpush2.bf16.msra.mxu1 %v6216_v57  ;;  %v6289_v57 = vcombine.high %v436_v47, %v440_v48  ;;  %v556_v0 = vld [vmem:[#allocation5 + $0xd10] sm:$0xff] }
 0x17c   :  { %3286 = vmatprep.subr.bf16.mxu1 %v6209_v61  ;;  %v6417_v61 = vcombine.high %v564_v49, %v568_v50  ;;  %v560_v2 = vld [vmem:[#allocation5 + $0xd30] sm:$0xff] }
 0x17d   :  { %3246 = vmatpush2.bf16.msra.mxu0 %v6080_v5  ;;  %v6409_v11 = vcombine.high %v556_v0, %v560_v2  ;;  %v420_v12 = vld [vmem:[#allocation5 + $0x8d0] sm:$0xff] }
 0x17e   :  { %3247 = vmatprep.subr.bf16.mxu0 %v6073_v8  ;;  %v6416_v8 = vcombine.low %v564_v49, %v568_v50  ;;  %v424_v13 = vld [vmem:[#allocation5 + $0x8f0] sm:$0xff] }
 0x17f   :  { %3287 = vmatpush2.bf16.msra.mxu1 %v6208_v6  ;;  %v6288_v6 = vcombine.low %v436_v47, %v440_v48  ;;  %v6273_v19 = vcombine.high %v420_v12, %v424_v13  ;;  %v412_v23 = vld [vmem:[#allocation5 + $0x890] sm:$0xff] }
 0x180   :  { %3288 = vmatprep.subr.bf16.mxu1 %v6201_v9  ;;  %v6281_v9 = vcombine.high %v428_v62, %v432_v63  ;;  %v416_v24 = vld [vmem:[#allocation5 + $0x8b0] sm:$0xff] }
 0x181   :  { %3248 = vmatpush2.bf16.msra.mxu0 %v6072_v14  ;;  %v548_v14 = vld [vmem:[#allocation5 + $0xcd0] sm:$0xff]  ;;  %v6265_v28 = vcombine.high %v412_v23, %v416_v24 }
 0x182   :  { %3249 = vmatprep.subr.bf16.mxu0 %v6065_v16  ;;  %v6280_v16 = vcombine.low %v428_v62, %v432_v63  ;;  %v404_v30 = vld [vmem:[#allocation5 + $0x850] sm:$0xff] }
 0x183   :  { %3289 = vmatpush2.bf16.msra.mxu1 %v6200_v15  ;;  %v552_v15 = vld [vmem:[#allocation5 + $0xcf0] sm:$0xff] }
 0x184   :  { %3290 = vmatprep.subr.bf16.mxu1 %v6193_v18  ;;  %v6408_v18 = vcombine.low %v556_v0, %v560_v2  ;;  %v6401_v21 = vcombine.high %v548_v14, %v552_v15  ;;  %v408_v32 = vld [vmem:[#allocation5 + $0x870] sm:$0xff] }
 0x185   :  { %3250 = vmatpush2.bf16.msra.mxu0 %v6064_v25  ;;  %v540_v25 = vld [vmem:[#allocation5 + $0xc90] sm:$0xff]  ;;  %v6257_v39 = vcombine.high %v404_v30, %v408_v32 }
 0x186   :  { %3251 = vmatprep.subr.bf16.mxu0 %v6057_v27  ;;  %v6272_v27 = vcombine.low %v420_v12, %v424_v13  ;;  %v396_v41 = vld [vmem:[#allocation5 + $0x810] sm:$0xff] }
 0x187   :  { %3291 = vmatpush2.bf16.msra.mxu1 %v6192_v26  ;;  %v544_v26 = vld [vmem:[#allocation5 + $0xcb0] sm:$0xff] }
 0x188   :  { %3292 = vmatprep.subr.bf16.mxu1 %v6185_v54  ;;  %v6400_v54 = vcombine.low %v548_v14, %v552_v15  ;;  %v6393_v55 = vcombine.high %v540_v25, %v544_v26  ;;  %v400_v43 = vld [vmem:[#allocation5 + $0x830] sm:$0xff]  ;;  %v181_v15 = vld [vmem:[#allocation5 + $0x158] sm:$0xff] }
 0x189   :  { %3252 = vmatpush2.bf16.msra.mxu0 %v6056_v33  ;;  %v532_v33 = vld [vmem:[#allocation5 + $0xc50] sm:$0xff]  ;;  %v6249_v47 = vcombine.high %v396_v41, %v400_v43 }
 0x18a   :  { %3303 = vmatprep.subr.bf16.mxu0 %v6305_v35  ;;  %v6264_v35 = vcombine.low %v412_v23, %v416_v24  ;;  %v516_v49 = vld [vmem:[#allocation5 + $0xbd0] sm:$0xff] }
 0x18b   :  { %3293 = vmatpush2.bf16.msra.mxu1 %v6184_v34  ;;  %v536_v34 = vld [vmem:[#allocation5 + $0xc70] sm:$0xff] }
 0x18c   :  { %3344 = vmatprep.subr.bf16.mxu1 %v6433_v38  ;;  %3254 = vmatmul.mubr.bf16.vlgmr.msra.gmra.mxu0 %v7545_v17  ;;  %v6392_v38 = vcombine.low %v540_v25, %v544_v26  ;;  %v6385_v40 = vcombine.high %v532_v33, %v536_v34  ;;  %v520_v50 = vld [vmem:[#allocation5 + $0xbf0] sm:$0xff] }
 0x18d   :  { %3304 = vmatpush1.bf16.msra.mxu0 %v6304_v44  ;;  %3335 = vmatprep.mubr.bf16.mxu0 %v7556_v29  ;;  %v524_v44 = vld [vmem:[#allocation5 + $0xc10] sm:$0xff]  ;;  %v6369_v62 = vcombine.high %v516_v49, %v520_v50 }
 0x18e   :  { %v7597_v51 = vpop.f32.mrf.mxu1  ;;  %3295 = vmatmul.mubr.bf16.vlgmr.msra.gmra.mxu1 %v7549_v20  ;;  %3305 = vmatprep.subr.bf16.mxu0 %v6297_v46  ;;  %v6256_v46 = vcombine.low %v404_v30, %v408_v32  ;;  %v508_v0 = vld [vmem:[#allocation5 + $0xb90] sm:$0xff] }
 0x18f   :  { %3345 = vmatpush1.bf16.msra.mxu1 %v6432_v45  ;;  %3376 = vmatprep.mubr.bf16.mxu1 %v7451_v37  ;;  %v528_v45 = vld [vmem:[#allocation5 + $0xc30] sm:$0xff] }
 0x190   :  { %v7600_v58 = vpop.f32.mrf.mxu1  ;;  %3346 = vmatprep.subr.bf16.mxu1 %v6425_v22  ;;  %v6384_v22 = vcombine.low %v532_v33, %v536_v34  ;;  %v6377_v48 = vcombine.high %v524_v44, %v528_v45  ;;  %v512_v2 = vld [vmem:[#allocation5 + $0xbb0] sm:$0xff] }
 0x191   :  { %3306 = vmatpush1.bf16.msra.mxu0 %v6296_v53  ;;  %v197_v53 = vld [vmem:[#allocation5 + $0x1d8] sm:$0xff]  ;;  %v500_v12 = vld [vmem:[#allocation5 + $0xb50] sm:$0xff] }
 0x192   :  { %v3054_v5 = vpop.f32.mrf.mxu1  ;;  %3307 = vmatprep.subr.bf16.mxu0 %v6289_v57  ;;  %v6248_v57 = vcombine.low %v396_v41, %v400_v43  ;;  %v504_v13 = vld [vmem:[#allocation5 + $0xb70] sm:$0xff] }
 0x193   :  { %3347 = vmatpush1.bf16.msra.mxu1 %v6424_v56  ;;  %v201_v56 = vld [vmem:[#allocation5 + $0x1f8] sm:$0xff]  ;;  %v6353_v24 = vcombine.high %v500_v12, %v504_v13  ;;  %v6352_v32 = vcombine.low %v500_v12, %v504_v13 }
 0x194   :  { %v3055_v10 = vpop.f32.mrf.mxu1  ;;  %3348 = vmatprep.subr.bf16.mxu1 %v6417_v61  ;;  %v6376_v61 = vcombine.low %v524_v44, %v528_v45  ;;  %v6051_v63 = vcombine.high %v197_v53, %v201_v56  ;;  %v189_v5 = vld [vmem:[#allocation5 + $0x198] sm:$0xff]  ;;  %v476_v44 = vld [vmem:[#allocation5 + $0xa90] sm:$0xff] }
 0x195   :  { %3308 = vmatpush1.bf16.msra.mxu0 %v6288_v6  ;;  %v193_v6 = vld [vmem:[#allocation5 + $0x1b8] sm:$0xff]  ;;  %v6361_v10 = vcombine.high %v508_v0, %v512_v2  ;;  %v480_v45 = vld [vmem:[#allocation5 + $0xab0] sm:$0xff] }
 0x196   :  { %3309 = vmatprep.subr.bf16.mxu0 %v6281_v9  ;;  %v6050_v9 = vcombine.low %v197_v53, %v201_v56  ;;  %v6042_v23 = vcombine.low %v189_v5, %v193_v6  ;;  %v468_v53 = vld [vmem:[#allocation5 + $0xa50] sm:$0xff] }
 0x197   :  { %3349 = vmatpush1.bf16.msra.mxu1 %v6416_v8  ;;  %v6368_v8 = vcombine.low %v516_v49, %v520_v50  ;;  %v6329_v49 = vcombine.high %v476_v44, %v480_v45  ;;  %v472_v56 = vld [vmem:[#allocation5 + $0xa70] sm:$0xff] }
 0x198   :  { %3350 = vmatprep.subr.bf16.mxu1 %v6409_v11  ;;  %v6043_v11 = vcombine.high %v189_v5, %v193_v6  ;;  %v460_v5 = vld [vmem:[#allocation5 + $0xa10] sm:$0xff] }
 0x199   :  { %3310 = vmatpush1.bf16.msra.mxu0 %v6280_v16  ;;  %v185_v16 = vld [vmem:[#allocation5 + $0x178] sm:$0xff]  ;;  %v464_v6 = vld [vmem:[#allocation5 + $0xa30] sm:$0xff] }
 0x19a   :  { %3311 = vmatprep.subr.bf16.mxu0 %v6273_v19  ;;  %v6360_v19 = vcombine.low %v508_v0, %v512_v2  ;;  %v6321_v0 = vcombine.high %v468_v53, %v472_v56  ;;  %v6313_v12 = vcombine.high %v460_v5, %v464_v6 }
 0x19b   :  { %3351 = vmatpush1.bf16.msra.mxu1 %v6408_v18 }
 0x19c   :  { %3352 = vmatprep.subr.bf16.mxu1 %v6401_v21 }
 0x19d   :  { %3312 = vmatpush1.bf16.msra.mxu0 %v6272_v27  ;;  %v6035_v27 = vcombine.high %v181_v15, %v185_v16 }
 0x19e   :  { %3313 = vmatprep.subr.bf16.mxu0 %v6265_v28  ;;  %v496_v28 = vld [vmem:[#allocation5 + $0xb30] sm:$0xff] }
 0x19f   :  { %3353 = vmatpush1.bf16.msra.mxu1 %v6400_v54  ;;  %v492_v54 = vld [vmem:[#allocation5 + $0xb10] sm:$0xff] }
 0x1a0   :  { %3354 = vmatprep.subr.bf16.mxu1 %v6393_v55  ;;  %v177_v55 = vld [vmem:[#allocation5 + $0x138] sm:$0xff]  ;;  %v6345_v34 = vcombine.high %v492_v54, %v496_v28 }
 0x1a1   :  { %3314 = vmatpush1.bf16.msra.mxu0 %v6264_v35  ;;  %v484_v35 = vld [vmem:[#allocation5 + $0xad0] sm:$0xff] }
 0x1a2   :  { %3315 = vmatprep.subr.bf16.mxu0 %v6257_v39  ;;  %v165_v39 = vld [vmem:[#allocation5 + $0xd8] sm:$0xff] }
 0x1a3   :  { %3355 = vmatpush1.bf16.msra.mxu1 %v6392_v38  ;;  %v488_v38 = vld [vmem:[#allocation5 + $0xaf0] sm:$0xff] }
 0x1a4   :  { %3356 = vmatprep.subr.bf16.mxu1 %v6385_v40  ;;  %v169_v40 = vld [vmem:[#allocation5 + $0xf8] sm:$0xff] }
 0x1a5   :  { %3316 = vmatpush1.bf16.msra.mxu0 %v6256_v46  ;;  %v6019_v43 = vcombine.high %v165_v39, %v169_v40  ;;  %v157_v46 = vld [vmem:[#allocation5 + $0x98] sm:$0xff] }
 0x1a6   :  { %3317 = vmatprep.subr.bf16.mxu0 %v6249_v47  ;;  %v6336_v47 = vcombine.low %v484_v35, %v488_v38 }
 0x1a7   :  { %3357 = vmatpush1.bf16.msra.mxu1 %v6384_v22  ;;  %v161_v22 = vld [vmem:[#allocation5 + $0xb8] sm:$0xff] }
 0x1a8   :  { %3358 = vmatprep.subr.bf16.mxu1 %v6377_v48  ;;  %v6018_v48 = vcombine.low %v165_v39, %v169_v40  ;;  %v6011_v50 = vcombine.high %v157_v46, %v161_v22 }
 0x1a9   :  { %3318 = vmatpush1.bf16.msra.mxu0 %v6248_v57  ;;  %v149_v57 = vld [vmem:[#allocation5 + $0x58] sm:$0xff] }
 0x1aa   :  { %3319 = vmatprep.subr.bf16.mxu0 %v6369_v62  ;;  %v6328_v62 = vcombine.low %v476_v44, %v480_v45  ;;  %v237_v44 = vld [vmem:[#allocation5 + $0x318] sm:$0xff] }
 0x1ab   :  { %3359 = vmatpush1.bf16.msra.mxu1 %v6376_v61  ;;  %v153_v61 = vld [vmem:[#allocation5 + $0x78] sm:$0xff] }
 0x1ac   :  { %3385 = vmatprep.subr.bf16.mxu1 %v6051_v63  ;;  %v3009_v14 = vpop.f32.mrf.mxu0  ;;  %v6010_v63 = vcombine.low %v157_v46, %v161_v22  ;;  %v6003_v2 = vcombine.high %v149_v57, %v153_v61  ;;  %v241_v45 = vld [vmem:[#allocation5 + $0x338] sm:$0xff] }
 0x1ad   :  { %v3010_v18 = vadd.f32 %v3009_v14, %v7592_v31  ;;  %3320 = vmatpush2.bf16.msra.mxu0 %v6368_v8  ;;  %v141_v8 = vld [vmem:[#allocation5 + $0x18] sm:$0xff] }
 0x1ae   :  { %3377 = vmatmul.mubr.bf16.vlgmr.msra.gmra.mxu1 %v7572_v4  ;;  %v3011_v21 = vpop.f32.mrf.mxu0  ;;  %3321 = vmatprep.subr.bf16.mxu0 %v6361_v10  ;;  %v173_v4 = vld [vmem:[#allocation5 + $0x118] sm:$0xff]  ;;  %v6320_v10 = vcombine.low %v468_v53, %v472_v56 }
 0x1af   :  { %3386 = vmatpush1.bf16.msra.mxu1 %v6050_v9  ;;  %v7607_v25 = vadd.f32 %v7597_v51, %v3010_v18  ;;  %v3012_v26 = vadd.f32 %v3011_v21, %v7594_v42  ;;  %3417 = vmatprep.mubr.bf16.mxu1 %v7535_v59  ;;  %v6034_v51 = vcombine.low %v181_v15, %v185_v16  ;;  %v145_v9 = vld [vmem:[#allocation5 + $0x38] sm:$0xff] }
 0x1b0   :  { %3387 = vmatprep.subr.bf16.mxu1 %v6043_v11  ;;  %v3013_v31 = vpop.f32.mrf.mxu0  ;;  %v6027_v42 = vcombine.high %v173_v4, %v177_v55  ;;  %v6344_v59 = vcombine.low %v492_v54, %v496_v28  ;;  %v6026_v41 = vcombine.low %v173_v4, %v177_v55  ;;  %v6002_v11 = vcombine.low %v149_v57, %v153_v61  ;;  %v325_v14 = vld [vmem:[#allocation5 + $0x5d8] sm:$0xff] }
 0x1b1   :  { %v7612_v30 = vadd.f32 %v7600_v58, %v3012_v26  ;;  %3322 = vmatpush2.bf16.msra.mxu0 %v6360_v19  ;;  %v6337_v58 = vcombine.high %v484_v35, %v488_v38  ;;  %v5995_v13 = vcombine.high %v141_v8, %v145_v9  ;;  %v329_v15 = vld [vmem:[#allocation5 + $0x5f8] sm:$0xff]  ;;  %v6312_v19 = vcombine.low %v460_v5, %v464_v6 }
 0x1b2   :  { %v3014_v33 = vpop.f32.mrf.mxu0  ;;  %3323 = vmatprep.subr.bf16.mxu0 %v6353_v24  ;;  %v261_v16 = vld [vmem:[#allocation5 + $0x3d8] sm:$0xff]  ;;  %v5994_v21 = vcombine.low %v141_v8, %v145_v9  ;;  %v6178_v31 = vcombine.low %v325_v14, %v329_v15 }
 0x1b3   :  { %3388 = vmatpush1.bf16.msra.mxu1 %v6042_v23  ;;  %v265_v18 = vld [vmem:[#allocation5 + $0x3f8] sm:$0xff]  ;;  %v6179_v23 = vcombine.high %v325_v14, %v329_v15 }
 0x1b4   :  { %3389 = vmatprep.subr.bf16.mxu1 %v6035_v27  ;;  %v6115_v24 = vcombine.high %v261_v16, %v265_v18  ;;  %v317_v26 = vld [vmem:[#allocation5 + $0x598] sm:$0xff]  ;;  %v6114_v4 = vcombine.low %v261_v16, %v265_v18 }
 0x1b5   :  { %3324 = vmatpush2.bf16.msra.mxu0 %v6352_v32  ;;  %v321_v27 = vld [vmem:[#allocation5 + $0x5b8] sm:$0xff] }
 0x1b6   :  { %3325 = vmatprep.subr.bf16.mxu0 %v6345_v34  ;;  %v253_v54 = vld [vmem:[#allocation5 + $0x398] sm:$0xff]  ;;  %v6171_v55 = vcombine.high %v317_v26, %v321_v27  ;;  %v6170_v38 = vcombine.low %v317_v26, %v321_v27 }
 0x1b7   :  { %3390 = vmatpush1.bf16.msra.mxu1 %v6034_v51  ;;  %v257_v28 = vld [vmem:[#allocation5 + $0x3b8] sm:$0xff] }
 0x1b8   :  { %3391 = vmatprep.subr.bf16.mxu1 %v6027_v42  ;;  %v6107_v32 = vcombine.high %v253_v54, %v257_v28  ;;  %v309_v33 = vld [vmem:[#allocation5 + $0x558] sm:$0xff]  ;;  %v6106_v39 = vcombine.low %v253_v54, %v257_v28 }
 0x1b9   :  { %3326 = vmatpush2.bf16.msra.mxu0 %v6344_v59  ;;  %v313_v51 = vld [vmem:[#allocation5 + $0x578] sm:$0xff] }
 0x1ba   :  { %3327 = vmatprep.subr.bf16.mxu0 %v6337_v58  ;;  %v245_v34 = vld [vmem:[#allocation5 + $0x358] sm:$0xff]  ;;  %v6163_v40 = vcombine.high %v309_v33, %v313_v51  ;;  %v6162_v22 = vcombine.low %v309_v33, %v313_v51 }
 0x1bb   :  { %3392 = vmatpush1.bf16.msra.mxu1 %v6026_v41  ;;  %v249_v42 = vld [vmem:[#allocation5 + $0x378] sm:$0xff] }
 0x1bc   :  { %3393 = vmatprep.subr.bf16.mxu1 %v6019_v43  ;;  %v6099_v41 = vcombine.high %v245_v34, %v249_v42  ;;  %v301_v58 = vld [vmem:[#allocation5 + $0x518] sm:$0xff] }
 0x1bd   :  { %3328 = vmatpush2.bf16.msra.mxu0 %v6336_v47  ;;  %v305_v43 = vld [vmem:[#allocation5 + $0x538] sm:$0xff]  ;;  %v6098_v47 = vcombine.low %v245_v34, %v249_v42 }
 0x1be   :  { %3329 = vmatprep.subr.bf16.mxu0 %v6329_v49  ;;  %v6091_v49 = vcombine.high %v237_v44, %v241_v45  ;;  %v297_v53 = vld [vmem:[#allocation5 + $0x4f8] sm:$0xff]  ;;  %v6154_v61 = vcombine.low %v301_v58, %v305_v43 }
 0x1bf   :  { %3394 = vmatpush1.bf16.msra.mxu1 %v6018_v48  ;;  %v6155_v48 = vcombine.high %v301_v58, %v305_v43  ;;  %v229_v56 = vld [vmem:[#allocation5 + $0x2d8] sm:$0xff] }
 0x1c0   :  { %3395 = vmatprep.subr.bf16.mxu1 %v6011_v50  ;;  %v293_v50 = vld [vmem:[#allocation5 + $0x4d8] sm:$0xff] }
 0x1c1   :  { %3330 = vmatpush2.bf16.msra.mxu0 %v6328_v62  ;;  %v233_v57 = vld [vmem:[#allocation5 + $0x2f8] sm:$0xff]  ;;  %v6090_v62 = vcombine.low %v237_v44, %v241_v45  ;;  %v6146_v9 = vcombine.low %v293_v50, %v297_v53 }
 0x1c2   :  { %3331 = vmatprep.subr.bf16.mxu0 %v6321_v0  ;;  %v6083_v0 = vcombine.high %v229_v56, %v233_v57  ;;  %v289_v5 = vld [vmem:[#allocation5 + $0x4b8] sm:$0xff] }
 0x1c3   :  { %3396 = vmatpush1.bf16.msra.mxu1 %v6010_v63  ;;  %v6147_v63 = vcombine.high %v293_v50, %v297_v53  ;;  %v221_v6 = vld [vmem:[#allocation5 + $0x298] sm:$0xff] }
 0x1c4   :  { %3397 = vmatprep.subr.bf16.mxu1 %v6003_v2  ;;  %v285_v2 = vld [vmem:[#allocation5 + $0x498] sm:$0xff] }
 0x1c5   :  { %3332 = vmatpush2.bf16.msra.mxu0 %v6320_v10  ;;  %v225_v8 = vld [vmem:[#allocation5 + $0x2b8] sm:$0xff]  ;;  %v6082_v10 = vcombine.low %v229_v56, %v233_v57  ;;  %v6138_v18 = vcombine.low %v285_v2, %v289_v5 }
 0x1c6   :  { %3333 = vmatprep.subr.bf16.mxu0 %v6313_v12  ;;  %v6075_v12 = vcombine.high %v221_v6, %v225_v8  ;;  %v281_v14 = vld [vmem:[#allocation5 + $0x478] sm:$0xff] }
 0x1c7   :  { %3398 = vmatpush1.bf16.msra.mxu1 %v6002_v11  ;;  %v6139_v11 = vcombine.high %v285_v2, %v289_v5  ;;  %v213_v15 = vld [vmem:[#allocation5 + $0x258] sm:$0xff] }
 0x1c8   :  { %3399 = vmatprep.subr.bf16.mxu1 %v5995_v13  ;;  %v277_v13 = vld [vmem:[#allocation5 + $0x458] sm:$0xff] }
 0x1c9   :  { %3334 = vmatpush2.bf16.msra.mxu0 %v6312_v19  ;;  %v217_v16 = vld [vmem:[#allocation5 + $0x278] sm:$0xff]  ;;  %v6074_v19 = vcombine.low %v221_v6, %v225_v8  ;;  %v6130_v28 = vcombine.low %v277_v13, %v281_v14 }
 0x1ca   :  { %3426 = vmatprep.subr.bf16.mxu0 %v6179_v23  ;;  %v6067_v23 = vcombine.high %v213_v15, %v217_v16  ;;  %v273_v26 = vld [vmem:[#allocation5 + $0x438] sm:$0xff] }
 0x1cb   :  { %3400 = vmatpush1.bf16.msra.mxu1 %v5994_v21  ;;  %v6131_v21 = vcombine.high %v277_v13, %v281_v14  ;;  %v205_v27 = vld [vmem:[#allocation5 + $0x218] sm:$0xff] }
 0x1cc   :  { %3401 = vmatprep.subr.bf16.mxu1 %v6115_v24  ;;  %3336 = vmatmul.mubr.bf16.vlgmr.msra.gmra.mxu0 %v7564_v36  ;;  %v269_v24 = vld [vmem:[#allocation5 + $0x418] sm:$0xff] }
 0x1cd   :  { %3427 = vmatpush1.bf16.msra.mxu0 %v6178_v31  ;;  %3458 = vmatprep.mubr.bf16.mxu0 %v7539_v60  ;;  %v209_v54 = vld [vmem:[#allocation5 + $0x238] sm:$0xff]  ;;  %v6066_v31 = vcombine.low %v213_v15, %v217_v16 }
 0x1ce   :  { %v7615_v35 = vpop.f32.mrf.mxu1  ;;  %3428 = vmatprep.subr.bf16.mxu0 %v6171_v55  ;;  %v598_v55 = vsub.s32 2, %v7578_v52  ;;  %v389_v33 = vld [vmem:[#allocation5 + $0x7d8] sm:$0xff] }
 0x1cf   :  { %3402 = vmatpush2.bf16.msra.mxu1 %v6114_v4  ;;  %v6123_v4 = vcombine.high %v269_v24, %v273_v26  ;;  %v393_v51 = vld [vmem:[#allocation5 + $0x7f8] sm:$0xff] }
 0x1d0   :  { %v7618_v59 = vpop.f32.mrf.mxu1  ;;  %3403 = vmatprep.subr.bf16.mxu1 %v6107_v32  ;;  %v6059_v32 = vcombine.high %v205_v27, %v209_v54  ;;  %v453_v34 = vld [vmem:[#allocation5 + $0x9d8] sm:$0xff] }
 0x1d1   :  { %3429 = vmatpush1.bf16.msra.mxu0 %v6170_v38  ;;  %v457_v42 = vld [vmem:[#allocation5 + $0x9f8] sm:$0xff]  ;;  %v6122_v38 = vcombine.low %v269_v24, %v273_v26 }
 0x1d2   :  { %v3095_v46 = vpop.f32.mrf.mxu1  ;;  %3430 = vmatprep.subr.bf16.mxu0 %v6163_v40  ;;  %v6243_v40 = vcombine.high %v389_v33, %v393_v51  ;;  %v6307_v58 = vcombine.high %v453_v34, %v457_v42  ;;  %v381_v43 = vld [vmem:[#allocation5 + $0x798] sm:$0xff] }
 0x1d3   :  { %3404 = vmatpush2.bf16.msra.mxu1 %v6106_v39  ;;  %v6058_v39 = vcombine.low %v205_v27, %v209_v54  ;;  %v385_v44 = vld [vmem:[#allocation5 + $0x7b8] sm:$0xff] }
 0x1d4   :  { %v3096_v60 = vpop.f32.mrf.mxu1  ;;  %3405 = vmatprep.subr.bf16.mxu1 %v6099_v41  ;;  %v599_v41 = vrot.slane %v7583_v3, %v598_v55  ;;  %v445_v45 = vld [vmem:[#allocation5 + $0x998] sm:$0xff] }
 0x1d5   :  { %3431 = vmatpush1.bf16.msra.mxu0 %v6162_v22  ;;  %v449_v46 = vld [vmem:[#allocation5 + $0x9b8] sm:$0xff]  ;;  %v6242_v22 = vcombine.low %v389_v33, %v393_v51 }
 0x1d6   :  { %3432 = vmatprep.subr.bf16.mxu0 %v6155_v48  ;;  %v6235_v48 = vcombine.high %v381_v43, %v385_v44  ;;  %v3092_v60 = vadd.f32 %v7615_v35, %v599_v41  ;;  %v373_v50 = vld [vmem:[#allocation5 + $0x758] sm:$0xff] }
 0x1d7   :  { %3406 = vmatpush2.bf16.msra.mxu1 %v6098_v47  ;;  %v6306_v47 = vcombine.low %v453_v34, %v457_v42  ;;  %v377_v53 = vld [vmem:[#allocation5 + $0x778] sm:$0xff] }
 0x1d8   :  { %3407 = vmatprep.subr.bf16.mxu1 %v6091_v49  ;;  %v6299_v49 = vcombine.high %v445_v45, %v449_v46  ;;  %v437_v3 = vld [vmem:[#allocation5 + $0x958] sm:$0xff]  ;;  %v6227_v2 = vcombine.high %v373_v50, %v377_v53 }
 0x1d9   :  { %3433 = vmatpush1.bf16.msra.mxu0 %v6154_v61  ;;  %v441_v57 = vld [vmem:[#allocation5 + $0x978] sm:$0xff] }
 0x1da   :  { %3434 = vmatprep.subr.bf16.mxu0 %v6147_v63  ;;  %v6291_v35 = vcombine.high %v437_v3, %v441_v57  ;;  %v365_v5 = vld [vmem:[#allocation5 + $0x718] sm:$0xff] }
 0x1db   :  { %3408 = vmatpush2.bf16.msra.mxu1 %v6090_v62  ;;  %v6234_v62 = vcombine.low %v381_v43, %v385_v44  ;;  %v369_v6 = vld [vmem:[#allocation5 + $0x738] sm:$0xff] }
 0x1dc   :  { %3409 = vmatprep.subr.bf16.mxu1 %v6083_v0  ;;  %v6298_v0 = vcombine.low %v445_v45, %v449_v46  ;;  %v6219_v13 = vcombine.high %v365_v5, %v369_v6  ;;  %v357_v15 = vld [vmem:[#allocation5 + $0x6d8] sm:$0xff] }
 0x1dd   :  { %3435 = vmatpush1.bf16.msra.mxu0 %v6146_v9  ;;  %v429_v9 = vld [vmem:[#allocation5 + $0x918] sm:$0xff] }
 0x1de   :  { %3436 = vmatprep.subr.bf16.mxu0 %v6139_v11  ;;  %v6226_v11 = vcombine.low %v373_v50, %v377_v53  ;;  %v361_v16 = vld [vmem:[#allocation5 + $0x6f8] sm:$0xff] }
 0x1df   :  { %3410 = vmatpush2.bf16.msra.mxu1 %v6082_v10  ;;  %v433_v10 = vld [vmem:[#allocation5 + $0x938] sm:$0xff] }
 0x1e0   :  { %3411 = vmatprep.subr.bf16.mxu1 %v6075_v12  ;;  %v6290_v12 = vcombine.low %v437_v3, %v441_v57  ;;  %v6283_v14 = vcombine.high %v429_v9, %v433_v10  ;;  %v349_v26 = vld [vmem:[#allocation5 + $0x698] sm:$0xff] }
 0x1e1   :  { %3437 = vmatpush1.bf16.msra.mxu0 %v6138_v18  ;;  %v421_v18 = vld [vmem:[#allocation5 + $0x8d8] sm:$0xff] }
 0x1e2   :  { %3438 = vmatprep.subr.bf16.mxu0 %v6131_v21  ;;  %v6218_v21 = vcombine.low %v365_v5, %v369_v6  ;;  %v353_v27 = vld [vmem:[#allocation5 + $0x6b8] sm:$0xff] }
 0x1e3   :  { %3412 = vmatpush2.bf16.msra.mxu1 %v6074_v19  ;;  %v425_v19 = vld [vmem:[#allocation5 + $0x8f8] sm:$0xff] }
 0x1e4   :  { %3413 = vmatprep.subr.bf16.mxu1 %v6067_v23  ;;  %v6211_v23 = vcombine.high %v357_v15, %v361_v16  ;;  %v6275_v24 = vcombine.high %v421_v18, %v425_v19  ;;  %v413_v54 = vld [vmem:[#allocation5 + $0x898] sm:$0xff] }
 0x1e5   :  { %3439 = vmatpush1.bf16.msra.mxu0 %v6130_v28  ;;  %v417_v28 = vld [vmem:[#allocation5 + $0x8b8] sm:$0xff] }
 0x1e6   :  { %3440 = vmatprep.subr.bf16.mxu0 %v6123_v4  ;;  %v6274_v4 = vcombine.low %v421_v18, %v425_v19  ;;  %v6267_v33 = vcombine.high %v413_v54, %v417_v28  ;;  %v341_v51 = vld [vmem:[#allocation5 + $0x658] sm:$0xff] }
 0x1e7   :  { %3414 = vmatpush2.bf16.msra.mxu1 %v6066_v31  ;;  %v6210_v31 = vcombine.low %v357_v15, %v361_v16  ;;  %v345_v34 = vld [vmem:[#allocation5 + $0x678] sm:$0xff] }
 0x1e8   :  { %3415 = vmatprep.subr.bf16.mxu1 %v6059_v32  ;;  %v6203_v32 = vcombine.high %v349_v26, %v353_v27  ;;  %v405_v42 = vld [vmem:[#allocation5 + $0x858] sm:$0xff]  ;;  %v6195_v41 = vcombine.high %v341_v51, %v345_v34 }
 0x1e9   :  { %3441 = vmatpush1.bf16.msra.mxu0 %v6122_v38  ;;  %v409_v38 = vld [vmem:[#allocation5 + $0x878] sm:$0xff] }
 0x1ea   :  { %3442 = vmatprep.subr.bf16.mxu0 %v6243_v40  ;;  %v6266_v40 = vcombine.low %v413_v54, %v417_v28  ;;  %v333_v43 = vld [vmem:[#allocation5 + $0x618] sm:$0xff] }
 0x1eb   :  { %3416 = vmatpush2.bf16.msra.mxu1 %v6058_v39  ;;  %v6202_v39 = vcombine.low %v349_v26, %v353_v27  ;;  %v337_v44 = vld [vmem:[#allocation5 + $0x638] sm:$0xff] }
 0x1ec   :  { %3467 = vmatprep.subr.bf16.mxu1 %v6307_v58  ;;  %v3132_v56 = vpop.f32.mrf.mxu0  ;;  %v6259_v58 = vcombine.high %v405_v42, %v409_v38  ;;  %v397_v45 = vld [vmem:[#allocation5 + $0x818] sm:$0xff]  ;;  %v6186_v3 = vcombine.low %v333_v43, %v337_v44 }
 0x1ed   :  { %v7625_v61 = vadd.f32 %v3132_v56, %v3092_v60  ;;  %3443 = vmatpush2.bf16.msra.mxu0 %v6242_v22  ;;  %v401_v46 = vld [vmem:[#allocation5 + $0x838] sm:$0xff]  ;;  %v6194_v22 = vcombine.low %v341_v51, %v345_v34 }
 0x1ee   :  { %3418 = vmatmul.mubr.bf16.vlgmr.msra.gmra.mxu1 %v7545_v17  ;;  %v7628_v63 = vpop.f32.mrf.mxu0  ;;  %3444 = vmatprep.subr.bf16.mxu0 %v6235_v48  ;;  %v6187_v48 = vcombine.high %v333_v43, %v337_v44  ;;  %v6251_v60 = vcombine.high %v397_v45, %v401_v46  ;;  %v585_v50 = vld [vmem:[#allocation5 + $0xdf8] sm:$0xff]  ;;  %v6250_v57 = vcombine.low %v397_v45, %v401_v46 }
 0x1ef   :  { %3468 = vmatpush1.bf16.msra.mxu1 %v6306_v47  ;;  %3499 = vmatprep.mubr.bf16.mxu1 %v7556_v29  ;;  %v6282_v29 = vcombine.low %v429_v9, %v433_v10  ;;  %v6258_v47 = vcombine.low %v405_v42, %v409_v38  ;;  %v517_v53 = vld [vmem:[#allocation5 + $0xbd8] sm:$0xff] }
 0x1f0   :  { %3469 = vmatprep.subr.bf16.mxu1 %v6299_v49  ;;  %v3136_v8 = vpop.f32.mrf.mxu0  ;;  %v581_v49 = vld [vmem:[#allocation5 + $0xdd8] sm:$0xff] }
 0x1f1   :  { %3445 = vmatpush2.bf16.msra.mxu0 %v6234_v62  ;;  %v521_v56 = vld [vmem:[#allocation5 + $0xbf8] sm:$0xff]  ;;  %v6435_v62 = vcombine.high %v581_v49, %v585_v50  ;;  %v6434_v8 = vcombine.low %v581_v49, %v585_v50  ;;  %v7641_v49 = vld [vmem:[#allocation7] sm:$0xff] }
 0x1f2   :  { %v3137_v17 = vpop.f32.mrf.mxu0  ;;  %3446 = vmatprep.subr.bf16.mxu0 %v6227_v2  ;;  %v573_v2 = vld [vmem:[#allocation5 + $0xd98] sm:$0xff]  ;;  %v6370_v9 = vcombine.low %v517_v53, %v521_v56 }
 0x1f3   :  { %3470 = vmatpush1.bf16.msra.mxu1 %v6298_v0  ;;  %v6371_v0 = vcombine.high %v517_v53, %v521_v56  ;;  %v509_v5 = vld [vmem:[#allocation5 + $0xb98] sm:$0xff] }
 0x1f4   :  { %3471 = vmatprep.subr.bf16.mxu1 %v6291_v35  ;;  %v577_v35 = vld [vmem:[#allocation5 + $0xdb8] sm:$0xff] }
 0x1f5   :  { %3447 = vmatpush2.bf16.msra.mxu0 %v6226_v11  ;;  %v513_v6 = vld [vmem:[#allocation5 + $0xbb8] sm:$0xff]  ;;  %v6427_v10 = vcombine.high %v573_v2, %v577_v35  ;;  %v6426_v18 = vcombine.low %v573_v2, %v577_v35 }
 0x1f6   :  { %3448 = vmatprep.subr.bf16.mxu0 %v6219_v13  ;;  %v6363_v11 = vcombine.high %v509_v5, %v513_v6  ;;  %v565_v17 = vld [vmem:[#allocation5 + $0xd58] sm:$0xff] }
 0x1f7   :  { %3472 = vmatpush1.bf16.msra.mxu1 %v6290_v12  ;;  %v569_v12 = vld [vmem:[#allocation5 + $0xd78] sm:$0xff] }
 0x1f8   :  { %3473 = vmatprep.subr.bf16.mxu1 %v6283_v14  ;;  %v501_v14 = vld [vmem:[#allocation5 + $0xb58] sm:$0xff] }
 0x1f9   :  { %3449 = vmatpush2.bf16.msra.mxu0 %v6218_v21  ;;  %v505_v15 = vld [vmem:[#allocation5 + $0xb78] sm:$0xff] }
 0x1fa   :  { %3450 = vmatprep.subr.bf16.mxu0 %v6211_v23  ;;  %v6419_v23 = vcombine.high %v565_v17, %v569_v12  ;;  %v6355_v26 = vcombine.high %v501_v14, %v505_v15  ;;  %v561_v27 = vld [vmem:[#allocation5 + $0xd38] sm:$0xff] }
 0x1fb   :  { %3474 = vmatpush1.bf16.msra.mxu1 %v6282_v29  ;;  %v6362_v29 = vcombine.low %v509_v5, %v513_v6  ;;  %v549_v38 = vld [vmem:[#allocation5 + $0xcd8] sm:$0xff] }
 0x1fc   :  { %3475 = vmatprep.subr.bf16.mxu1 %v6275_v24  ;;  %v469_v2 = vld [vmem:[#allocation5 + $0xa58] sm:$0xff] }
 0x1fd   :  { %3451 = vmatpush2.bf16.msra.mxu0 %v6210_v31  ;;  %v493_v31 = vld [vmem:[#allocation5 + $0xb18] sm:$0xff] }
 0x1fe   :  { %3452 = vmatprep.subr.bf16.mxu0 %v6203_v32  ;;  %v473_v35 = vld [vmem:[#allocation5 + $0xa78] sm:$0xff] }
 0x1ff   :  { %3476 = vmatpush1.bf16.msra.mxu1 %v6274_v4  ;;  %v497_v4 = vld [vmem:[#allocation5 + $0xb38] sm:$0xff] }
 0x200   :  { %3477 = vmatprep.subr.bf16.mxu1 %v6267_v33  ;;  %v6354_v33 = vcombine.low %v501_v14, %v505_v15  ;;  %v6347_v42 = vcombine.high %v493_v31, %v497_v4  ;;  %v6346_v44 = vcombine.low %v493_v31, %v497_v4  ;;  %v465_v14 = vld [vmem:[#allocation5 + $0xa38] sm:$0xff] }
 0x201   :  { %3453 = vmatpush2.bf16.msra.mxu0 %v6202_v39  ;;  %v553_v39 = vld [vmem:[#allocation5 + $0xcf8] sm:$0xff] }
 0x202   :  { %3454 = vmatprep.subr.bf16.mxu0 %v6195_v41  ;;  %v489_v41 = vld [vmem:[#allocation5 + $0xaf8] sm:$0xff]  ;;  %v6403_v45 = vcombine.high %v549_v38, %v553_v39  ;;  %v6402_v53 = vcombine.low %v549_v38, %v553_v39 }
 0x203   :  { %3478 = vmatpush1.bf16.msra.mxu1 %v6266_v40  ;;  %v485_v40 = vld [vmem:[#allocation5 + $0xad8] sm:$0xff] }
 0x204   :  { %3479 = vmatprep.subr.bf16.mxu1 %v6259_v58  ;;  %v602_v58 = vsub.s32 3, %v7578_v52  ;;  %v6339_v46 = vcombine.high %v485_v40, %v489_v41  ;;  %v6338_v56 = vcombine.low %v485_v40, %v489_v41  ;;  %v6783_v31 = vld [vmem:[#allocation8 + $0x2e0] ss:$16 sps:$4 sm:$0xff]   ;;  %v6788_v4 = vld [vmem:[#allocation8 + $0xc4] ss:$16 sps:$4 sm:$0xff]  }
 0x205   :  { %3455 = vmatpush2.bf16.msra.mxu0 %v6194_v22  ;;  %v541_v22 = vld [vmem:[#allocation5 + $0xc98] sm:$0xff] }
 0x206   :  { %3456 = vmatprep.subr.bf16.mxu0 %v6187_v48  ;;  %v477_v48 = vld [vmem:[#allocation5 + $0xa98] sm:$0xff]  ;;  %v603_v50 = vrot.slane %v7641_v49, %v602_v58 }
 0x207   :  { %3480 = vmatpush1.bf16.msra.mxu1 %v6258_v47  ;;  %v545_v47 = vld [vmem:[#allocation5 + $0xcb8] sm:$0xff] }
 0x208   :  { %3481 = vmatprep.subr.bf16.mxu1 %v6251_v60  ;;  %v481_v60 = vld [vmem:[#allocation5 + $0xab8] sm:$0xff]  ;;  %v3094_v5 = vadd.f32 %v7618_v59, %v603_v50  ;;  %v6394_v6 = vcombine.low %v541_v22, %v545_v47  ;;  %v6322_v59 = vcombine.low %v469_v2, %v473_v35 }
 0x209   :  { %3457 = vmatpush2.bf16.msra.mxu0 %v6186_v3  ;;  %v6395_v3 = vcombine.high %v541_v22, %v545_v47  ;;  %v6795_v38 = vld [vmem:[#allocation8 + $0x2a0] ss:$16 sps:$4 sm:$0xff]   ;;  %v6800_v39 = vld [vmem:[#allocation8 + $0x84] ss:$16 sps:$4 sm:$0xff]  }
 0x20a   :  { %3508 = vmatprep.subr.bf16.mxu0 %v6435_v62  ;;  %v533_v62 = vld [vmem:[#allocation5 + $0xc58] sm:$0xff] }
 0x20b   :  { %3482 = vmatpush1.bf16.msra.mxu1 %v6250_v57  ;;  %v6331_v57 = vcombine.high %v477_v48, %v481_v60  ;;  %v6798_v40 = vld [vmem:[#allocation8 + $0x80] ss:$16 sps:$4 sm:$0xff]   ;;  %v6812_v22 = vld [vmem:[#allocation8 + $0x44] ss:$16 sps:$4 sm:$0xff]  }
 0x20c   :  { %3483 = vmatprep.subr.bf16.mxu1 %v6371_v0  ;;  %v3214_v13 = vpop.f32.mrf.mxu0  ;;  %3459 = vmatmul.mubr.bf16.vlgmr.msra.gmra.mxu0 %v7549_v20  ;;  %v557_v20 = vld [vmem:[#allocation5 + $0xd18] sm:$0xff] }
 0x20d   :  { %3509 = vmatpush1.bf16.msra.mxu0 %v6434_v8  ;;  %3540 = vmatprep.mubr.bf16.mxu0 %v7451_v37  ;;  %v6411_v51 = vcombine.high %v557_v20, %v561_v27  ;;  %v6410_v43 = vcombine.low %v557_v20, %v561_v27  ;;  %v537_v0 = vld [vmem:[#allocation5 + $0xc78] sm:$0xff]  ;;  %v6330_v8 = vcombine.low %v477_v48, %v481_v60 }
 0x20e   :  { %v3173_v16 = vpop.f32.mrf.mxu1  ;;  %v7634_v21 = vpop.f32.mrf.mxu0  ;;  %3510 = vmatprep.subr.bf16.mxu0 %v6427_v10  ;;  %v3135_v10 = vadd.f32 %v7628_v63, %v3094_v5  ;;  %v6785_v20 = vld [vmem:[#allocation8 + $0x2e4] ss:$16 sps:$4 sm:$0xff]   ;;  %v6801_v41 = vld [vmem:[#allocation8 + $0x280] ss:$16 sps:$4 sm:$0xff]  }
 0x20f   :  { %v3174_v19 = vadd.f32 %v3173_v16, %v7625_v61  ;;  %3484 = vmatpush2.bf16.msra.mxu1 %v6370_v9  ;;  %v6418_v61 = vcombine.low %v565_v17, %v569_v12  ;;  %v6387_v9 = vcombine.high %v533_v62, %v537_v0  ;;  %v525_v17 = vld [vmem:[#allocation5 + $0xc18] sm:$0xff]  ;;  %v6386_v16 = vcombine.low %v533_v62, %v537_v0 }
 0x210   :  { %v7636_v24 = vpop.f32.mrf.mxu1  ;;  %3485 = vmatprep.subr.bf16.mxu1 %v6363_v11  ;;  %v3218_v28 = vpop.f32.mrf.mxu0  ;;  %v6323_v11 = vcombine.high %v469_v2, %v473_v35  ;;  %v529_v12 = vld [vmem:[#allocation5 + $0xc38] sm:$0xff]  ;;  %v606_v2 = vsub.s32 4, %v7578_v52 }
 0x211   :  { %v7638_v54 = vadd.f32 %v3214_v13, %v3174_v19  ;;  %3511 = vmatpush1.bf16.msra.mxu0 %v6426_v18  ;;  %v461_v13 = vld [vmem:[#allocation5 + $0xa18] sm:$0xff]  ;;  %v3176_v15 = vadd.f32 %v7636_v24, %v3135_v10  ;;  %v6379_v18 = vcombine.high %v525_v17, %v529_v12  ;;  %v6378_v63 = vcombine.low %v525_v17, %v529_v12 }
 0x212   :  { %v3177_v37 = vpop.f32.mrf.mxu1  ;;  %v3219_v32 = vpop.f32.mrf.mxu0  ;;  %3512 = vmatprep.subr.bf16.mxu0 %v6419_v23  ;;  %v6315_v19 = vcombine.high %v461_v13, %v465_v14  ;;  %v6314_v23 = vcombine.low %v461_v13, %v465_v14  ;;  %v3550_v24 = vmax.f32 %v7612_v30, 0.0  ;;  %v6780_v28 = vld [vmem:[#allocation8 + $0xe0] ss:$16 sps:$4 sm:$0xff]   ;;  %v6815_v47 = vld [vmem:[#allocation8 + $0x244] ss:$16 sps:$4 sm:$0xff]  }
 0x213   :  { %3486 = vmatpush2.bf16.msra.mxu1 %v6362_v29  ;;  %v3217_v29 = vadd.f32 %v7634_v21, %v3176_v15  ;;  %v7266_v21 = vld [vmem:[#allocation3 + $0x18] ss:$0 sps:$4 sm:$0xff]   ;;  %v6789_v30 = vld [vmem:[#allocation8 + $0x2c0] ss:$16 sps:$4 sm:$0xff]  }
 0x214   :  { %v3178_v34 = vpop.f32.mrf.mxu1  ;;  %3487 = vmatprep.subr.bf16.mxu1 %v6355_v26  ;;  %v6782_v26 = vld [vmem:[#allocation8 + $0xe4] ss:$16 sps:$4 sm:$0xff]   ;;  %v7651_v37 = vpack.c.bf16 %v3550_v24, %v3550_v24  ;;  %v6810_v48 = vld [vmem:[#allocation8 + $0x40] ss:$16 sps:$4 sm:$0xff]  }
 0x215   :  { %3513 = vmatpush1.bf16.msra.mxu0 %v6418_v61  ;;  %v3552_v27 = vmax.f32 %v3217_v29, 0.0  ;;  %v6791_v61 = vld [vmem:[#allocation8 + $0x2c4] ss:$16 sps:$4 sm:$0xff]   ;;  %v6813_v60 = vld [vmem:[#allocation8 + $0x240] ss:$16 sps:$4 sm:$0xff]  }
 0x216   :  { %3514 = vmatprep.subr.bf16.mxu0 %v6411_v51  ;;  %v6794_v51 = vld [vmem:[#allocation8 + $0xa4] ss:$16 sps:$4 sm:$0xff]   ;;  %v6822_v0 = vld [vmem:[#allocation8] ss:$16 sps:$4 sm:$0xff]  }
 0x217   :  { %3488 = vmatpush2.bf16.msra.mxu1 %v6354_v33  ;;  %v7653_v32 = vpack.c.bf16 %v3552_v27, %v3552_v27  ;;  %v6786_v33 = vld [vmem:[#allocation8 + $0xc0] ss:$16 sps:$4 sm:$0xff]   ;;  %v6797_v34 = vld [vmem:[#allocation8 + $0x2a4] ss:$16 sps:$4 sm:$0xff]  }
 0x218   :  { %3489 = vmatprep.subr.bf16.mxu1 %v6347_v42  ;;  %v6792_v42 = vld [vmem:[#allocation8 + $0xa0] ss:$16 sps:$4 sm:$0xff]   ;;  %v6818_v50 = vld [vmem:[#allocation8 + $0x24] ss:$16 sps:$4 sm:$0xff]  }
 0x219   :  { %3515 = vmatpush1.bf16.msra.mxu0 %v6410_v43  ;;  %v6806_v43 = vld [vmem:[#allocation8 + $0x64] ss:$16 sps:$4 sm:$0xff]   ;;  %v6825_v35 = vld [vmem:[#allocation8 + $0x200] ss:$16 sps:$4 sm:$0xff]  }
 0x21a   :  { %3516 = vmatprep.subr.bf16.mxu0 %v6403_v45  ;;  %v6804_v45 = vld [vmem:[#allocation8 + $0x60] ss:$16 sps:$4 sm:$0xff]   ;;  %v6827_v62 = vld [vmem:[#allocation8 + $0x204] ss:$16 sps:$4 sm:$0xff]  }
 0x21b   :  { %3490 = vmatpush2.bf16.msra.mxu1 %v6346_v44  ;;  %v6809_v44 = vld [vmem:[#allocation8 + $0x264] ss:$16 sps:$4 sm:$0xff]   ;;  %v6831_v10 = vld [vmem:[#allocation8 + $0x3e0] ss:$16 sps:$4 sm:$0xff]  }
 0x21c   :  { %3491 = vmatprep.subr.bf16.mxu1 %v6339_v46  ;;  %v6807_v46 = vld [vmem:[#allocation8 + $0x260] ss:$16 sps:$4 sm:$0xff]   ;;  %v6830_v5 = vld [vmem:[#allocation8 + $0x1e4] ss:$16 sps:$4 sm:$0xff]  }
 0x21d   :  { %3517 = vmatpush1.bf16.msra.mxu0 %v6402_v53  ;;  %v6821_v53 = vld [vmem:[#allocation8 + $0x224] ss:$16 sps:$4 sm:$0xff]   ;;  %v6834_v15 = vld [vmem:[#allocation8 + $0x1c0] ss:$16 sps:$4 sm:$0xff]  }
 0x21e   :  { %3518 = vmatprep.subr.bf16.mxu0 %v6395_v3  ;;  %v6819_v3 = vld [vmem:[#allocation8 + $0x220] ss:$16 sps:$4 sm:$0xff]   ;;  %v6839_v17 = vld [vmem:[#allocation8 + $0x3c4] ss:$16 sps:$4 sm:$0xff]  }
 0x21f   :  { %3492 = vmatpush2.bf16.msra.mxu1 %v6338_v56  ;;  %v6816_v56 = vld [vmem:[#allocation8 + $0x20] ss:$16 sps:$4 sm:$0xff]  }
 0x220   :  { %3493 = vmatprep.subr.bf16.mxu1 %v6331_v57  ;;  %v6824_v57 = vld [vmem:[#allocation8 + $0x4] ss:$16 sps:$4 sm:$0xff]   ;;  %v6843_v27 = vld [vmem:[#allocation8 + $0x3a0] ss:$16 sps:$4 sm:$0xff]  }
 0x221   :  { %3519 = vmatpush1.bf16.msra.mxu0 %v6394_v6  ;;  %v6833_v6 = vld [vmem:[#allocation8 + $0x3e4] ss:$16 sps:$4 sm:$0xff]  }
 0x222   :  { %3520 = vmatprep.subr.bf16.mxu0 %v6387_v9  ;;  %v6828_v9 = vld [vmem:[#allocation8 + $0x1e0] ss:$16 sps:$4 sm:$0xff]  }
 0x223   :  { %3494 = vmatpush2.bf16.msra.mxu1 %v6330_v8  ;;  %v607_v8 = vrot.slane %v7641_v49, %v606_v2 }
 0x224   :  { %3495 = vmatprep.subr.bf16.mxu1 %v6323_v11  ;;  %v6836_v11 = vld [vmem:[#allocation8 + $0x1c4] ss:$16 sps:$4 sm:$0xff]  }
 0x225   :  { %3521 = vmatpush1.bf16.msra.mxu0 %v6386_v16 }
 0x226   :  { %3522 = vmatprep.subr.bf16.mxu0 %v6379_v18  ;;  %v6842_v18 = vld [vmem:[#allocation8 + $0x1a4] ss:$16 sps:$4 sm:$0xff]  }
 0x227   :  { %3496 = vmatpush2.bf16.msra.mxu1 %v6322_v59  ;;  %v6837_v59 = vld [vmem:[#allocation8 + $0x3c0] ss:$16 sps:$4 sm:$0xff]  }
 0x228   :  { %3497 = vmatprep.subr.bf16.mxu1 %v6315_v19 }
 0x229   :  { %3523 = vmatpush1.bf16.msra.mxu0 %v6378_v63  ;;  %v6845_v63 = vld [vmem:[#allocation8 + $0x3a4] ss:$16 sps:$4 sm:$0xff]  }
 0x22a   :  { %5123 = vmatprep.subr.bf16.mxu0 %v6782_v26 }
 0x22b   :  { %3498 = vmatpush2.bf16.msra.mxu1 %v6314_v23 }
 0x22c   :  { %5164 = vmatprep.subr.bf16.mxu1 %v6785_v20  ;;  %3541 = vmatmul.mubr.bf16.vlgmr.msra.gmra.mxu0 %v7266_v21  ;;  %v6840_v20 = vld [vmem:[#allocation8 + $0x1a0] ss:$16 sps:$4 sm:$0xff]  }
 0x22d   :  { %5124 = vmatpush1.bf16.msra.mxu0 %v6780_v28  ;;  %5155 = vmatprep.mubr.bf16.mxu0 %v7651_v37  ;;  %v6848_v28 = vld [vmem:[#allocation8 + $0x184] ss:$16 sps:$4 sm:$0xff]   ;;  %v6846_v21 = vld [vmem:[#allocation8 + $0x180] ss:$16 sps:$4 sm:$0xff]  }
 0x22e   :  { %3500 = vmatmul.mubr.bf16.vlgmr.msra.gmra.mxu1 %v7564_v36  ;;  %5125 = vmatprep.subr.bf16.mxu0 %v6788_v4  ;;  %v6803_v36 = vld [vmem:[#allocation8 + $0x284] ss:$16 sps:$4 sm:$0xff]  }
 0x22f   :  { %5165 = vmatpush1.bf16.msra.mxu1 %v6783_v31  ;;  %5196 = vmatprep.mubr.bf16.mxu1 %v7653_v32  ;;  %v6851_v4 = vld [vmem:[#allocation8 + $0x384] ss:$16 sps:$4 sm:$0xff]  }
 0x230   :  { %5166 = vmatprep.subr.bf16.mxu1 %v6791_v61  ;;  %v6849_v61 = vld [vmem:[#allocation8 + $0x380] ss:$16 sps:$4 sm:$0xff]  }
 0x231   :  { %5126 = vmatpush1.bf16.msra.mxu0 %v6786_v33  ;;  %v6854_v33 = vld [vmem:[#allocation8 + $0x164] ss:$16 sps:$4 sm:$0xff]  }
 0x232   :  { %5127 = vmatprep.subr.bf16.mxu0 %v6794_v51  ;;  %v6852_v51 = vld [vmem:[#allocation8 + $0x160] ss:$16 sps:$4 sm:$0xff]  }
 0x233   :  { %5167 = vmatpush1.bf16.msra.mxu1 %v6789_v30  ;;  %v6857_v30 = vld [vmem:[#allocation8 + $0x364] ss:$16 sps:$4 sm:$0xff]  }
 0x234   :  { %5168 = vmatprep.subr.bf16.mxu1 %v6797_v34  ;;  %v6855_v34 = vld [vmem:[#allocation8 + $0x360] ss:$16 sps:$4 sm:$0xff]  }
 0x235   :  { %5128 = vmatpush1.bf16.msra.mxu0 %v6792_v42  ;;  %v6860_v42 = vld [vmem:[#allocation8 + $0x144] ss:$16 sps:$4 sm:$0xff]  }
 0x236   :  { %5129 = vmatprep.subr.bf16.mxu0 %v6800_v39  ;;  %v6858_v39 = vld [vmem:[#allocation8 + $0x140] ss:$16 sps:$4 sm:$0xff]  }
 0x237   :  { %5169 = vmatpush1.bf16.msra.mxu1 %v6795_v38  ;;  %v6863_v38 = vld [vmem:[#allocation8 + $0x344] ss:$16 sps:$4 sm:$0xff]  }
 0x238   :  { %5170 = vmatprep.subr.bf16.mxu1 %v6803_v36  ;;  %v6861_v36 = vld [vmem:[#allocation8 + $0x340] ss:$16 sps:$4 sm:$0xff]  }
 0x239   :  { %5130 = vmatpush1.bf16.msra.mxu0 %v6798_v40  ;;  %v6866_v40 = vld [vmem:[#allocation8 + $0x124] ss:$16 sps:$4 sm:$0xff]  }
 0x23a   :  { %5131 = vmatprep.subr.bf16.mxu0 %v6806_v43  ;;  %v6864_v43 = vld [vmem:[#allocation8 + $0x120] ss:$16 sps:$4 sm:$0xff]  }
 0x23b   :  { %5171 = vmatpush1.bf16.msra.mxu1 %v6801_v41  ;;  %v6869_v41 = vld [vmem:[#allocation8 + $0x324] ss:$16 sps:$4 sm:$0xff]  }
 0x23c   :  { %5172 = vmatprep.subr.bf16.mxu1 %v6809_v44  ;;  %v6867_v44 = vld [vmem:[#allocation8 + $0x320] ss:$16 sps:$4 sm:$0xff]  }
 0x23d   :  { %5132 = vmatpush1.bf16.msra.mxu0 %v6804_v45  ;;  %v6872_v45 = vld [vmem:[#allocation8 + $0x104] ss:$16 sps:$4 sm:$0xff]  }
 0x23e   :  { %5133 = vmatprep.subr.bf16.mxu0 %v6812_v22  ;;  %v6870_v22 = vld [vmem:[#allocation8 + $0x100] ss:$16 sps:$4 sm:$0xff]  }
 0x23f   :  { %5173 = vmatpush1.bf16.msra.mxu1 %v6807_v46  ;;  %v6875_v46 = vld [vmem:[#allocation8 + $0x304] ss:$16 sps:$4 sm:$0xff]  }
 0x240   :  { %5174 = vmatprep.subr.bf16.mxu1 %v6815_v47  ;;  %v3549_v47 = vmax.f32 %v7607_v25, 0.0  ;;  %v6941_v25 = vld [vmem:[#allocation8 + $0x6c4] ss:$16 sps:$4 sm:$0xff]  }
 0x241   :  { %5134 = vmatpush1.bf16.msra.mxu0 %v6810_v48  ;;  %v6873_v48 = vld [vmem:[#allocation8 + $0x300] ss:$16 sps:$4 sm:$0xff]  }
 0x242   :  { %5135 = vmatprep.subr.bf16.mxu0 %v6818_v50  ;;  %v3551_v50 = vmax.f32 %v7638_v54, 0.0  ;;  %v6879_v54 = vld [vmem:[#allocation8 + $0x4c0] ss:$16 sps:$4 sm:$0xff]  }
 0x243   :  { %5175 = vmatpush1.bf16.msra.mxu1 %v6813_v60  ;;  %v6878_v60 = vld [vmem:[#allocation8 + $0x4e4] ss:$16 sps:$4 sm:$0xff]  }
 0x244   :  { %5176 = vmatprep.subr.bf16.mxu1 %v6821_v53  ;;  %v6935_v53 = vld [vmem:[#allocation8 + $0x6e4] ss:$16 sps:$4 sm:$0xff]  }
 0x245   :  { %5136 = vmatpush1.bf16.msra.mxu0 %v6816_v56  ;;  %v6876_v56 = vld [vmem:[#allocation8 + $0x4e0] ss:$16 sps:$4 sm:$0xff]  }
 0x246   :  { %5137 = vmatprep.subr.bf16.mxu0 %v6824_v57  ;;  %v6881_v57 = vld [vmem:[#allocation8 + $0x4c4] ss:$16 sps:$4 sm:$0xff]  }
 0x247   :  { %5177 = vmatpush1.bf16.msra.mxu1 %v6819_v3  ;;  %v7668_v3 = vpack.c.bf16 %v3549_v47, %v3549_v47 }
 0x248   :  { %5178 = vmatprep.subr.bf16.mxu1 %v6827_v62  ;;  %v6933_v62 = vld [vmem:[#allocation8 + $0x6e0] ss:$16 sps:$4 sm:$0xff]  }
 0x249   :  { %5138 = vmatpush1.bf16.msra.mxu0 %v6822_v0  ;;  %v7670_v0 = vpack.c.bf16 %v3551_v50, %v3551_v50 }
 0x24a   :  { %5139 = vmatprep.subr.bf16.mxu0 %v6830_v5  ;;  %v6939_v5 = vld [vmem:[#allocation8 + $0x6c0] ss:$16 sps:$4 sm:$0xff]  }
 0x24b   :  { %5179 = vmatpush1.bf16.msra.mxu1 %v6825_v35  ;;  %v6884_v35 = vld [vmem:[#allocation8 + $0x4a4] ss:$16 sps:$4 sm:$0xff]  }
 0x24c   :  { %5180 = vmatprep.subr.bf16.mxu1 %v6833_v6  ;;  %v3255_v12 = vpop.f32.mrf.mxu0 }
 0x24d   :  { %v3256_v13 = vadd.f32 %v3255_v12, %v607_v8  ;;  %5140 = vmatpush2.bf16.msra.mxu0 %v6828_v9  ;;  %v6947_v8 = vld [vmem:[#allocation8 + $0x6a4] ss:$16 sps:$4 sm:$0xff]  }
 0x24e   :  { %v3296_v14 = vpop.f32.mrf.mxu1  ;;  %v7660_v16 = vpop.f32.mrf.mxu0  ;;  %5141 = vmatprep.subr.bf16.mxu0 %v6836_v11  ;;  %v6887_v11 = vld [vmem:[#allocation8 + $0x484] ss:$16 sps:$4 sm:$0xff]  }
 0x24f   :  { %5181 = vmatpush2.bf16.msra.mxu1 %v6831_v10  ;;  %v7662_v19 = vadd.f32 %v3296_v14, %v3256_v13  ;;  %v6882_v10 = vld [vmem:[#allocation8 + $0x4a0] ss:$16 sps:$4 sm:$0xff]   ;;  %v6953_v13 = vld [vmem:[#allocation8 + $0x684] ss:$16 sps:$4 sm:$0xff]  }
 0x250   :  { %v7664_v29 = vpop.f32.mrf.mxu1  ;;  %5182 = vmatprep.subr.bf16.mxu1 %v6839_v17  ;;  %v3259_v23 = vpop.f32.mrf.mxu0  ;;  %v6945_v17 = vld [vmem:[#allocation8 + $0x6a0] ss:$16 sps:$4 sm:$0xff]  }
 0x251   :  { %5142 = vmatpush2.bf16.msra.mxu0 %v6834_v15  ;;  %v6885_v14 = vld [vmem:[#allocation8 + $0x480] ss:$16 sps:$4 sm:$0xff]   ;;  %v6890_v15 = vld [vmem:[#allocation8 + $0x464] ss:$16 sps:$4 sm:$0xff]  }
 0x252   :  { %v3300_v26 = vpop.f32.mrf.mxu1  ;;  %v3260_v24 = vpop.f32.mrf.mxu0  ;;  %5143 = vmatprep.subr.bf16.mxu0 %v6842_v18  ;;  %v6959_v18 = vld [vmem:[#allocation8 + $0x664] ss:$16 sps:$4 sm:$0xff]  }
 0x253   :  { %5183 = vmatpush2.bf16.msra.mxu1 %v6837_v59  ;;  %v6951_v59 = vld [vmem:[#allocation8 + $0x680] ss:$16 sps:$4 sm:$0xff]   ;;  %v6893_v23 = vld [vmem:[#allocation8 + $0x444] ss:$16 sps:$4 sm:$0xff]  }
 0x254   :  { %v3301_v31 = vpop.f32.mrf.mxu1  ;;  %5184 = vmatprep.subr.bf16.mxu1 %v6845_v63  ;;  %v6888_v63 = vld [vmem:[#allocation8 + $0x460] ss:$16 sps:$4 sm:$0xff]  }
 0x255   :  { %5144 = vmatpush2.bf16.msra.mxu0 %v6840_v20  ;;  %v6957_v26 = vld [vmem:[#allocation8 + $0x660] ss:$16 sps:$4 sm:$0xff]   ;;  %v6965_v20 = vld [vmem:[#allocation8 + $0x644] ss:$16 sps:$4 sm:$0xff]  }
 0x256   :  { %5145 = vmatprep.subr.bf16.mxu0 %v6848_v28  ;;  %v6891_v24 = vld [vmem:[#allocation8 + $0x440] ss:$16 sps:$4 sm:$0xff]   ;;  %v6971_v31 = vld [vmem:[#allocation8 + $0x624] ss:$16 sps:$4 sm:$0xff]  }
 0x257   :  { %5185 = vmatpush2.bf16.msra.mxu1 %v6843_v27  ;;  %v6896_v27 = vld [vmem:[#allocation8 + $0x424] ss:$16 sps:$4 sm:$0xff]   ;;  %v6963_v28 = vld [vmem:[#allocation8 + $0x640] ss:$16 sps:$4 sm:$0xff]  }
 0x258   :  { %5186 = vmatprep.subr.bf16.mxu1 %v6851_v4  ;;  %v610_v4 = vsub.s32 5, %v7578_v52 }
 0x259   :  { %5146 = vmatpush2.bf16.msra.mxu0 %v6846_v21  ;;  %v6894_v21 = vld [vmem:[#allocation8 + $0x420] ss:$16 sps:$4 sm:$0xff]  }
 0x25a   :  { %5147 = vmatprep.subr.bf16.mxu0 %v6854_v33  ;;  %v6969_v33 = vld [vmem:[#allocation8 + $0x620] ss:$16 sps:$4 sm:$0xff]  }
 0x25b   :  { %5187 = vmatpush2.bf16.msra.mxu1 %v6849_v61  ;;  %v6899_v61 = vld [vmem:[#allocation8 + $0x404] ss:$16 sps:$4 sm:$0xff]  }
 0x25c   :  { %5188 = vmatprep.subr.bf16.mxu1 %v6857_v30  ;;  %v6977_v30 = vld [vmem:[#allocation8 + $0x604] ss:$16 sps:$4 sm:$0xff]  }
 0x25d   :  { %5148 = vmatpush2.bf16.msra.mxu0 %v6852_v51  ;;  %v611_v51 = vrot.slane %v7641_v49, %v610_v4  ;;  %v7023_v4 = vld [vmem:[#allocation8 + $0x700] ss:$16 sps:$4 sm:$0xff]  }
 0x25e   :  { %5149 = vmatprep.subr.bf16.mxu0 %v6860_v42  ;;  %v6902_v42 = vld [vmem:[#allocation8 + $0x5e4] ss:$16 sps:$4 sm:$0xff]  }
 0x25f   :  { %5189 = vmatpush2.bf16.msra.mxu1 %v6855_v34  ;;  %v6897_v34 = vld [vmem:[#allocation8 + $0x400] ss:$16 sps:$4 sm:$0xff]  }
 0x260   :  { %5190 = vmatprep.subr.bf16.mxu1 %v6863_v38  ;;  %v6975_v38 = vld [vmem:[#allocation8 + $0x600] ss:$16 sps:$4 sm:$0xff]  }
 0x261   :  { %5150 = vmatpush2.bf16.msra.mxu0 %v6858_v39  ;;  %v6983_v39 = vld [vmem:[#allocation8 + $0x7e4] ss:$16 sps:$4 sm:$0xff]  }
 0x262   :  { %5151 = vmatprep.subr.bf16.mxu0 %v6866_v40  ;;  %v6900_v40 = vld [vmem:[#allocation8 + $0x5e0] ss:$16 sps:$4 sm:$0xff]  }
 0x263   :  { %5191 = vmatpush2.bf16.msra.mxu1 %v6861_v36  ;;  %v3258_v36 = vadd.f32 %v7660_v16, %v611_v51  ;;  %v6995_v16 = vld [vmem:[#allocation8 + $0x7a4] ss:$16 sps:$4 sm:$0xff]   ;;  %v6927_v51 = vld [vmem:[#allocation8 + $0xc8] ss:$16 sps:$4 sm:$0xff]  }
 0x264   :  { %5192 = vmatprep.subr.bf16.mxu1 %v6869_v41  ;;  %v6905_v41 = vld [vmem:[#allocation8 + $0x5c4] ss:$16 sps:$4 sm:$0xff]  }
 0x265   :  { %5152 = vmatpush2.bf16.msra.mxu0 %v6864_v43  ;;  %v6981_v43 = vld [vmem:[#allocation8 + $0x7e0] ss:$16 sps:$4 sm:$0xff]  }
 0x266   :  { %5153 = vmatprep.subr.bf16.mxu0 %v6872_v45 }
 0x267   :  { %5193 = vmatpush2.bf16.msra.mxu1 %v6867_v44  ;;  %v6989_v44 = vld [vmem:[#allocation8 + $0x7c4] ss:$16 sps:$4 sm:$0xff]  }
 0x268   :  { %5194 = vmatprep.subr.bf16.mxu1 %v6875_v46  ;;  %v3299_v46 = vadd.f32 %v7664_v29, %v3258_v36  ;;  %v6993_v29 = vld [vmem:[#allocation8 + $0x7a0] ss:$16 sps:$4 sm:$0xff]   ;;  %v6938_v36 = vld [vmem:[#allocation8 + $0x8c] ss:$16 sps:$4 sm:$0xff]  }
 0x269   :  { %5154 = vmatpush2.bf16.msra.mxu0 %v6870_v22  ;;  %v6903_v22 = vld [vmem:[#allocation8 + $0x5c0] ss:$16 sps:$4 sm:$0xff]  }
 0x26a   :  { %5205 = vmatprep.subr.bf16.mxu0 %v6878_v60  ;;  %v6987_v60 = vld [vmem:[#allocation8 + $0x7c0] ss:$16 sps:$4 sm:$0xff]  }
 0x26b   :  { %5195 = vmatpush2.bf16.msra.mxu1 %v6873_v48  ;;  %v6908_v48 = vld [vmem:[#allocation8 + $0x5a4] ss:$16 sps:$4 sm:$0xff]  }
 0x26c   :  { %5246 = vmatprep.subr.bf16.mxu1 %v6935_v53  ;;  %5156 = vmatmul.mubr.bf16.vlgmr.msra.gmra.mxu0 %v7668_v3 }
 0x26d   :  { %5206 = vmatpush1.bf16.msra.mxu0 %v6876_v56 }
 0x26e   :  { %v7673_v2 = vpop.f32.mrf.mxu1  ;;  %5197 = vmatmul.mubr.bf16.vlgmr.msra.gmra.mxu1 %v7670_v0  ;;  %5207 = vmatprep.subr.bf16.mxu0 %v6881_v57  ;;  %v6906_v57 = vld [vmem:[#allocation8 + $0x5a0] ss:$16 sps:$4 sm:$0xff]  }
 0x26f   :  { %5247 = vmatpush1.bf16.msra.mxu1 %v6933_v62 }
 0x270   :  { %v7676_v6 = vpop.f32.mrf.mxu1  ;;  %5248 = vmatprep.subr.bf16.mxu1 %v6941_v25  ;;  %v6911_v25 = vld [vmem:[#allocation8 + $0x584] ss:$16 sps:$4 sm:$0xff]  }
 0x271   :  { %5208 = vmatpush1.bf16.msra.mxu0 %v6879_v54 }
 0x272   :  { %v3382_v9 = vpop.f32.mrf.mxu1  ;;  %5209 = vmatprep.subr.bf16.mxu0 %v6884_v35  ;;  %v7001_v35 = vld [vmem:[#allocation8 + $0x784] ss:$16 sps:$4 sm:$0xff]  }
 0x273   :  { %5249 = vmatpush1.bf16.msra.mxu1 %v6939_v5  ;;  %v6914_v9 = vld [vmem:[#allocation8 + $0x564] ss:$16 sps:$4 sm:$0xff]  }
 0x274   :  { %v3383_v12 = vpop.f32.mrf.mxu1  ;;  %5250 = vmatprep.subr.bf16.mxu1 %v6947_v8  ;;  %v6909_v8 = vld [vmem:[#allocation8 + $0x580] ss:$16 sps:$4 sm:$0xff]  }
 0x275   :  { %5210 = vmatpush1.bf16.msra.mxu0 %v6882_v10  ;;  %v6999_v10 = vld [vmem:[#allocation8 + $0x780] ss:$16 sps:$4 sm:$0xff]  }
 0x276   :  { %5211 = vmatprep.subr.bf16.mxu0 %v6887_v11  ;;  %v6912_v11 = vld [vmem:[#allocation8 + $0x560] ss:$16 sps:$4 sm:$0xff]  }
 0x277   :  { %5251 = vmatpush1.bf16.msra.mxu1 %v6945_v17  ;;  %v6917_v17 = vld [vmem:[#allocation8 + $0x544] ss:$16 sps:$4 sm:$0xff]   ;;  %v7005_v12 = vld [vmem:[#allocation8 + $0x760] ss:$16 sps:$4 sm:$0xff]  }
 0x278   :  { %5252 = vmatprep.subr.bf16.mxu1 %v6953_v13  ;;  %v7013_v13 = vld [vmem:[#allocation8 + $0x744] ss:$16 sps:$4 sm:$0xff]  }
 0x279   :  { %5212 = vmatpush1.bf16.msra.mxu0 %v6885_v14  ;;  %v6915_v14 = vld [vmem:[#allocation8 + $0x540] ss:$16 sps:$4 sm:$0xff]  }
 0x27a   :  { %5213 = vmatprep.subr.bf16.mxu0 %v6890_v15 }
 0x27b   :  { %5253 = vmatpush1.bf16.msra.mxu1 %v6951_v59  ;;  %v6920_v59 = vld [vmem:[#allocation8 + $0x524] ss:$16 sps:$4 sm:$0xff]  }
 0x27c   :  { %5254 = vmatprep.subr.bf16.mxu1 %v6959_v18  ;;  %v7011_v18 = vld [vmem:[#allocation8 + $0x740] ss:$16 sps:$4 sm:$0xff]  }
 0x27d   :  { %5214 = vmatpush1.bf16.msra.mxu0 %v6888_v63  ;;  %v7019_v63 = vld [vmem:[#allocation8 + $0x724] ss:$16 sps:$4 sm:$0xff]  }
 0x27e   :  { %5215 = vmatprep.subr.bf16.mxu0 %v6893_v23  ;;  %v6918_v23 = vld [vmem:[#allocation8 + $0x520] ss:$16 sps:$4 sm:$0xff]  }
 0x27f   :  { %5255 = vmatpush1.bf16.msra.mxu1 %v6957_v26 }
 0x280   :  { %5256 = vmatprep.subr.bf16.mxu1 %v6965_v20  ;;  %v6923_v20 = vld [vmem:[#allocation8 + $0x504] ss:$16 sps:$4 sm:$0xff]  }
 0x281   :  { %5216 = vmatpush1.bf16.msra.mxu0 %v6891_v24  ;;  %v7017_v24 = vld [vmem:[#allocation8 + $0x720] ss:$16 sps:$4 sm:$0xff]  }
 0x282   :  { %5217 = vmatprep.subr.bf16.mxu0 %v6896_v27  ;;  %v7025_v27 = vld [vmem:[#allocation8 + $0x704] ss:$16 sps:$4 sm:$0xff]  }
 0x283   :  { %5257 = vmatpush1.bf16.msra.mxu1 %v6963_v28  ;;  %v6921_v28 = vld [vmem:[#allocation8 + $0x500] ss:$16 sps:$4 sm:$0xff]  }
 0x284   :  { %5258 = vmatprep.subr.bf16.mxu1 %v6971_v31 }
 0x285   :  { %5218 = vmatpush1.bf16.msra.mxu0 %v6894_v21  ;;  %v7031_v21 = vld [vmem:[#allocation8 + $0x2ec] ss:$16 sps:$4 sm:$0xff]  }
 0x286   :  { %5219 = vmatprep.subr.bf16.mxu0 %v6899_v61  ;;  %v6924_v61 = vld [vmem:[#allocation8 + $0xe8] ss:$16 sps:$4 sm:$0xff]  }
 0x287   :  { %5259 = vmatpush1.bf16.msra.mxu1 %v6969_v33 }
 0x288   :  { %5260 = vmatprep.subr.bf16.mxu1 %v6977_v30 }
 0x289   :  { %5220 = vmatpush1.bf16.msra.mxu0 %v6897_v34  ;;  %v6932_v34 = vld [vmem:[#allocation8 + $0xac] ss:$16 sps:$4 sm:$0xff]  }
 0x28a   :  { %5221 = vmatprep.subr.bf16.mxu0 %v6902_v42 }
 0x28b   :  { %5261 = vmatpush1.bf16.msra.mxu1 %v6975_v38 }
 0x28c   :  { %5262 = vmatprep.subr.bf16.mxu1 %v6983_v39  ;;  %v3337_v45 = vpop.f32.mrf.mxu0  ;;  %v6930_v39 = vld [vmem:[#allocation8 + $0xa8] ss:$16 sps:$4 sm:$0xff]  }
 0x28d   :  { %5222 = vmatpush2.bf16.msra.mxu0 %v6900_v40  ;;  %v3338_v15 = vadd.f32 %v3337_v45, %v7662_v19  ;;  %v6926_v19 = vld [vmem:[#allocation8 + $0xec] ss:$16 sps:$4 sm:$0xff]  }
 0x28e   :  { %v3339_v47 = vpop.f32.mrf.mxu0  ;;  %5223 = vmatprep.subr.bf16.mxu0 %v6905_v41  ;;  %v6936_v41 = vld [vmem:[#allocation8 + $0x88] ss:$16 sps:$4 sm:$0xff]   ;;  %v6950_v45 = vld [vmem:[#allocation8 + $0x4c] ss:$16 sps:$4 sm:$0xff]  }
 0x28f   :  { %5263 = vmatpush2.bf16.msra.mxu1 %v6981_v43  ;;  %v3340_v50 = vadd.f32 %v3339_v47, %v3299_v46  ;;  %v3379_v26 = vadd.f32 %v7673_v2, %v3338_v15  ;;  %v6929_v2 = vld [vmem:[#allocation8 + $0xcc] ss:$16 sps:$4 sm:$0xff]   ;;  %v618_v15 = vsub.s32 7, %v7578_v52 }
 0x290   :  { %5264 = vmatprep.subr.bf16.mxu1 %v6989_v44  ;;  %v3341_v53 = vpop.f32.mrf.mxu0  ;;  %v6944_v43 = vld [vmem:[#allocation8 + $0x6c] ss:$16 sps:$4 sm:$0xff]   ;;  %v6942_v44 = vld [vmem:[#allocation8 + $0x68] ss:$16 sps:$4 sm:$0xff]  }
 0x291   :  { %v3381_v56 = vadd.f32 %v7676_v6, %v3340_v50  ;;  %5224 = vmatpush2.bf16.msra.mxu0 %v6903_v22  ;;  %v7007_v6 = vld [vmem:[#allocation8 + $0x764] ss:$16 sps:$4 sm:$0xff]   ;;  %v3553_v31 = vmax.f32 %v3379_v26, 0.0  ;;  %v6956_v46 = vld [vmem:[#allocation8 + $0x2c] ss:$16 sps:$4 sm:$0xff]  }
 0x292   :  { %v3342_v62 = vpop.f32.mrf.mxu0  ;;  %5225 = vmatprep.subr.bf16.mxu0 %v6908_v48  ;;  %v6954_v22 = vld [vmem:[#allocation8 + $0x28] ss:$16 sps:$4 sm:$0xff]   ;;  %v6962_v47 = vld [vmem:[#allocation8 + $0xc] ss:$16 sps:$4 sm:$0xff]  }
 0x293   :  { %5265 = vmatpush2.bf16.msra.mxu1 %v6987_v60  ;;  %v3554_v54 = vmax.f32 %v3381_v56, 0.0  ;;  %v7688_v33 = vpack.c.bf16 %v3553_v31, %v3553_v31  ;;  %v6960_v48 = vld [vmem:[#allocation8 + $0x8] ss:$16 sps:$4 sm:$0xff]   ;;  %v6968_v60 = vld [vmem:[#allocation8 + $0x1ec] ss:$16 sps:$4 sm:$0xff]  }
 0x294   :  { %5266 = vmatprep.subr.bf16.mxu1 %v6995_v16  ;;  %v6966_v50 = vld [vmem:[#allocation8 + $0x1e8] ss:$16 sps:$4 sm:$0xff]   ;;  %v6974_v16 = vld [vmem:[#allocation8 + $0x1cc] ss:$16 sps:$4 sm:$0xff]  }
 0x295   :  { %v7683_v5 = vpack.c.bf16 %v3554_v54, %v3554_v54  ;;  %5226 = vmatpush2.bf16.msra.mxu0 %v6906_v57  ;;  %v6972_v56 = vld [vmem:[#allocation8 + $0x1c8] ss:$16 sps:$4 sm:$0xff]   ;;  %v6980_v62 = vld [vmem:[#allocation8 + $0x1ac] ss:$16 sps:$4 sm:$0xff]  }
 0x296   :  { %5227 = vmatprep.subr.bf16.mxu0 %v6911_v25  ;;  %v7014_v26 = vld [vmem:[#allocation8 + $0x4e8] ss:$16 sps:$4 sm:$0xff]  }
 0x297   :  { %5267 = vmatpush2.bf16.msra.mxu1 %v6993_v29  ;;  %5237 = vmatprep.mubr.bf16.mxu0 %v7683_v5  ;;  %v6978_v29 = vld [vmem:[#allocation8 + $0x1a8] ss:$16 sps:$4 sm:$0xff]  }
 0x298   :  { %5268 = vmatprep.subr.bf16.mxu1 %v7001_v35  ;;  %v6986_v35 = vld [vmem:[#allocation8 + $0x18c] ss:$16 sps:$4 sm:$0xff]  }
 0x299   :  { %5228 = vmatpush2.bf16.msra.mxu0 %v6909_v8  ;;  %v6984_v8 = vld [vmem:[#allocation8 + $0x188] ss:$16 sps:$4 sm:$0xff]  }
 0x29a   :  { %5229 = vmatprep.subr.bf16.mxu0 %v6914_v9  ;;  %v6992_v9 = vld [vmem:[#allocation8 + $0x16c] ss:$16 sps:$4 sm:$0xff]  }
 0x29b   :  { %5269 = vmatpush2.bf16.msra.mxu1 %v6999_v10  ;;  %v6990_v10 = vld [vmem:[#allocation8 + $0x168] ss:$16 sps:$4 sm:$0xff]  }
 0x29c   :  { %5270 = vmatprep.subr.bf16.mxu1 %v7007_v6  ;;  %v6998_v6 = vld [vmem:[#allocation8 + $0x14c] ss:$16 sps:$4 sm:$0xff]  }
 0x29d   :  { %5230 = vmatpush2.bf16.msra.mxu0 %v6912_v11  ;;  %v6996_v11 = vld [vmem:[#allocation8 + $0x148] ss:$16 sps:$4 sm:$0xff]  }
 0x29e   :  { %5231 = vmatprep.subr.bf16.mxu0 %v6917_v17  ;;  %v7004_v17 = vld [vmem:[#allocation8 + $0x12c] ss:$16 sps:$4 sm:$0xff]  }
 0x29f   :  { %5271 = vmatpush2.bf16.msra.mxu1 %v7005_v12  ;;  %v7002_v12 = vld [vmem:[#allocation8 + $0x128] ss:$16 sps:$4 sm:$0xff]  }
 0x2a0   :  { %5272 = vmatprep.subr.bf16.mxu1 %v7013_v13  ;;  %v614_v13 = vsub.s32 6, %v7578_v52 }
 0x2a1   :  { %5232 = vmatpush2.bf16.msra.mxu0 %v6915_v14  ;;  %v7010_v14 = vld [vmem:[#allocation8 + $0x10c] ss:$16 sps:$4 sm:$0xff]  }
 0x2a2   :  { %5233 = vmatprep.subr.bf16.mxu0 %v6920_v59  ;;  %v7008_v59 = vld [vmem:[#allocation8 + $0x108] ss:$16 sps:$4 sm:$0xff]  }
 0x2a3   :  { %5273 = vmatpush2.bf16.msra.mxu1 %v7011_v18  ;;  %v615_v18 = vrot.slane %v7641_v49, %v614_v13  ;;  %v7068_v13 = vld [vmem:[#allocation8 + $0x5c8] ss:$16 sps:$4 sm:$0xff]  }
 0x2a4   :  { %5274 = vmatprep.subr.bf16.mxu1 %v7019_v63  ;;  %v7016_v63 = vld [vmem:[#allocation8 + $0x4ec] ss:$16 sps:$4 sm:$0xff]  }
 0x2a5   :  { %5234 = vmatpush2.bf16.msra.mxu0 %v6918_v23  ;;  %v619_v23 = vrot.slane %v7641_v49, %v618_v15  ;;  %v7076_v15 = vld [vmem:[#allocation8 + $0x5ac] ss:$16 sps:$4 sm:$0xff]  }
 0x2a6   :  { %5235 = vmatprep.subr.bf16.mxu0 %v6923_v20 }
 0x2a7   :  { %5275 = vmatpush2.bf16.msra.mxu1 %v7017_v24  ;;  %v7022_v24 = vld [vmem:[#allocation8 + $0x4cc] ss:$16 sps:$4 sm:$0xff]  }
 0x2a8   :  { %5276 = vmatprep.subr.bf16.mxu1 %v7025_v27 }
 0x2a9   :  { %5236 = vmatpush2.bf16.msra.mxu0 %v6921_v28 }
 0x2aa   :  { %5287 = vmatprep.subr.bf16.mxu0 %v6926_v19 }
 0x2ab   :  { %5277 = vmatpush2.bf16.msra.mxu1 %v7023_v4  ;;  %v7020_v4 = vld [vmem:[#allocation8 + $0x4c8] ss:$16 sps:$4 sm:$0xff]  }
 0x2ac   :  { %5328 = vmatprep.subr.bf16.mxu1 %v7031_v21  ;;  %5238 = vmatmul.mubr.bf16.vlgmr.msra.gmra.mxu0 %v7688_v33 }
 0x2ad   :  { %5288 = vmatpush1.bf16.msra.mxu0 %v6924_v61  ;;  %5319 = vmatprep.mubr.bf16.mxu0 %v7651_v37  ;;  %v6948_v37 = vld [vmem:[#allocation8 + $0x48] ss:$16 sps:$4 sm:$0xff]  }
 0x2ae   :  { %v7691_v30 = vpop.f32.mrf.mxu1  ;;  %5289 = vmatprep.subr.bf16.mxu0 %v6929_v2  ;;  %v7028_v2 = vld [vmem:[#allocation8 + $0x4ac] ss:$16 sps:$4 sm:$0xff]  }
 0x2af   :  { %v3420_v20 = vadd.f32 %v7691_v30, %v615_v18  ;;  %v7074_v18 = vld [vmem:[#allocation8 + $0x5a8] ss:$16 sps:$4 sm:$0xff]  }
 0x2b0   :  { %v7694_v42 = vpop.f32.mrf.mxu1 }
 0x2b1   :  { %5290 = vmatpush1.bf16.msra.mxu0 %v6927_v51  ;;  %v3422_v27 = vadd.f32 %v7694_v42, %v619_v23  ;;  %v7026_v42 = vld [vmem:[#allocation8 + $0x4a8] ss:$16 sps:$4 sm:$0xff]   ;;  %v7082_v23 = vld [vmem:[#allocation8 + $0x58c] ss:$16 sps:$4 sm:$0xff]  }
 0x2b2   :  { %v3423_v38 = vpop.f32.mrf.mxu1  ;;  %5291 = vmatprep.subr.bf16.mxu0 %v6932_v34 }
 0x2b4   :  { %v3424_v40 = vpop.f32.mrf.mxu1 }
 0x2b5   :  { %5292 = vmatpush1.bf16.msra.mxu0 %v6930_v39 }
 0x2b6   :  { %5293 = vmatprep.subr.bf16.mxu0 %v6938_v36 }
 0x2b9   :  { %5294 = vmatpush1.bf16.msra.mxu0 %v6936_v41 }
 0x2ba   :  { %5295 = vmatprep.subr.bf16.mxu0 %v6944_v43 }
 0x2bd   :  { %5296 = vmatpush1.bf16.msra.mxu0 %v6942_v44  ;;  %v7032_v44 = vld [vmem:[#allocation8 + $0x488] ss:$16 sps:$4 sm:$0xff]  }
 0x2be   :  { %5297 = vmatprep.subr.bf16.mxu0 %v6950_v45 }
 0x2c1   :  { %5298 = vmatpush1.bf16.msra.mxu0 %v6948_v37  ;;  %v7029_v37 = vld [vmem:[#allocation8 + $0x2e8] ss:$16 sps:$4 sm:$0xff]  }
 0x2c2   :  { %5299 = vmatprep.subr.bf16.mxu0 %v6956_v46 }
 0x2c5   :  { %5300 = vmatpush1.bf16.msra.mxu0 %v6954_v22  ;;  %v7037_v22 = vld [vmem:[#allocation8 + $0x2cc] ss:$16 sps:$4 sm:$0xff]  }
 0x2c6   :  { %5301 = vmatprep.subr.bf16.mxu0 %v6962_v47  ;;  %v7040_v47 = vld [vmem:[#allocation8 + $0x46c] ss:$16 sps:$4 sm:$0xff]  }
 0x2c9   :  { %5302 = vmatpush1.bf16.msra.mxu0 %v6960_v48  ;;  %v7038_v48 = vld [vmem:[#allocation8 + $0x468] ss:$16 sps:$4 sm:$0xff]  }
 0x2ca   :  { %5303 = vmatprep.subr.bf16.mxu0 %v6968_v60  ;;  %v7035_v60 = vld [vmem:[#allocation8 + $0x2c8] ss:$16 sps:$4 sm:$0xff]  }
 0x2cc   :  { %v3460_v53 = vpop.f32.mrf.mxu0 }
 0x2cd   :  { %5304 = vmatpush2.bf16.msra.mxu0 %v6966_v50  ;;  %v3461_v28 = vadd.f32 %v3460_v53, %v3420_v20  ;;  %v7046_v50 = vld [vmem:[#allocation8 + $0x44c] ss:$16 sps:$4 sm:$0xff]   ;;  %v7044_v53 = vld [vmem:[#allocation8 + $0x448] ss:$16 sps:$4 sm:$0xff]  }
 0x2ce   :  { %v3462_v57 = vpop.f32.mrf.mxu0  ;;  %5305 = vmatprep.subr.bf16.mxu0 %v6974_v16  ;;  %v7043_v16 = vld [vmem:[#allocation8 + $0x2ac] ss:$16 sps:$4 sm:$0xff]   ;;  %v7080_v20 = vld [vmem:[#allocation8 + $0x588] ss:$16 sps:$4 sm:$0xff]  }
 0x2cf   :  { %v3463_v21 = vadd.f32 %v3462_v57, %v3422_v27  ;;  %v7052_v57 = vld [vmem:[#allocation8 + $0x42c] ss:$16 sps:$4 sm:$0xff]  }
 0x2d0   :  { %v3464_v25 = vpop.f32.mrf.mxu0  ;;  %v7088_v27 = vld [vmem:[#allocation8 + $0x56c] ss:$16 sps:$4 sm:$0xff]  }
 0x2d1   :  { %5306 = vmatpush2.bf16.msra.mxu0 %v6972_v56  ;;  %v7041_v56 = vld [vmem:[#allocation8 + $0x2a8] ss:$16 sps:$4 sm:$0xff]  }
 0x2d2   :  { %v3465_v54 = vpop.f32.mrf.mxu0  ;;  %5307 = vmatprep.subr.bf16.mxu0 %v6980_v62  ;;  %v7049_v62 = vld [vmem:[#allocation8 + $0x28c] ss:$16 sps:$4 sm:$0xff]   ;;  %v7050_v25 = vld [vmem:[#allocation8 + $0x428] ss:$16 sps:$4 sm:$0xff]  }
 0x2d3   :  { %v7058_v54 = vld [vmem:[#allocation8 + $0x40c] ss:$16 sps:$4 sm:$0xff]  }
 0x2d5   :  { %5308 = vmatpush2.bf16.msra.mxu0 %v6978_v29  ;;  %v7047_v29 = vld [vmem:[#allocation8 + $0x288] ss:$16 sps:$4 sm:$0xff]  }
 0x2d6   :  { %5309 = vmatprep.subr.bf16.mxu0 %v6986_v35  ;;  %v7056_v35 = vld [vmem:[#allocation8 + $0x408] ss:$16 sps:$4 sm:$0xff]  }
 0x2d9   :  { %5310 = vmatpush2.bf16.msra.mxu0 %v6984_v8  ;;  %v7053_v8 = vld [vmem:[#allocation8 + $0x268] ss:$16 sps:$4 sm:$0xff]  }
 0x2da   :  { %5311 = vmatprep.subr.bf16.mxu0 %v6992_v9  ;;  %v7064_v9 = vld [vmem:[#allocation8 + $0x5ec] ss:$16 sps:$4 sm:$0xff]  }
 0x2dd   :  { %5312 = vmatpush2.bf16.msra.mxu0 %v6990_v10  ;;  %v7061_v10 = vld [vmem:[#allocation8 + $0x24c] ss:$16 sps:$4 sm:$0xff]  }
 0x2de   :  { %5313 = vmatprep.subr.bf16.mxu0 %v6998_v6  ;;  %v7062_v6 = vld [vmem:[#allocation8 + $0x5e8] ss:$16 sps:$4 sm:$0xff]  }
 0x2e1   :  { %5314 = vmatpush2.bf16.msra.mxu0 %v6996_v11  ;;  %v7059_v11 = vld [vmem:[#allocation8 + $0x248] ss:$16 sps:$4 sm:$0xff]  }
 0x2e2   :  { %5315 = vmatprep.subr.bf16.mxu0 %v7004_v17  ;;  %v7070_v17 = vld [vmem:[#allocation8 + $0x5cc] ss:$16 sps:$4 sm:$0xff]  }
 0x2e5   :  { %5316 = vmatpush2.bf16.msra.mxu0 %v7002_v12  ;;  %v7067_v12 = vld [vmem:[#allocation8 + $0x22c] ss:$16 sps:$4 sm:$0xff]  }
 0x2e6   :  { %5317 = vmatprep.subr.bf16.mxu0 %v7010_v14  ;;  %v7065_v14 = vld [vmem:[#allocation8 + $0x228] ss:$16 sps:$4 sm:$0xff]  }
 0x2e9   :  { %5318 = vmatpush2.bf16.msra.mxu0 %v7008_v59  ;;  %v7073_v59 = vld [vmem:[#allocation8 + $0x20c] ss:$16 sps:$4 sm:$0xff]  }
 0x2ea   :  { %5369 = vmatprep.subr.bf16.mxu0 %v7016_v63  ;;  %v7071_v63 = vld [vmem:[#allocation8 + $0x208] ss:$16 sps:$4 sm:$0xff]  }
 0x2ec   :  { %v3542_v31 = vpop.f32.mrf.mxu0  ;;  %5320 = vmatmul.mubr.bf16.vlgmr.msra.gmra.mxu0 %v7668_v3  ;;  %v7034_v3 = vld [vmem:[#allocation8 + $0x48c] ss:$16 sps:$4 sm:$0xff]  }
 0x2ed   :  { %5370 = vmatpush1.bf16.msra.mxu0 %v7014_v26  ;;  %5401 = vmatprep.mubr.bf16.mxu0 %v7683_v5  ;;  %v7079_v26 = vld [vmem:[#allocation8 + $0x3ec] ss:$16 sps:$4 sm:$0xff]  }
 0x2ee   :  { %v3501_v19 = vpop.f32.mrf.mxu1  ;;  %v3544_v49 = vpop.f32.mrf.mxu0  ;;  %5371 = vmatprep.subr.bf16.mxu0 %v7022_v24  ;;  %v7077_v24 = vld [vmem:[#allocation8 + $0x3e8] ss:$16 sps:$4 sm:$0xff]  }
 0x2ef   :  { %v3502_v61 = vadd.f32 %v3501_v19, %v3461_v28  ;;  %v7085_v28 = vld [vmem:[#allocation8 + $0x3cc] ss:$16 sps:$4 sm:$0xff]   ;;  %v7083_v19 = vld [vmem:[#allocation8 + $0x3c8] ss:$16 sps:$4 sm:$0xff]  }
 0x2f0   :  { %v3503_v51 = vpop.f32.mrf.mxu1  ;;  %v3546_v38 = vpop.f32.mrf.mxu0 }
 0x2f1   :  { %v3543_v30 = vadd.f32 %v3542_v31, %v3502_v61  ;;  %v3504_v34 = vadd.f32 %v3503_v51, %v3463_v21  ;;  %5372 = vmatpush1.bf16.msra.mxu0 %v7020_v4  ;;  %v7086_v31 = vld [vmem:[#allocation8 + $0x568] ss:$16 sps:$4 sm:$0xff]   ;;  %v7094_v4 = vld [vmem:[#allocation8 + $0x54c] ss:$16 sps:$4 sm:$0xff]  }
 0x2f2   :  { %v3505_v39 = vpop.f32.mrf.mxu1  ;;  %v3547_v40 = vpop.f32.mrf.mxu0  ;;  %5373 = vmatprep.subr.bf16.mxu0 %v7028_v2  ;;  %v7091_v21 = vld [vmem:[#allocation8 + $0x3ac] ss:$16 sps:$4 sm:$0xff]   ;;  %v7092_v61 = vld [vmem:[#allocation8 + $0x548] ss:$16 sps:$4 sm:$0xff]  }
 0x2f3   :  { %v3545_v36 = vadd.f32 %v3544_v49, %v3504_v34  ;;  %v3555_v41 = vmax.f32 %v3543_v30, 0.0  ;;  %v7089_v49 = vld [vmem:[#allocation8 + $0x3a8] ss:$16 sps:$4 sm:$0xff]   ;;  %v7100_v2 = vld [vmem:[#allocation8 + $0x52c] ss:$16 sps:$4 sm:$0xff]  }
 0x2f4   :  { %v3506_v43 = vpop.f32.mrf.mxu1  ;;  %v7097_v51 = vld [vmem:[#allocation8 + $0x38c] ss:$16 sps:$4 sm:$0xff]   ;;  %v7098_v30 = vld [vmem:[#allocation8 + $0x528] ss:$16 sps:$4 sm:$0xff]   ;;  %v7711_v40 = vld [vmem:[#allocation10] sm:$0xf] }
 0x2f5   :  { %v3556_v5 = vmax.f32 %v3545_v36, 0.0  ;;  %5374 = vmatpush1.bf16.msra.mxu0 %v7026_v42  ;;  %v7706_v46 = vpack.c.bf16 %v3555_v41, %v3555_v41  ;;  %v7095_v34 = vld [vmem:[#allocation8 + $0x388] ss:$16 sps:$4 sm:$0xff]   ;;  %v7106_v38 = vld [vmem:[#allocation8 + $0x50c] ss:$16 sps:$4 sm:$0xff]   ;;  %v3826_v43 = vrot.slane %v7711_v40, %v7581_v1 }
 0x2f6   :  { %5375 = vmatprep.subr.bf16.mxu0 %v7034_v3  ;;  %v7103_v39 = vld [vmem:[#allocation8 + $0x36c] ss:$16 sps:$4 sm:$0xff]   ;;  %v7104_v42 = vld [vmem:[#allocation8 + $0x508] ss:$16 sps:$4 sm:$0xff]  }
 0x2f7   :  { %v7704_v45 = vpack.c.bf16 %v3556_v5, %v3556_v5  ;;  %v7101_v36 = vld [vmem:[#allocation8 + $0x368] ss:$16 sps:$4 sm:$0xff]   ;;  %v7109_v41 = vld [vmem:[#allocation8 + $0x34c] ss:$16 sps:$4 sm:$0xff]  }
 0x2f8   :  { %v7166_v3 = vld [vmem:[#allocation11 + $0x74] ss:$8 sps:$4 sm:$0xff]   ;;  %v7164_v5 = vld [vmem:[#allocation11 + $0x70] ss:$8 sps:$4 sm:$0xff]  }
 0x2f9   :  { %5278 = vmatprep.mubr.bf16.mxu1 %v7704_v45  ;;  %5376 = vmatpush1.bf16.msra.mxu0 %v7032_v44  ;;  %v7107_v44 = vld [vmem:[#allocation8 + $0x348] ss:$16 sps:$4 sm:$0xff]  }
 0x2fa   :  { %5279 = vmatmul.mubr.bf16.vlgmr.msra.gmra.mxu1 %v7706_v46  ;;  %5377 = vmatprep.subr.bf16.mxu0 %v7040_v47  ;;  %v7112_v47 = vld [vmem:[#allocation8 + $0x32c] ss:$16 sps:$4 sm:$0xff]  }
 0x2fb   :  { %5329 = vmatpush1.bf16.msra.mxu1 %v7029_v37  ;;  %5360 = vmatprep.mubr.bf16.mxu1 %v7653_v32  ;;  %v7055_v32 = vld [vmem:[#allocation8 + $0x26c] ss:$16 sps:$4 sm:$0xff]   ;;  %v7169_v37 = vld [vmem:[#allocation11 + $0x64] ss:$8 sps:$4 sm:$0xff]  }
 0x2fc   :  { %5330 = vmatprep.subr.bf16.mxu1 %v7037_v22  ;;  %v3830_v22 = vrot.slane %v7711_v40, %v7586_v7 }
 0x2fd   :  { %5378 = vmatpush1.bf16.msra.mxu0 %v7038_v48 }
 0x2fe   :  { %5379 = vmatprep.subr.bf16.mxu0 %v7046_v50 }
 0x2ff   :  { %5331 = vmatpush1.bf16.msra.mxu1 %v7035_v60 }
 0x300   :  { %5332 = vmatprep.subr.bf16.mxu1 %v7043_v16  ;;  %v7167_v16 = vld [vmem:[#allocation11 + $0x60] ss:$8 sps:$4 sm:$0xff]  }
 0x301   :  { %5380 = vmatpush1.bf16.msra.mxu0 %v7044_v53 }
 0x302   :  { %5381 = vmatprep.subr.bf16.mxu0 %v7052_v57  ;;  %v7172_v57 = vld [vmem:[#allocation11 + $0x54] ss:$8 sps:$4 sm:$0xff]  }
 0x303   :  { %5333 = vmatpush1.bf16.msra.mxu1 %v7041_v56  ;;  %v7110_v56 = vld [vmem:[#allocation8 + $0x328] ss:$16 sps:$4 sm:$0xff]  }
 0x304   :  { %5334 = vmatprep.subr.bf16.mxu1 %v7049_v62 }
 0x305   :  { %5382 = vmatpush1.bf16.msra.mxu0 %v7050_v25 }
 0x306   :  { %5383 = vmatprep.subr.bf16.mxu0 %v7058_v54  ;;  %v7115_v54 = vld [vmem:[#allocation8 + $0x30c] ss:$16 sps:$4 sm:$0xff]  }
 0x307   :  { %5335 = vmatpush1.bf16.msra.mxu1 %v7047_v29 }
 0x308   :  { %5336 = vmatprep.subr.bf16.mxu1 %v7055_v32 }
 0x309   :  { %5384 = vmatpush1.bf16.msra.mxu0 %v7056_v35 }
 0x30a   :  { %5385 = vmatprep.subr.bf16.mxu0 %v7064_v9 }
 0x30b   :  { %5337 = vmatpush1.bf16.msra.mxu1 %v7053_v8 }
 0x30c   :  { %5338 = vmatprep.subr.bf16.mxu1 %v7061_v10  ;;  %v7113_v10 = vld [vmem:[#allocation8 + $0x308] ss:$16 sps:$4 sm:$0xff]  }
 0x30d   :  { %5386 = vmatpush2.bf16.msra.mxu0 %v7062_v6  ;;  %v7175_v6 = vld [vmem:[#allocation11 + $0x44] ss:$8 sps:$4 sm:$0xff]  }
 0x30e   :  { %5387 = vmatprep.subr.bf16.mxu0 %v7070_v17  ;;  %v7118_v17 = vld [vmem:[#allocation8 + $0x6ec] ss:$16 sps:$4 sm:$0xff]  }
 0x30f   :  { %5339 = vmatpush1.bf16.msra.mxu1 %v7059_v11 }
 0x310   :  { %5340 = vmatprep.subr.bf16.mxu1 %v7067_v12  ;;  %v7173_v12 = vld [vmem:[#allocation11 + $0x40] ss:$8 sps:$4 sm:$0xff]  }
 0x311   :  { %5388 = vmatpush2.bf16.msra.mxu0 %v7068_v13  ;;  %v7116_v13 = vld [vmem:[#allocation8 + $0x6e8] ss:$16 sps:$4 sm:$0xff]  }
 0x312   :  { %5389 = vmatprep.subr.bf16.mxu0 %v7076_v15  ;;  %v7178_v15 = vld [vmem:[#allocation11 + $0x34] ss:$8 sps:$4 sm:$0xff]  }
 0x313   :  { %5341 = vmatpush1.bf16.msra.mxu1 %v7065_v14  ;;  %v7121_v14 = vld [vmem:[#allocation8 + $0x6cc] ss:$16 sps:$4 sm:$0xff]  }
 0x314   :  { %5342 = vmatprep.subr.bf16.mxu1 %v7073_v59  ;;  %v7176_v59 = vld [vmem:[#allocation11 + $0x30] ss:$8 sps:$4 sm:$0xff]  }
 0x315   :  { %5390 = vmatpush2.bf16.msra.mxu0 %v7074_v18  ;;  %v7119_v18 = vld [vmem:[#allocation8 + $0x6c8] ss:$16 sps:$4 sm:$0xff]  }
 0x316   :  { %5391 = vmatprep.subr.bf16.mxu0 %v7082_v23  ;;  %v7124_v23 = vld [vmem:[#allocation8 + $0x6ac] ss:$16 sps:$4 sm:$0xff]  }
 0x317   :  { %5343 = vmatpush1.bf16.msra.mxu1 %v7071_v63  ;;  %v7181_v63 = vld [vmem:[#allocation11 + $0x24] ss:$8 sps:$4 sm:$0xff]  }
 0x318   :  { %5344 = vmatprep.subr.bf16.mxu1 %v7079_v26  ;;  %v7179_v26 = vld [vmem:[#allocation11 + $0x20] ss:$8 sps:$4 sm:$0xff]  }
 0x319   :  { %5392 = vmatpush2.bf16.msra.mxu0 %v7080_v20  ;;  %v7122_v20 = vld [vmem:[#allocation8 + $0x6a8] ss:$16 sps:$4 sm:$0xff]  }
 0x31a   :  { %5393 = vmatprep.subr.bf16.mxu0 %v7088_v27  ;;  %v7127_v27 = vld [vmem:[#allocation8 + $0x68c] ss:$16 sps:$4 sm:$0xff]  }
 0x31b   :  { %5345 = vmatpush2.bf16.msra.mxu1 %v7077_v24  ;;  %v7184_v24 = vld [vmem:[#allocation11 + $0x14] ss:$8 sps:$4 sm:$0xff]  }
 0x31c   :  { %5346 = vmatprep.subr.bf16.mxu1 %v7085_v28  ;;  %v7125_v28 = vld [vmem:[#allocation8 + $0x688] ss:$16 sps:$4 sm:$0xff]  }
 0x31d   :  { %5394 = vmatpush2.bf16.msra.mxu0 %v7086_v31  ;;  %v7187_v31 = vld [vmem:[#allocation11 + $0x4] ss:$8 sps:$4 sm:$0xff]  }
 0x31e   :  { %5395 = vmatprep.subr.bf16.mxu0 %v7094_v4  ;;  %v7128_v4 = vld [vmem:[#allocation8 + $0x668] ss:$16 sps:$4 sm:$0xff]  }
 0x31f   :  { %5347 = vmatpush2.bf16.msra.mxu1 %v7083_v19  ;;  %v7185_v19 = vld [vmem:[#allocation11] ss:$8 sps:$4 sm:$0xff]  }
 0x320   :  { %5348 = vmatprep.subr.bf16.mxu1 %v7091_v21  ;;  %v7190_v21 = vld [vmem:[#allocation11 + $0xf4] ss:$8 sps:$4 sm:$0xff]  }
 0x321   :  { %5396 = vmatpush2.bf16.msra.mxu0 %v7092_v61  ;;  %v7133_v61 = vld [vmem:[#allocation8 + $0x64c] ss:$16 sps:$4 sm:$0xff]  }
 0x322   :  { %5397 = vmatprep.subr.bf16.mxu0 %v7100_v2  ;;  %v7131_v2 = vld [vmem:[#allocation8 + $0x648] ss:$16 sps:$4 sm:$0xff]  }
 0x323   :  { %5349 = vmatpush2.bf16.msra.mxu1 %v7089_v49  ;;  %v7188_v49 = vld [vmem:[#allocation11 + $0xf0] ss:$8 sps:$4 sm:$0xff]  }
 0x324   :  { %5350 = vmatprep.subr.bf16.mxu1 %v7097_v51  ;;  %v7193_v51 = vld [vmem:[#allocation11 + $0xe4] ss:$8 sps:$4 sm:$0xff]  }
 0x325   :  { %5398 = vmatpush2.bf16.msra.mxu0 %v7098_v30  ;;  %v7136_v30 = vld [vmem:[#allocation8 + $0x62c] ss:$16 sps:$4 sm:$0xff]  }
 0x326   :  { %5399 = vmatprep.subr.bf16.mxu0 %v7106_v38  ;;  %v7134_v38 = vld [vmem:[#allocation8 + $0x628] ss:$16 sps:$4 sm:$0xff]  }
 0x327   :  { %5351 = vmatpush2.bf16.msra.mxu1 %v7095_v34  ;;  %v7191_v34 = vld [vmem:[#allocation11 + $0xe0] ss:$8 sps:$4 sm:$0xff]  }
 0x328   :  { %5352 = vmatprep.subr.bf16.mxu1 %v7103_v39  ;;  %v7196_v39 = vld [vmem:[#allocation11 + $0xd4] ss:$8 sps:$4 sm:$0xff]  }
 0x329   :  { %5400 = vmatpush2.bf16.msra.mxu0 %v7104_v42  ;;  %v7139_v42 = vld [vmem:[#allocation8 + $0x60c] ss:$16 sps:$4 sm:$0xff]  }
 0x32a   :  { %5855 = vmatprep.subr.bf16.mxu0 %v7166_v3  ;;  %v7137_v3 = vld [vmem:[#allocation8 + $0x608] ss:$16 sps:$4 sm:$0xff]  }
 0x32b   :  { %5353 = vmatpush2.bf16.msra.mxu1 %v7101_v36  ;;  %v7194_v36 = vld [vmem:[#allocation11 + $0xd0] ss:$8 sps:$4 sm:$0xff]  }
 0x32c   :  { %5354 = vmatprep.subr.bf16.mxu1 %v7109_v41  ;;  %v5157_v48 = vpop.f32.mrf.mxu0  ;;  %5402 = vmatmul.mubr.bf16.vlgmr.msra.gmra.mxu0 %v7688_v33  ;;  %v7170_v33 = vld [vmem:[#allocation11 + $0x50] ss:$8 sps:$4 sm:$0xff]   ;;  %v7199_v41 = vld [vmem:[#allocation11 + $0xc4] ss:$8 sps:$4 sm:$0xff]  }
 0x32d   :  { %v5158_v60 = vadd.f32 %v5157_v48, %v3826_v43  ;;  %5856 = vmatpush1.bf16.msra.mxu0 %v7164_v5  ;;  %v7142_v43 = vld [vmem:[#allocation8 + $0x7ec] ss:$16 sps:$4 sm:$0xff]   ;;  %v7143_v48 = vld [vmem:[#allocation8 + $0x7c8] ss:$16 sps:$4 sm:$0xff]  }
 0x32e   :  { %v5198_v50 = vpop.f32.mrf.mxu1  ;;  %v5159_v53 = vpop.f32.mrf.mxu0  ;;  %5857 = vmatprep.subr.bf16.mxu0 %v7169_v37  ;;  %v7197_v5 = vld [vmem:[#allocation11 + $0xc0] ss:$8 sps:$4 sm:$0xff]   ;;  %v7202_v37 = vld [vmem:[#allocation11 + $0xb4] ss:$8 sps:$4 sm:$0xff]  }
 0x32f   :  { %5355 = vmatpush2.bf16.msra.mxu1 %v7107_v44  ;;  %v7718_v62 = vadd.f32 %v5198_v50, %v5158_v60  ;;  %v5160_v25 = vadd.f32 %v5159_v53, %v3830_v22  ;;  %v7140_v44 = vld [vmem:[#allocation8 + $0x7e8] ss:$16 sps:$4 sm:$0xff]   ;;  %v7145_v22 = vld [vmem:[#allocation8 + $0x7cc] ss:$16 sps:$4 sm:$0xff]  }
 0x330   :  { %v5200_v29 = vpop.f32.mrf.mxu1  ;;  %5356 = vmatprep.subr.bf16.mxu1 %v7112_v47  ;;  %v5161_v32 = vpop.f32.mrf.mxu0  ;;  %v7200_v47 = vld [vmem:[#allocation11 + $0xb0] ss:$8 sps:$4 sm:$0xff]   ;;  %v7205_v60 = vld [vmem:[#allocation11 + $0xa4] ss:$8 sps:$4 sm:$0xff]  }
 0x331   :  { %v7720_v35 = vadd.f32 %v5200_v29, %v5160_v25  ;;  %5858 = vmatpush1.bf16.msra.mxu0 %v7167_v16  ;;  %v7148_v50 = vld [vmem:[#allocation8 + $0x7ac] ss:$16 sps:$4 sm:$0xff]   ;;  %v7146_v53 = vld [vmem:[#allocation8 + $0x7a8] ss:$16 sps:$4 sm:$0xff]  }
 0x332   :  { %v5202_v8 = vpop.f32.mrf.mxu1  ;;  %v5162_v9 = vpop.f32.mrf.mxu0  ;;  %5859 = vmatprep.subr.bf16.mxu0 %v7172_v57  ;;  %v7203_v16 = vld [vmem:[#allocation11 + $0xa0] ss:$8 sps:$4 sm:$0xff]   ;;  %v7206_v25 = vld [vmem:[#allocation11 + $0x90] ss:$8 sps:$4 sm:$0xff]   ;;  %v7149_v29 = vld [vmem:[#allocation8 + $0x788] ss:$16 sps:$4 sm:$0xff]  }
 0x333   :  { %5357 = vmatpush2.bf16.msra.mxu1 %v7110_v56  ;;  %v7208_v56 = vld [vmem:[#allocation11 + $0x94] ss:$8 sps:$4 sm:$0xff]   ;;  %v7151_v57 = vld [vmem:[#allocation8 + $0x78c] ss:$16 sps:$4 sm:$0xff]  }
 0x334   :  { %v5203_v11 = vpop.f32.mrf.mxu1  ;;  %5358 = vmatprep.subr.bf16.mxu1 %v7115_v54  ;;  %v7211_v54 = vld [vmem:[#allocation11 + $0x84] ss:$8 sps:$4 sm:$0xff]   ;;  %v7154_v32 = vld [vmem:[#allocation8 + $0x76c] ss:$16 sps:$4 sm:$0xff]  }
 0x335   :  { %5860 = vmatpush1.bf16.msra.mxu0 %v7170_v33  ;;  %v7209_v8 = vld [vmem:[#allocation11 + $0x80] ss:$8 sps:$4 sm:$0xff]   ;;  %v7152_v33 = vld [vmem:[#allocation8 + $0x768] ss:$16 sps:$4 sm:$0xff]  }
 0x336   :  { %5861 = vmatprep.subr.bf16.mxu0 %v7175_v6  ;;  %v7157_v9 = vld [vmem:[#allocation8 + $0x74c] ss:$16 sps:$4 sm:$0xff]  }
 0x337   :  { %5359 = vmatpush2.bf16.msra.mxu1 %v7113_v10  ;;  %v7155_v10 = vld [vmem:[#allocation8 + $0x748] ss:$16 sps:$4 sm:$0xff]   ;;  %v7160_v6 = vld [vmem:[#allocation8 + $0x72c] ss:$16 sps:$4 sm:$0xff]  }
 0x338   :  { %5410 = vmatprep.subr.bf16.mxu1 %v7118_v17 }
 0x339   :  { %5862 = vmatpush1.bf16.msra.mxu0 %v7173_v12 }
 0x33a   :  { %5361 = vmatmul.mubr.bf16.vlgmr.msra.gmra.mxu1 %v7670_v0  ;;  %5863 = vmatprep.subr.bf16.mxu0 %v7178_v15  ;;  %v7182_v0 = vld [vmem:[#allocation11 + $0x10] ss:$8 sps:$4 sm:$0xff]  }
 0x33b   :  { %5411 = vmatpush1.bf16.msra.mxu1 %v7116_v13  ;;  %5442 = vmatprep.mubr.bf16.mxu1 %v7704_v45  ;;  %v7130_v45 = vld [vmem:[#allocation8 + $0x66c] ss:$16 sps:$4 sm:$0xff]   ;;  %v7158_v13 = vld [vmem:[#allocation8 + $0x728] ss:$16 sps:$4 sm:$0xff]  }
 0x33c   :  { %5412 = vmatprep.subr.bf16.mxu1 %v7121_v14  ;;  %v7163_v15 = vld [vmem:[#allocation8 + $0x70c] ss:$16 sps:$4 sm:$0xff]  }
 0x33d   :  { %5864 = vmatpush1.bf16.msra.mxu0 %v7176_v59 }
 0x33e   :  { %5865 = vmatprep.subr.bf16.mxu0 %v7181_v63  ;;  %v7161_v63 = vld [vmem:[#allocation8 + $0x708] ss:$16 sps:$4 sm:$0xff]  }
 0x33f   :  { %5413 = vmatpush1.bf16.msra.mxu1 %v7119_v18 }
 0x340   :  { %5414 = vmatprep.subr.bf16.mxu1 %v7124_v23  ;;  %v7212_v23 = vld [vmem:[#allocation11 + $0x170] ss:$8 sps:$4 sm:$0xff]  }
 0x341   :  { %5866 = vmatpush1.bf16.msra.mxu0 %v7179_v26  ;;  %v7214_v26 = vld [vmem:[#allocation11 + $0x174] ss:$8 sps:$4 sm:$0xff]  }
 0x342   :  { %5867 = vmatprep.subr.bf16.mxu0 %v7184_v24  ;;  %v7220_v24 = vld [vmem:[#allocation11 + $0x154] ss:$8 sps:$4 sm:$0xff]  }
 0x343   :  { %5415 = vmatpush1.bf16.msra.mxu1 %v7122_v20  ;;  %v7215_v20 = vld [vmem:[#allocation11 + $0x160] ss:$8 sps:$4 sm:$0xff]  }
 0x344   :  { %5416 = vmatprep.subr.bf16.mxu1 %v7127_v27  ;;  %v7223_v27 = vld [vmem:[#allocation11 + $0x144] ss:$8 sps:$4 sm:$0xff]  }
 0x345   :  { %5868 = vmatpush1.bf16.msra.mxu0 %v7182_v0  ;;  %v7221_v0 = vld [vmem:[#allocation11 + $0x140] ss:$8 sps:$4 sm:$0xff]  }
 0x346   :  { %5869 = vmatprep.subr.bf16.mxu0 %v7187_v31  ;;  %v7224_v31 = vld [vmem:[#allocation11 + $0x130] ss:$8 sps:$4 sm:$0xff]  }
 0x347   :  { %5417 = vmatpush1.bf16.msra.mxu1 %v7125_v28  ;;  %v7226_v28 = vld [vmem:[#allocation11 + $0x134] ss:$8 sps:$4 sm:$0xff]  }
 0x348   :  { %5418 = vmatprep.subr.bf16.mxu1 %v7130_v45  ;;  %v7227_v45 = vld [vmem:[#allocation11 + $0x120] ss:$8 sps:$4 sm:$0xff]  }
 0x349   :  { %5870 = vmatpush1.bf16.msra.mxu0 %v7185_v19  ;;  %v7232_v19 = vld [vmem:[#allocation11 + $0x114] ss:$8 sps:$4 sm:$0xff]  }
 0x34a   :  { %5871 = vmatprep.subr.bf16.mxu0 %v7190_v21  ;;  %v7235_v21 = vld [vmem:[#allocation11 + $0x104] ss:$8 sps:$4 sm:$0xff]  }
 0x34b   :  { %5419 = vmatpush1.bf16.msra.mxu1 %v7128_v4  ;;  %v7230_v4 = vld [vmem:[#allocation11 + $0x110] ss:$8 sps:$4 sm:$0xff]  }
 0x34c   :  { %5420 = vmatprep.subr.bf16.mxu1 %v7133_v61  ;;  %v7233_v61 = vld [vmem:[#allocation11 + $0x100] ss:$8 sps:$4 sm:$0xff]  }
 0x34d   :  { %5872 = vmatpush2.bf16.msra.mxu0 %v7188_v49  ;;  %v7238_v49 = vld [vmem:[#allocation11 + $0x1f4] ss:$8 sps:$4 sm:$0xff]  }
 0x34e   :  { %5873 = vmatprep.subr.bf16.mxu0 %v7193_v51  ;;  %v7241_v51 = vld [vmem:[#allocation11 + $0x1e4] ss:$8 sps:$4 sm:$0xff]  }
 0x34f   :  { %5421 = vmatpush1.bf16.msra.mxu1 %v7131_v2  ;;  %v7236_v2 = vld [vmem:[#allocation11 + $0x1f0] ss:$8 sps:$4 sm:$0xff]  }
 0x350   :  { %5422 = vmatprep.subr.bf16.mxu1 %v7136_v30  ;;  %v7239_v30 = vld [vmem:[#allocation11 + $0x1e0] ss:$8 sps:$4 sm:$0xff]  }
 0x351   :  { %5874 = vmatpush2.bf16.msra.mxu0 %v7191_v34  ;;  %v7244_v34 = vld [vmem:[#allocation11 + $0x1d4] ss:$8 sps:$4 sm:$0xff]  }
 0x352   :  { %5875 = vmatprep.subr.bf16.mxu0 %v7196_v39  ;;  %v7247_v39 = vld [vmem:[#allocation11 + $0x1c4] ss:$8 sps:$4 sm:$0xff]  }
 0x353   :  { %5423 = vmatpush1.bf16.msra.mxu1 %v7134_v38  ;;  %v7242_v38 = vld [vmem:[#allocation11 + $0x1d0] ss:$8 sps:$4 sm:$0xff]  }
 0x354   :  { %5424 = vmatprep.subr.bf16.mxu1 %v7139_v42  ;;  %v7245_v42 = vld [vmem:[#allocation11 + $0x1c0] ss:$8 sps:$4 sm:$0xff]  }
 0x355   :  { %5876 = vmatpush2.bf16.msra.mxu0 %v7194_v36  ;;  %v7250_v36 = vld [vmem:[#allocation11 + $0x1b4] ss:$8 sps:$4 sm:$0xff]  }
 0x356   :  { %5877 = vmatprep.subr.bf16.mxu0 %v7199_v41 }
 0x357   :  { %5425 = vmatpush1.bf16.msra.mxu1 %v7137_v3 }
 0x358   :  { %5426 = vmatprep.subr.bf16.mxu1 %v7142_v43  ;;  %v7248_v43 = vld [vmem:[#allocation11 + $0x1b0] ss:$8 sps:$4 sm:$0xff]  }
 0x359   :  { %5878 = vmatpush2.bf16.msra.mxu0 %v7197_v5  ;;  %v7253_v5 = vld [vmem:[#allocation11 + $0x1a4] ss:$8 sps:$4 sm:$0xff]  }
 0x35a   :  { %5879 = vmatprep.subr.bf16.mxu0 %v7202_v37 }
 0x35b   :  { %5427 = vmatpush2.bf16.msra.mxu1 %v7140_v44 }
 0x35c   :  { %5428 = vmatprep.subr.bf16.mxu1 %v7145_v22  ;;  %v7251_v22 = vld [vmem:[#allocation11 + $0x1a0] ss:$8 sps:$4 sm:$0xff]  }
 0x35d   :  { %5880 = vmatpush2.bf16.msra.mxu0 %v7200_v47 }
 0x35e   :  { %5881 = vmatprep.subr.bf16.mxu0 %v7205_v60 }
 0x35f   :  { %5429 = vmatpush2.bf16.msra.mxu1 %v7143_v48  ;;  %v7256_v48 = vld [vmem:[#allocation11 + $0x194] ss:$8 sps:$4 sm:$0xff]  }
 0x360   :  { %5430 = vmatprep.subr.bf16.mxu1 %v7148_v50  ;;  %v7254_v50 = vld [vmem:[#allocation11 + $0x190] ss:$8 sps:$4 sm:$0xff]  }
 0x361   :  { %5882 = vmatpush2.bf16.msra.mxu0 %v7203_v16 }
 0x362   :  { %5883 = vmatprep.subr.bf16.mxu0 %v7208_v56 }
 0x363   :  { %5431 = vmatpush2.bf16.msra.mxu1 %v7146_v53 }
 0x364   :  { %5432 = vmatprep.subr.bf16.mxu1 %v7151_v57 }
 0x365   :  { %5884 = vmatpush2.bf16.msra.mxu0 %v7206_v25  ;;  %v7259_v25 = vld [vmem:[#allocation11 + $0x184] ss:$8 sps:$4 sm:$0xff]  }
 0x366   :  { %5885 = vmatprep.subr.bf16.mxu0 %v7211_v54  ;;  %v7257_v54 = vld [vmem:[#allocation11 + $0x180] ss:$8 sps:$4 sm:$0xff]  }
 0x367   :  { %5433 = vmatpush2.bf16.msra.mxu1 %v7149_v29 }
 0x368   :  { %5434 = vmatprep.subr.bf16.mxu1 %v7154_v32 }
 0x369   :  { %5886 = vmatpush2.bf16.msra.mxu0 %v7209_v8 }
 0x36b   :  { %5435 = vmatpush2.bf16.msra.mxu1 %v7152_v33 }
 0x36c   :  { %5436 = vmatprep.subr.bf16.mxu1 %v7157_v9  ;;  %v5239_v11 = vpop.f32.mrf.mxu0 }
 0x36d   :  { %v7725_v17 = vadd.f32 %v5239_v11, %v7718_v62  ;;  %v7217_v62 = vld [vmem:[#allocation11 + $0x164] ss:$8 sps:$4 sm:$0xff]  }
 0x36e   :  { %v5241_v12 = vpop.f32.mrf.mxu0 }
 0x36f   :  { %5437 = vmatpush2.bf16.msra.mxu1 %v7155_v10  ;;  %v7728_v14 = vadd.f32 %v5241_v12, %v7720_v35  ;;  %v7218_v35 = vld [vmem:[#allocation11 + $0x150] ss:$8 sps:$4 sm:$0xff]   ;;  %v3838_v12 = vrot.slane %v7711_v40, %v602_v58 }
 0x370   :  { %5438 = vmatprep.subr.bf16.mxu1 %v7160_v6  ;;  %v5243_v59 = vpop.f32.mrf.mxu0 }
 0x372   :  { %v5244_v18 = vpop.f32.mrf.mxu0 }
 0x373   :  { %5439 = vmatpush2.bf16.msra.mxu1 %v7158_v13 }
 0x374   :  { %5440 = vmatprep.subr.bf16.mxu1 %v7163_v15 }
 0x377   :  { %5441 = vmatpush2.bf16.msra.mxu1 %v7161_v63 }
 0x378   :  { %5896 = vmatprep.subr.bf16.mxu1 %v7214_v26 }
 0x37a   :  { %5443 = vmatmul.mubr.bf16.vlgmr.msra.gmra.mxu1 %v7706_v46  ;;  %v7229_v46 = vld [vmem:[#allocation11 + $0x124] ss:$8 sps:$4 sm:$0xff]  }
 0x37b   :  { %5897 = vmatpush1.bf16.msra.mxu1 %v7212_v23 }
 0x37c   :  { %5898 = vmatprep.subr.bf16.mxu1 %v7217_v62 }
 0x37f   :  { %5899 = vmatpush1.bf16.msra.mxu1 %v7215_v20 }
 0x380   :  { %5900 = vmatprep.subr.bf16.mxu1 %v7220_v24 }
 0x383   :  { %5901 = vmatpush1.bf16.msra.mxu1 %v7218_v35 }
 0x384   :  { %5902 = vmatprep.subr.bf16.mxu1 %v7223_v27 }
 0x387   :  { %5903 = vmatpush1.bf16.msra.mxu1 %v7221_v0 }
 0x388   :  { %5904 = vmatprep.subr.bf16.mxu1 %v7226_v28 }
 0x38b   :  { %5905 = vmatpush1.bf16.msra.mxu1 %v7224_v31 }
 0x38c   :  { %5906 = vmatprep.subr.bf16.mxu1 %v7229_v46 }
 0x38f   :  { %5907 = vmatpush1.bf16.msra.mxu1 %v7227_v45 }
 0x390   :  { %5908 = vmatprep.subr.bf16.mxu1 %v7232_v19 }
 0x393   :  { %5909 = vmatpush1.bf16.msra.mxu1 %v7230_v4 }
 0x394   :  { %5910 = vmatprep.subr.bf16.mxu1 %v7235_v21  ;;  %v5523_v21 = vld [vmem:[#allocation13] sm:$0x3] }
 0x397   :  { %5911 = vmatpush1.bf16.msra.mxu1 %v7233_v61  ;;  %v5528_v61 = vrot.slane %v5523_v21, %v7581_v1 }
 0x398   :  { %5912 = vmatprep.subr.bf16.mxu1 %v7238_v49  ;;  %v5532_v49 = vrot.slane %v5523_v21, %v7586_v7 }
 0x39b   :  { %5913 = vmatpush2.bf16.msra.mxu1 %v7236_v2 }
 0x39c   :  { %5914 = vmatprep.subr.bf16.mxu1 %v7241_v51 }
 0x39f   :  { %5915 = vmatpush2.bf16.msra.mxu1 %v7239_v30  ;;  %v5939_v30 = vld [vmem:[#allocation14] sm:$0x3] }
 0x3a0   :  { %5916 = vmatprep.subr.bf16.mxu1 %v7244_v34 }
 0x3a3   :  { %5917 = vmatpush2.bf16.msra.mxu1 %v7242_v38 }
 0x3a4   :  { %5918 = vmatprep.subr.bf16.mxu1 %v7247_v39 }
 0x3a7   :  { %5919 = vmatpush2.bf16.msra.mxu1 %v7245_v42 }
 0x3a8   :  { %5920 = vmatprep.subr.bf16.mxu1 %v7250_v36 }
 0x3ab   :  { %5921 = vmatpush2.bf16.msra.mxu1 %v7248_v43 }
 0x3ac   :  { %v5321_v3 = vpop.f32.mrf.mxu0  ;;  %5922 = vmatprep.subr.bf16.mxu1 %v7253_v5 }
 0x3ae   :  { %v5323_v41 = vpop.f32.mrf.mxu0 }
 0x3af   :  { %5923 = vmatpush2.bf16.msra.mxu1 %v7251_v22  ;;  %v5324_v15 = vadd.f32 %v5323_v41, %v3838_v12  ;;  %v5948_v41 = vrot.slane %v5939_v30, %v7586_v7 }
 0x3b0   :  { %v5325_v44 = vpop.f32.mrf.mxu0  ;;  %5924 = vmatprep.subr.bf16.mxu1 %v7256_v48  ;;  %v6756_v48 = vld [vmem:[#allocation2] ss:$0 sm:$0xff] }
 0x3b2   :  { %v5326_v37 = vpop.f32.mrf.mxu0 }
 0x3b3   :  { %5925 = vmatpush2.bf16.msra.mxu1 %v7254_v50 }
 0x3b4   :  { %5926 = vmatprep.subr.bf16.mxu1 %v7259_v25 }
 0x3b7   :  { %5927 = vmatpush2.bf16.msra.mxu1 %v7257_v54 }
 0x3ba   :  { %v5280_v47 = vpop.f32.mrf.mxu1 }
 0x3bb   :  { %v5281_v60 = vadd.f32 %v5280_v47, %v7725_v17  ;;  %v3834_v17 = vrot.slane %v7711_v40, %v598_v55 }
 0x3bc   :  { %v5282_v16 = vpop.f32.mrf.mxu1 }
 0x3bd   :  { %v5283_v53 = vadd.f32 %v5282_v16, %v7728_v14  ;;  %v5451_v56 = vmax.f32 %v5281_v60, 0.0  ;;  %v5322_v13 = vadd.f32 %v5321_v3, %v3834_v17  ;;  %v5944_v3 = vrot.slane %v5939_v30, %v7581_v1 }
 0x3be   :  { %v5284_v57 = vpop.f32.mrf.mxu1 }
 0x3bf   :  { %v5452_v29 = vmax.f32 %v5283_v53, 0.0  ;;  %v5455_v33 = vpack.c.bf16 %v5451_v56, %v5451_v56 }
 0x3c0   :  { %v5285_v32 = vpop.f32.mrf.mxu1 }
 0x3c1   :  { %v5456_v8 = vpack.c.bf16 %v5452_v29, %v5452_v29 }
 0x3c3   :  { %5887 = vmatprep.mubr.bf16.mxu0 %v5456_v8 }
 0x3c4   :  { %5888 = vmatmul.mubr.bf16.vlgmr.msra.gmra.mxu0 %v5455_v33 }
 0x3ec   :  { %v5403_v9 = vpop.f32.mrf.mxu0 }
 0x3ee   :  { %v5405_v10 = vpop.f32.mrf.mxu0 }
 0x3f0   :  { %v5407_v6 = vpop.f32.mrf.mxu0 }
 0x3f2   :  { %v5408_v11 = vpop.f32.mrf.mxu0 }
 0x3fa   :  { %v5362_v14 = vpop.f32.mrf.mxu1 }
 0x3fb   :  { %v5363_v59 = vadd.f32 %v5362_v14, %v5322_v13 }
 0x3fc   :  { %v5364_v18 = vpop.f32.mrf.mxu1 }
 0x3fd   :  { %v5365_v63 = vadd.f32 %v5364_v18, %v5324_v15  ;;  %v5404_v23 = vadd.f32 %v5403_v9, %v5363_v59 }
 0x3fe   :  { %v5366_v26 = vpop.f32.mrf.mxu1 }
 0x3ff   :  { %v5406_v62 = vadd.f32 %v5405_v10, %v5365_v63 }
 0x400   :  { %v5367_v20 = vpop.f32.mrf.mxu1 }
 0x43a   :  { %v5444_v24 = vpop.f32.mrf.mxu1 }
 0x43b   :  { %v5445_v35 = vadd.f32 %v5444_v24, %v5404_v23 }
 0x43c   :  { %v5446_v27 = vpop.f32.mrf.mxu1 }
 0x43d   :  { %v5447_v0 = vadd.f32 %v5446_v27, %v5406_v62  ;;  %v5453_v28 = vmax.f32 %v5445_v35, 0.0 }
 0x43e   :  { %v5448_v55 = vpop.f32.mrf.mxu1 }
 0x43f   :  { %v5454_v31 = vmax.f32 %v5447_v0, 0.0  ;;  %v5457_v58 = vpack.c.bf16 %v5453_v28, %v5453_v28 }
 0x440   :  { %v5449_v52 = vpop.f32.mrf.mxu1 }
 0x441   :  { %v5458_v46 = vpack.c.bf16 %v5454_v31, %v5454_v31 }
 0x443   :  { %5928 = vmatprep.mubr.bf16.mxu1 %v5458_v46 }
 0x444   :  { %5929 = vmatmul.mubr.bf16.vlgmr.msra.gmra.mxu1 %v5457_v58 }
 0x484   :  { %v5889_v40 = vpop.f32.mrf.mxu0 }
 0x485   :  { %v5890_v2 = vadd.f32 %v5889_v40, %v5528_v61 }
 0x486   :  { %v5891_v45 = vpop.f32.mrf.mxu0 }
 0x487   :  { %v5892_v34 = vadd.f32 %v5891_v45, %v5532_v49 }
 0x488   :  { %v5893_v19 = vpop.f32.mrf.mxu0 }
 0x48a   :  { %v5894_v4 = vpop.f32.mrf.mxu0 }
 0x504   :  { %v5930_v51 = vpop.f32.mrf.mxu1 }
 0x505   :  { %v5931_v38 = vadd.f32 %v5930_v51, %v5890_v2 }
 0x506   :  { %v5932_v39 = vpop.f32.mrf.mxu1 }
 0x507   :  { %v5937_v42 = vmax.f32 %v5931_v38, 0.0  ;;  %v5933_v36 = vadd.f32 %v5932_v39, %v5892_v34 }
 0x508   :  { %v5934_v43 = vpop.f32.mrf.mxu1 }
 0x509   :  { %v5938_v5 = vmax.f32 %v5933_v36, 0.0  ;;  %v5951_v37 = vmul.f32 %v5944_v3, %v5937_v42 }
 0x50a   :  { %v5935_v44 = vpop.f32.mrf.mxu1 }
 0x50b   :  { %v5952_v22 = vmul.f32 %v5948_v41, %v5938_v5 }
 0x50d   :  { %v5953_v47 = vadd.f32 %v5952_v22, %v5951_v37 }
 0x50f   :  { %5954 = vadd.xlane.f32.xlu0 %v5953_v47 }
 0x598   :  { %v5955_v60 = vpop.xlane.xlu0 %5954 }
 0x599   :  { %v5963_v50 = vadd.f32 %v6756_v48, %v5955_v60 }
 0x59b   :  { %v6757_v16 = vmul.f32 -1.442695, %v5963_v50 }
 0x59d   :  { %7260 = vpow2.f32 %v6757_v16 }
 0x5aa   :  { %v7261_v53 = vpop.eup %7260 }
 0x5ab   :  { %v5967_v56 = vadd.f32 1.0, %v7261_v53 }
 0x5ad   :  { %7262 = vrcp.f32 %v5967_v56 }
 0x5ba   :  { %v7263_v57 = vpop.eup %7262 }
 0x5bb   :  { %5971 = vst.msk [vmem:[%s7755_s9] sm:$0xff] %vm5970_vm0, %v7263_v57 }
 0x5bc   :  { %5976 = vsyncpa [#allocation4], 1 }
 0x5bd   :  { %5977 = vsyncpa [#allocation6], 1 }
 0x5be   :  { %5978 = vsyncpa [#allocation9], 1 }
 0x5bf   :  { %5979 = vsyncpa [#allocation12], 1 }
 0x5c0   :  { %5980 = vsyncpa [#allocation15], 1 }

</bundles_post_ra>
